<compile_context>
chip_gen: v7x
topology: tpu7x:2x2x1
jax: 0.10.0
libtpu: 0.0.40
codegen_flags: <defaults>
</compile_context>

<pallas_src>
import functools

import jax
import jax.numpy as jnp
from jax import lax
from jax.experimental import pallas as pl
from jax.experimental.pallas import tpu as pltpu


def _round_up(x, m):
    return (x + m - 1) // m * m


def _basic_block_kernel(x_ref, w1_ref, w2_ref, mask_ref, o_ref, pad_ref,
                        *, h, w, ext, frame_pad):
    # x_ref   : (G, Cin, frame)   f32  pre-padded, flattened frames (frame=Hp*Wp)
    # w1_ref  : (Cmid, 9*Cin)     bf16 conv1 weights, cols ordered (kh, kw, cin)
    # w2_ref  : (Cout, 9*Cmid)    bf16 conv2 weights
    # mask_ref: (1, G*frame_pad)  f32  1.0 on true interior lanes, 0.0 elsewhere
    # o_ref   : (G, Cout, H, W)   f32  interior-only NCHW output
    # pad_ref : (Cin, ext + G*frame_pad + ext) bf16 working frame with halos
    g_blk, cin, frame = x_ref.shape
    wp = w + 2
    width = g_blk * frame_pad

    # Stage the pre-padded frames into the haloed working buffer (bf16).
    # Store starts are lane aligned (ext and frame_pad are multiples of 128).
    for g in range(g_blk):
        base = ext + g * frame_pad
        pad_ref[:, base:base + frame] = x_ref[g].astype(jnp.bfloat16)

    def conv3x3(w_ref):
        # 3x3 conv as 9 accumulated MXU matmuls over lane-shifted windows of
        # the padded frame; no im2col slab is materialised.
        acc = None
        for kh in range(3):
            for kw in range(3):
                t = kh * 3 + kw
                s = ext + (kh - 1) * wp + (kw - 1)
                part = jnp.dot(w_ref[:, t * cin:(t + 1) * cin],
                               pad_ref[:, s:s + width],
                               preferred_element_type=jnp.float32)
                acc = part if acc is None else acc + part
        return acc                                      # (Cout, width) f32

    # conv1 + ReLU.  jnp.where (not a multiply) zeroes every non-interior
    # lane, so conv2 sees exact zero padding and garbage (even NaN) in the
    # never-initialised halo/tail lanes of pad_ref cannot leak through.
    interior = mask_ref[...] > 0.5
    h1 = jnp.where(interior, jnp.maximum(conv3x3(w1_ref), 0.0), 0.0)
    pad_ref[:, ext:ext + width] = h1.astype(jnp.bfloat16)

    acc2 = conv3x3(w2_ref)

    # Residual add + ReLU in f32 (residual re-read from the resident input
    # block, not held live across the convs); store interior rows only.
    for g in range(g_blk):
        out_g = jnp.maximum(
            acc2[:, g * frame_pad:g * frame_pad + frame] + x_ref[g], 0.0)
        for i in range(h):
            st = (i + 1) * wp + 1
            o_ref[g, :, i, :] = out_g[:, st:st + w].astype(o_ref.dtype)


def basic_block(x_nchw, w1_hwio, w2_hwio, *, max_g=8):
    """BasicBlock forward (stride=1, downsample=None).

    x_nchw: (N, C, H, W) float32  -- PyTorch layout
    w1, w2: (3, 3, Cin, Cout)     -- HWIO weights, bias-free
    returns (N, Cout, H, W) float32
    """
    N, Cin, H, W = x_nchw.shape
    Cmid, Cout = w1_hwio.shape[-1], w2_hwio.shape[-1]
    assert w1_hwio.shape == (3, 3, Cin, Cmid)
    assert w2_hwio.shape == (3, 3, Cmid, Cout)
    assert Cin == Cmid == Cout, "no-downsample BasicBlock needs equal channels"

    Hp, Wp = H + 2, W + 2
    frame = Hp * Wp
    frame_pad = _round_up(frame, 128)       # lane-dense per-image slot
    ext = _round_up(Wp + 1, 128)            # lane-aligned halo >= Wp + 1

    # Pack G images per grid step on the matmul lane axis (bounded VMEM use).
    G = 1
    for g in range(min(N, max_g), 0, -1):
        if N % g == 0 and Cin * (2 * ext + g * frame_pad) * 2 <= (8 << 20):
            G = g
            break
    width = G * frame_pad

    # Pre-pad + flatten the input once (small one-time extra HBM read of x).
    x_pad = jnp.pad(x_nchw, ((0, 0), (0, 0), (1, 1), (1, 1))).reshape(N, Cin, frame)

    # (3,3,Cin,Cout) -> (Cout, 9*Cin) bf16, cols ordered (kh, kw, cin) to match
    # the kernel's tap slicing.  Tiny, constant-folded under jit.
    w1_mat = jnp.transpose(w1_hwio, (3, 0, 1, 2)).reshape(Cmid, 9 * Cin).astype(jnp.bfloat16)
    w2_mat = jnp.transpose(w2_hwio, (3, 0, 1, 2)).reshape(Cout, 9 * Cmid).astype(jnp.bfloat16)

    # 1.0 on true interior lanes of the packed (G, frame_pad) lane layout.
    m = jnp.pad(jnp.ones((H, W), jnp.float32), 1).reshape(frame)
    m = jnp.concatenate([m, jnp.zeros((frame_pad - frame,), jnp.float32)])
    mask = jnp.tile(m, (G,)).reshape(1, width)

    # Generous explicit scoped-VMEM budget (v5e default is only 16 MiB).
    est = (2 * G * Cin * frame * 4           # input block, double buffered
           + 2 * G * Cout * H * W * 4        # output block, double buffered
           + (Cmid * 9 * Cin + Cout * 9 * Cmid) * 2
           + width * 4                       # mask
           + Cin * (2 * ext + width) * 2)    # padded-frame scratch (bf16)
    vmem_limit = int(min(max(2 * est + (1 << 20), 32 << 20), 48 << 20))

    kern = functools.partial(_basic_block_kernel, h=H, w=W, ext=ext,
                             frame_pad=frame_pad)

    return pl.pallas_call(
        kern,
        out_shape=jax.ShapeDtypeStruct((N, Cout, H, W), x_nchw.dtype),
        grid=(N // G,),
        in_specs=[
            pl.BlockSpec((G, Cin, frame), lambda n: (n, 0, 0)),
            pl.BlockSpec((Cmid, 9 * Cin), lambda n: (0, 0)),
            pl.BlockSpec((Cout, 9 * Cmid), lambda n: (0, 0)),
            pl.BlockSpec((1, width), lambda n: (0, 0)),
        ],
        out_specs=pl.BlockSpec((G, Cout, H, W), lambda n: (n, 0, 0, 0)),
        scratch_shapes=[
            pltpu.VMEM((Cin, 2 * ext + width), jnp.bfloat16),
        ],
        compiler_params=pltpu.CompilerParams(
            dimension_semantics=("parallel",),
            vmem_limit_bytes=vmem_limit),
    )(x_pad, w1_mat, w2_mat, mask)


def _reference(x_nchw, w1, w2, operand_dtype=jnp.float32):
    """Pure-JAX reference (lax conv) mirroring the PyTorch forward.

    operand_dtype=bf16 reproduces the kernel's bf16 matmul operands (with f32
    accumulation) for a tight numerical check.
    """
    def conv(x, w):
        w_oihw = jnp.transpose(w, (3, 2, 0, 1)).astype(operand_dtype)
        return lax.conv_general_dilated(
            x.astype(operand_dtype), w_oihw, window_strides=(1, 1),
            padding=((1, 1), (1, 1)),
            dimension_numbers=("NCHW", "OIHW", "NCHW"),
            preferred_element_type=jnp.float32)

    out = jnp.maximum(conv(x_nchw, w1), 0.0)
    out = conv(out, w2) + x_nchw
    return jnp.maximum(out, 0.0)


if __name__ == "__main__":
    key = jax.random.PRNGKey(0)
    k_x, k_w1, k_w2 = jax.random.split(key, 3)

    N, C, H, W = 2, 4, 16, 16          # inplanes = planes = 4, stride = 1
    x = jax.random.normal(k_x, (N, C, H, W), dtype=jnp.float32)
    w1 = jax.random.normal(k_w1, (3, 3, C, C), dtype=jnp.float32) * 0.1
    w2 = jax.random.normal(k_w2, (3, 3, C, C), dtype=jnp.float32) * 0.1

    out = jax.jit(basic_block)(x, w1, w2)
    jax.block_until_ready(out)
    assert out.shape == (N, C, H, W)

    # Tight check vs a reference using the same bf16 matmul operands.
    ref_bf16 = _reference(x, w1, w2, operand_dtype=jnp.bfloat16)
    assert jnp.allclose(out, ref_bf16, atol=1e-2, rtol=1e-2), "mismatch (bf16 ref)"

    # Looser check vs the full-f32 module semantics (bf16-operand tolerance).
    ref_f32 = _reference(x, w1, w2)
    assert jnp.allclose(out, ref_f32, atol=5e-2, rtol=5e-2), "mismatch (f32 ref)"

    print("KERNEL_OK")
</pallas_src>

<mosaic_0001>
module attributes {stable_mosaic.version = 11 : i64} {
  func.func @_basic_block_kernel(%arg0: i32, %arg1: memref<2x4x324xf32, #tpu.memory_space<vmem>>, %arg2: memref<4x36xbf16, #tpu.memory_space<vmem>>, %arg3: memref<4x36xbf16, #tpu.memory_space<vmem>>, %arg4: memref<1x768xf32, #tpu.memory_space<vmem>>, %arg5: memref<2x4x16x16xf32, #tpu.memory_space<vmem>>, %arg6: memref<4x1024xbf16, #tpu.memory_space<vmem>>) attributes {dimension_semantics = [#tpu.dimension_semantics<parallel>], iteration_bounds = array<i64: 1>, scalar_prefetch = 0 : i64, scratch_operands = 1 : i64, tpu.core_type = #tpu.core_type<tc>, window_params = [{transform_indices = @transform_0, window_bounds = array<i64: 2, 4, 324>}, {pipeline_mode = #tpu.pipeline_mode<synchronous>, transform_indices = @transform_1, window_bounds = array<i64: 4, 36>}, {pipeline_mode = #tpu.pipeline_mode<synchronous>, transform_indices = @transform_2, window_bounds = array<i64: 4, 36>}, {pipeline_mode = #tpu.pipeline_mode<synchronous>, transform_indices = @transform_3, window_bounds = array<i64: 1, 768>}, {transform_indices = @transform_4, window_bounds = array<i64: 2, 4, 16, 16>}]} {
    %c0 = arith.constant 0 : index
    %c0_0 = arith.constant 0 : index
    %c0_1 = arith.constant 0 : index
    %0 = vector.load %arg1[%c0, %c0_0, %c0_1] : memref<2x4x324xf32, #tpu.memory_space<vmem>>, vector<1x4x324xf32>
    %1 = vector.shape_cast %0 : vector<1x4x324xf32> to vector<4x324xf32>
    %2 = arith.truncf %1 : vector<4x324xf32> to vector<4x324xbf16>
    %c0_2 = arith.constant 0 : index
    %c128 = arith.constant 128 : index
    %3 = vector.load %arg6[%c0_2, %c128] : memref<4x1024xbf16, #tpu.memory_space<vmem>>, vector<4x324xbf16>
    tpu.vector_store %arg6[%c0_2, %c128], %2 {strides = array<i32>} : memref<4x1024xbf16, #tpu.memory_space<vmem>>, vector<4x324xbf16>,
    %c1 = arith.constant 1 : index
    %c0_3 = arith.constant 0 : index
    %c0_4 = arith.constant 0 : index
    %4 = vector.load %arg1[%c1, %c0_3, %c0_4] : memref<2x4x324xf32, #tpu.memory_space<vmem>>, vector<1x4x324xf32>
    %5 = vector.shape_cast %4 : vector<1x4x324xf32> to vector<4x324xf32>
    %6 = arith.truncf %5 : vector<4x324xf32> to vector<4x324xbf16>
    %c0_5 = arith.constant 0 : index
    %c512 = arith.constant 512 : index
    %7 = vector.load %arg6[%c0_5, %c512] : memref<4x1024xbf16, #tpu.memory_space<vmem>>, vector<4x324xbf16>
    tpu.vector_store %arg6[%c0_5, %c512], %6 {strides = array<i32>} : memref<4x1024xbf16, #tpu.memory_space<vmem>>, vector<4x324xbf16>,
    %c0_6 = arith.constant 0 : index
    %c0_7 = arith.constant 0 : index
    %8 = vector.load %arg4[%c0_6, %c0_7] : memref<1x768xf32, #tpu.memory_space<vmem>>, vector<1x768xf32>
    %cst = arith.constant 5.000000e-01 : f32
    %9 = vector.broadcast %cst : f32 to vector<1x768xf32>
    %10 = arith.cmpf ogt, %8, %9 : vector<1x768xf32>
    %c0_8 = arith.constant 0 : index
    %c0_9 = arith.constant 0 : index
    %11 = vector.load %arg2[%c0_8, %c0_9] : memref<4x36xbf16, #tpu.memory_space<vmem>>, vector<4x4xbf16>
    %c0_10 = arith.constant 0 : index
    %c109 = arith.constant 109 : index
    %12 = vector.load %arg6[%c0_10, %c109] : memref<4x1024xbf16, #tpu.memory_space<vmem>>, vector<4x768xbf16>
    %cst_11 = arith.constant dense<0.000000e+00> : vector<4x768xf32>
    %13 = tpu.matmul %11, %12, %cst_11 {dimension_numbers = #tpu.dot_dimension_numbers<[1], [0], [0], [1], [0, 0, 1, 1], [], []>} : vector<4x4xbf16>, vector<4x768xbf16>, vector<4x768xf32> -> vector<4x768xf32>
    %c0_12 = arith.constant 0 : index
    %c4 = arith.constant 4 : index
    %14 = vector.load %arg2[%c0_12, %c4] : memref<4x36xbf16, #tpu.memory_space<vmem>>, vector<4x4xbf16>
    %c0_13 = arith.constant 0 : index
    %c110 = arith.constant 110 : index
    %15 = vector.load %arg6[%c0_13, %c110] : memref<4x1024xbf16, #tpu.memory_space<vmem>>, vector<4x768xbf16>
    %cst_14 = arith.constant dense<0.000000e+00> : vector<4x768xf32>
    %16 = tpu.matmul %14, %15, %cst_14 {dimension_numbers = #tpu.dot_dimension_numbers<[1], [0], [0], [1], [0, 0, 1, 1], [], []>} : vector<4x4xbf16>, vector<4x768xbf16>, vector<4x768xf32> -> vector<4x768xf32>
    %17 = arith.addf %13, %16 : vector<4x768xf32>
    %c0_15 = arith.constant 0 : index
    %c8 = arith.constant 8 : index
    %18 = vector.load %arg2[%c0_15, %c8] : memref<4x36xbf16, #tpu.memory_space<vmem>>, vector<4x4xbf16>
    %c0_16 = arith.constant 0 : index
    %c111 = arith.constant 111 : index
    %19 = vector.load %arg6[%c0_16, %c111] : memref<4x1024xbf16, #tpu.memory_space<vmem>>, vector<4x768xbf16>
    %cst_17 = arith.constant dense<0.000000e+00> : vector<4x768xf32>
    %20 = tpu.matmul %18, %19, %cst_17 {dimension_numbers = #tpu.dot_dimension_numbers<[1], [0], [0], [1], [0, 0, 1, 1], [], []>} : vector<4x4xbf16>, vector<4x768xbf16>, vector<4x768xf32> -> vector<4x768xf32>
    %21 = arith.addf %17, %20 : vector<4x768xf32>
    %c0_18 = arith.constant 0 : index
    %c12 = arith.constant 12 : index
    %22 = vector.load %arg2[%c0_18, %c12] : memref<4x36xbf16, #tpu.memory_space<vmem>>, vector<4x4xbf16>
    %c0_19 = arith.constant 0 : index
    %c127 = arith.constant 127 : index
    %23 = vector.load %arg6[%c0_19, %c127] : memref<4x1024xbf16, #tpu.memory_space<vmem>>, vector<4x768xbf16>
    %cst_20 = arith.constant dense<0.000000e+00> : vector<4x768xf32>
    %24 = tpu.matmul %22, %23, %cst_20 {dimension_numbers = #tpu.dot_dimension_numbers<[1], [0], [0], [1], [0, 0, 1, 1], [], []>} : vector<4x4xbf16>, vector<4x768xbf16>, vector<4x768xf32> -> vector<4x768xf32>
    %25 = arith.addf %21, %24 : vector<4x768xf32>
    %c0_21 = arith.constant 0 : index
    %c16 = arith.constant 16 : index
    %26 = vector.load %arg2[%c0_21, %c16] : memref<4x36xbf16, #tpu.memory_space<vmem>>, vector<4x4xbf16>
    %c0_22 = arith.constant 0 : index
    %c128_23 = arith.constant 128 : index
    %27 = vector.load %arg6[%c0_22, %c128_23] : memref<4x1024xbf16, #tpu.memory_space<vmem>>, vector<4x768xbf16>
    %cst_24 = arith.constant dense<0.000000e+00> : vector<4x768xf32>
    %28 = tpu.matmul %26, %27, %cst_24 {dimension_numbers = #tpu.dot_dimension_numbers<[1], [0], [0], [1], [0, 0, 1, 1], [], []>} : vector<4x4xbf16>, vector<4x768xbf16>, vector<4x768xf32> -> vector<4x768xf32>
    %29 = arith.addf %25, %28 : vector<4x768xf32>
    %c0_25 = arith.constant 0 : index
    %c20 = arith.constant 20 : index
    %30 = vector.load %arg2[%c0_25, %c20] : memref<4x36xbf16, #tpu.memory_space<vmem>>, vector<4x4xbf16>
    %c0_26 = arith.constant 0 : index
    %c129 = arith.constant 129 : index
    %31 = vector.load %arg6[%c0_26, %c129] : memref<4x1024xbf16, #tpu.memory_space<vmem>>, vector<4x768xbf16>
    %cst_27 = arith.constant dense<0.000000e+00> : vector<4x768xf32>
    %32 = tpu.matmul %30, %31, %cst_27 {dimension_numbers = #tpu.dot_dimension_numbers<[1], [0], [0], [1], [0, 0, 1, 1], [], []>} : vector<4x4xbf16>, vector<4x768xbf16>, vector<4x768xf32> -> vector<4x768xf32>
    %33 = arith.addf %29, %32 : vector<4x768xf32>
    %c0_28 = arith.constant 0 : index
    %c24 = arith.constant 24 : index
    %34 = vector.load %arg2[%c0_28, %c24] : memref<4x36xbf16, #tpu.memory_space<vmem>>, vector<4x4xbf16>
    %c0_29 = arith.constant 0 : index
    %c145 = arith.constant 145 : index
    %35 = vector.load %arg6[%c0_29, %c145] : memref<4x1024xbf16, #tpu.memory_space<vmem>>, vector<4x768xbf16>
    %cst_30 = arith.constant dense<0.000000e+00> : vector<4x768xf32>
    %36 = tpu.matmul %34, %35, %cst_30 {dimension_numbers = #tpu.dot_dimension_numbers<[1], [0], [0], [1], [0, 0, 1, 1], [], []>} : vector<4x4xbf16>, vector<4x768xbf16>, vector<4x768xf32> -> vector<4x768xf32>
    %37 = arith.addf %33, %36 : vector<4x768xf32>
    %c0_31 = arith.constant 0 : index
    %c28 = arith.constant 28 : index
    %38 = vector.load %arg2[%c0_31, %c28] : memref<4x36xbf16, #tpu.memory_space<vmem>>, vector<4x4xbf16>
    %c0_32 = arith.constant 0 : index
    %c146 = arith.constant 146 : index
    %39 = vector.load %arg6[%c0_32, %c146] : memref<4x1024xbf16, #tpu.memory_space<vmem>>, vector<4x768xbf16>
    %cst_33 = arith.constant dense<0.000000e+00> : vector<4x768xf32>
    %40 = tpu.matmul %38, %39, %cst_33 {dimension_numbers = #tpu.dot_dimension_numbers<[1], [0], [0], [1], [0, 0, 1, 1], [], []>} : vector<4x4xbf16>, vector<4x768xbf16>, vector<4x768xf32> -> vector<4x768xf32>
    %41 = arith.addf %37, %40 : vector<4x768xf32>
    %c0_34 = arith.constant 0 : index
    %c32 = arith.constant 32 : index
    %42 = vector.load %arg2[%c0_34, %c32] : memref<4x36xbf16, #tpu.memory_space<vmem>>, vector<4x4xbf16>
    %c0_35 = arith.constant 0 : index
    %c147 = arith.constant 147 : index
    %43 = vector.load %arg6[%c0_35, %c147] : memref<4x1024xbf16, #tpu.memory_space<vmem>>, vector<4x768xbf16>
    %cst_36 = arith.constant dense<0.000000e+00> : vector<4x768xf32>
    %44 = tpu.matmul %42, %43, %cst_36 {dimension_numbers = #tpu.dot_dimension_numbers<[1], [0], [0], [1], [0, 0, 1, 1], [], []>} : vector<4x4xbf16>, vector<4x768xbf16>, vector<4x768xf32> -> vector<4x768xf32>
    %45 = arith.addf %41, %44 : vector<4x768xf32>
    %cst_37 = arith.constant 0.000000e+00 : f32
    %46 = vector.broadcast %cst_37 : f32 to vector<4x768xf32>
    %47 = arith.maximumf %45, %46 : vector<4x768xf32>
    %cst_38 = arith.constant 0.000000e+00 : f32
    %48 = vector.shape_cast %10 : vector<1x768xi1> to vector<1x768xi1>
    %49 = vector.broadcast %48 : vector<1x768xi1> to vector<4x768xi1>
    %50 = vector.broadcast %cst_38 : f32 to vector<4x768xf32>
    %51 = arith.select %49, %47, %50 : vector<4x768xi1>, vector<4x768xf32>
    %52 = arith.truncf %51 : vector<4x768xf32> to vector<4x768xbf16>
    %c0_39 = arith.constant 0 : index
    %c128_40 = arith.constant 128 : index
    %53 = vector.load %arg6[%c0_39, %c128_40] : memref<4x1024xbf16, #tpu.memory_space<vmem>>, vector<4x768xbf16>
    tpu.vector_store %arg6[%c0_39, %c128_40], %52 {strides = array<i32>} : memref<4x1024xbf16, #tpu.memory_space<vmem>>, vector<4x768xbf16>,
    %c0_41 = arith.constant 0 : index
    %c0_42 = arith.constant 0 : index
    %54 = vector.load %arg3[%c0_41, %c0_42] : memref<4x36xbf16, #tpu.memory_space<vmem>>, vector<4x4xbf16>
    %c0_43 = arith.constant 0 : index
    %c109_44 = arith.constant 109 : index
    %55 = vector.load %arg6[%c0_43, %c109_44] : memref<4x1024xbf16, #tpu.memory_space<vmem>>, vector<4x768xbf16>
    %cst_45 = arith.constant dense<0.000000e+00> : vector<4x768xf32>
    %56 = tpu.matmul %54, %55, %cst_45 {dimension_numbers = #tpu.dot_dimension_numbers<[1], [0], [0], [1], [0, 0, 1, 1], [], []>} : vector<4x4xbf16>, vector<4x768xbf16>, vector<4x768xf32> -> vector<4x768xf32>
    %c0_46 = arith.constant 0 : index
    %c4_47 = arith.constant 4 : index
    %57 = vector.load %arg3[%c0_46, %c4_47] : memref<4x36xbf16, #tpu.memory_space<vmem>>, vector<4x4xbf16>
    %c0_48 = arith.constant 0 : index
    %c110_49 = arith.constant 110 : index
    %58 = vector.load %arg6[%c0_48, %c110_49] : memref<4x1024xbf16, #tpu.memory_space<vmem>>, vector<4x768xbf16>
    %cst_50 = arith.constant dense<0.000000e+00> : vector<4x768xf32>
    %59 = tpu.matmul %57, %58, %cst_50 {dimension_numbers = #tpu.dot_dimension_numbers<[1], [0], [0], [1], [0, 0, 1, 1], [], []>} : vector<4x4xbf16>, vector<4x768xbf16>, vector<4x768xf32> -> vector<4x768xf32>
    %60 = arith.addf %56, %59 : vector<4x768xf32>
    %c0_51 = arith.constant 0 : index
    %c8_52 = arith.constant 8 : index
    %61 = vector.load %arg3[%c0_51, %c8_52] : memref<4x36xbf16, #tpu.memory_space<vmem>>, vector<4x4xbf16>
    %c0_53 = arith.constant 0 : index
    %c111_54 = arith.constant 111 : index
    %62 = vector.load %arg6[%c0_53, %c111_54] : memref<4x1024xbf16, #tpu.memory_space<vmem>>, vector<4x768xbf16>
    %cst_55 = arith.constant dense<0.000000e+00> : vector<4x768xf32>
    %63 = tpu.matmul %61, %62, %cst_55 {dimension_numbers = #tpu.dot_dimension_numbers<[1], [0], [0], [1], [0, 0, 1, 1], [], []>} : vector<4x4xbf16>, vector<4x768xbf16>, vector<4x768xf32> -> vector<4x768xf32>
    %64 = arith.addf %60, %63 : vector<4x768xf32>
    %c0_56 = arith.constant 0 : index
    %c12_57 = arith.constant 12 : index
    %65 = vector.load %arg3[%c0_56, %c12_57] : memref<4x36xbf16, #tpu.memory_space<vmem>>, vector<4x4xbf16>
    %c0_58 = arith.constant 0 : index
    %c127_59 = arith.constant 127 : index
    %66 = vector.load %arg6[%c0_58, %c127_59] : memref<4x1024xbf16, #tpu.memory_space<vmem>>, vector<4x768xbf16>
    %cst_60 = arith.constant dense<0.000000e+00> : vector<4x768xf32>
    %67 = tpu.matmul %65, %66, %cst_60 {dimension_numbers = #tpu.dot_dimension_numbers<[1], [0], [0], [1], [0, 0, 1, 1], [], []>} : vector<4x4xbf16>, vector<4x768xbf16>, vector<4x768xf32> -> vector<4x768xf32>
    %68 = arith.addf %64, %67 : vector<4x768xf32>
    %c0_61 = arith.constant 0 : index
    %c16_62 = arith.constant 16 : index
    %69 = vector.load %arg3[%c0_61, %c16_62] : memref<4x36xbf16, #tpu.memory_space<vmem>>, vector<4x4xbf16>
    %c0_63 = arith.constant 0 : index
    %c128_64 = arith.constant 128 : index
    %70 = vector.load %arg6[%c0_63, %c128_64] : memref<4x1024xbf16, #tpu.memory_space<vmem>>, vector<4x768xbf16>
    %cst_65 = arith.constant dense<0.000000e+00> : vector<4x768xf32>
    %71 = tpu.matmul %69, %70, %cst_65 {dimension_numbers = #tpu.dot_dimension_numbers<[1], [0], [0], [1], [0, 0, 1, 1], [], []>} : vector<4x4xbf16>, vector<4x768xbf16>, vector<4x768xf32> -> vector<4x768xf32>
    %72 = arith.addf %68, %71 : vector<4x768xf32>
    %c0_66 = arith.constant 0 : index
    %c20_67 = arith.constant 20 : index
    %73 = vector.load %arg3[%c0_66, %c20_67] : memref<4x36xbf16, #tpu.memory_space<vmem>>, vector<4x4xbf16>
    %c0_68 = arith.constant 0 : index
    %c129_69 = arith.constant 129 : index
    %74 = vector.load %arg6[%c0_68, %c129_69] : memref<4x1024xbf16, #tpu.memory_space<vmem>>, vector<4x768xbf16>
    %cst_70 = arith.constant dense<0.000000e+00> : vector<4x768xf32>
    %75 = tpu.matmul %73, %74, %cst_70 {dimension_numbers = #tpu.dot_dimension_numbers<[1], [0], [0], [1], [0, 0, 1, 1], [], []>} : vector<4x4xbf16>, vector<4x768xbf16>, vector<4x768xf32> -> vector<4x768xf32>
    %76 = arith.addf %72, %75 : vector<4x768xf32>
    %c0_71 = arith.constant 0 : index
    %c24_72 = arith.constant 24 : index
    %77 = vector.load %arg3[%c0_71, %c24_72] : memref<4x36xbf16, #tpu.memory_space<vmem>>, vector<4x4xbf16>
    %c0_73 = arith.constant 0 : index
    %c145_74 = arith.constant 145 : index
    %78 = vector.load %arg6[%c0_73, %c145_74] : memref<4x1024xbf16, #tpu.memory_space<vmem>>, vector<4x768xbf16>
    %cst_75 = arith.constant dense<0.000000e+00> : vector<4x768xf32>
    %79 = tpu.matmul %77, %78, %cst_75 {dimension_numbers = #tpu.dot_dimension_numbers<[1], [0], [0], [1], [0, 0, 1, 1], [], []>} : vector<4x4xbf16>, vector<4x768xbf16>, vector<4x768xf32> -> vector<4x768xf32>
    %80 = arith.addf %76, %79 : vector<4x768xf32>
    %c0_76 = arith.constant 0 : index
    %c28_77 = arith.constant 28 : index
    %81 = vector.load %arg3[%c0_76, %c28_77] : memref<4x36xbf16, #tpu.memory_space<vmem>>, vector<4x4xbf16>
    %c0_78 = arith.constant 0 : index
    %c146_79 = arith.constant 146 : index
    %82 = vector.load %arg6[%c0_78, %c146_79] : memref<4x1024xbf16, #tpu.memory_space<vmem>>, vector<4x768xbf16>
    %cst_80 = arith.constant dense<0.000000e+00> : vector<4x768xf32>
    %83 = tpu.matmul %81, %82, %cst_80 {dimension_numbers = #tpu.dot_dimension_numbers<[1], [0], [0], [1], [0, 0, 1, 1], [], []>} : vector<4x4xbf16>, vector<4x768xbf16>, vector<4x768xf32> -> vector<4x768xf32>
    %84 = arith.addf %80, %83 : vector<4x768xf32>
    %c0_81 = arith.constant 0 : index
    %c32_82 = arith.constant 32 : index
    %85 = vector.load %arg3[%c0_81, %c32_82] : memref<4x36xbf16, #tpu.memory_space<vmem>>, vector<4x4xbf16>
    %c0_83 = arith.constant 0 : index
    %c147_84 = arith.constant 147 : index
    %86 = vector.load %arg6[%c0_83, %c147_84] : memref<4x1024xbf16, #tpu.memory_space<vmem>>, vector<4x768xbf16>
    %cst_85 = arith.constant dense<0.000000e+00> : vector<4x768xf32>
    %87 = tpu.matmul %85, %86, %cst_85 {dimension_numbers = #tpu.dot_dimension_numbers<[1], [0], [0], [1], [0, 0, 1, 1], [], []>} : vector<4x4xbf16>, vector<4x768xbf16>, vector<4x768xf32> -> vector<4x768xf32>
    %88 = arith.addf %84, %87 : vector<4x768xf32>
    %89 = vector.extract_strided_slice %88 {offsets = [0, 0], sizes = [4, 324], strides = [1, 1]} : vector<4x768xf32> to vector<4x324xf32>
    %c0_86 = arith.constant 0 : index
    %c0_87 = arith.constant 0 : index
    %c0_88 = arith.constant 0 : index
    %90 = vector.load %arg1[%c0_86, %c0_87, %c0_88] : memref<2x4x324xf32, #tpu.memory_space<vmem>>, vector<1x4x324xf32>
    %91 = vector.shape_cast %90 : vector<1x4x324xf32> to vector<4x324xf32>
    %92 = arith.addf %89, %91 : vector<4x324xf32>
    %cst_89 = arith.constant 0.000000e+00 : f32
    %93 = vector.broadcast %cst_89 : f32 to vector<4x324xf32>
    %94 = arith.maximumf %92, %93 : vector<4x324xf32>
    %95 = vector.extract_strided_slice %94 {offsets = [0, 19], sizes = [4, 16], strides = [1, 1]} : vector<4x324xf32> to vector<4x16xf32>
    %c0_90 = arith.constant 0 : index
    %c0_91 = arith.constant 0 : index
    %c0_92 = arith.constant 0 : index
    %c0_93 = arith.constant 0 : index
    %96 = vector.load %arg5[%c0_90, %c0_91, %c0_92, %c0_93] : memref<2x4x16x16xf32, #tpu.memory_space<vmem>>, vector<1x4x1x16xf32>
    %97 = vector.shape_cast %96 : vector<1x4x1x16xf32> to vector<4x16xf32>
    %98 = vector.shape_cast %95 : vector<4x16xf32> to vector<1x4x1x16xf32>
    tpu.vector_store %arg5[%c0_90, %c0_91, %c0_92, %c0_93], %98 {strides = array<i32>} : memref<2x4x16x16xf32, #tpu.memory_space<vmem>>, vector<1x4x1x16xf32>,
    %99 = vector.extract_strided_slice %94 {offsets = [0, 37], sizes = [4, 16], strides = [1, 1]} : vector<4x324xf32> to vector<4x16xf32>
    %c0_94 = arith.constant 0 : index
    %c0_95 = arith.constant 0 : index
    %c1_96 = arith.constant 1 : index
    %c0_97 = arith.constant 0 : index
    %100 = vector.load %arg5[%c0_94, %c0_95, %c1_96, %c0_97] : memref<2x4x16x16xf32, #tpu.memory_space<vmem>>, vector<1x4x1x16xf32>
    %101 = vector.shape_cast %100 : vector<1x4x1x16xf32> to vector<4x16xf32>
    %102 = vector.shape_cast %99 : vector<4x16xf32> to vector<1x4x1x16xf32>
    tpu.vector_store %arg5[%c0_94, %c0_95, %c1_96, %c0_97], %102 {strides = array<i32>} : memref<2x4x16x16xf32, #tpu.memory_space<vmem>>, vector<1x4x1x16xf32>,
    %103 = vector.extract_strided_slice %94 {offsets = [0, 55], sizes = [4, 16], strides = [1, 1]} : vector<4x324xf32> to vector<4x16xf32>
    %c0_98 = arith.constant 0 : index
    %c0_99 = arith.constant 0 : index
    %c2 = arith.constant 2 : index
    %c0_100 = arith.constant 0 : index
    %104 = vector.load %arg5[%c0_98, %c0_99, %c2, %c0_100] : memref<2x4x16x16xf32, #tpu.memory_space<vmem>>, vector<1x4x1x16xf32>
    %105 = vector.shape_cast %104 : vector<1x4x1x16xf32> to vector<4x16xf32>
    %106 = vector.shape_cast %103 : vector<4x16xf32> to vector<1x4x1x16xf32>
    tpu.vector_store %arg5[%c0_98, %c0_99, %c2, %c0_100], %106 {strides = array<i32>} : memref<2x4x16x16xf32, #tpu.memory_space<vmem>>, vector<1x4x1x16xf32>,
    %107 = vector.extract_strided_slice %94 {offsets = [0, 73], sizes = [4, 16], strides = [1, 1]} : vector<4x324xf32> to vector<4x16xf32>
    %c0_101 = arith.constant 0 : index
    %c0_102 = arith.constant 0 : index
    %c3 = arith.constant 3 : index
    %c0_103 = arith.constant 0 : index
    %108 = vector.load %arg5[%c0_101, %c0_102, %c3, %c0_103] : memref<2x4x16x16xf32, #tpu.memory_space<vmem>>, vector<1x4x1x16xf32>
    %109 = vector.shape_cast %108 : vector<1x4x1x16xf32> to vector<4x16xf32>
    %110 = vector.shape_cast %107 : vector<4x16xf32> to vector<1x4x1x16xf32>
    tpu.vector_store %arg5[%c0_101, %c0_102, %c3, %c0_103], %110 {strides = array<i32>} : memref<2x4x16x16xf32, #tpu.memory_space<vmem>>, vector<1x4x1x16xf32>,
    %111 = vector.extract_strided_slice %94 {offsets = [0, 91], sizes = [4, 16], strides = [1, 1]} : vector<4x324xf32> to vector<4x16xf32>
    %c0_104 = arith.constant 0 : index
    %c0_105 = arith.constant 0 : index
    %c4_106 = arith.constant 4 : index
    %c0_107 = arith.constant 0 : index
    %112 = vector.load %arg5[%c0_104, %c0_105, %c4_106, %c0_107] : memref<2x4x16x16xf32, #tpu.memory_space<vmem>>, vector<1x4x1x16xf32>
    %113 = vector.shape_cast %112 : vector<1x4x1x16xf32> to vector<4x16xf32>
    %114 = vector.shape_cast %111 : vector<4x16xf32> to vector<1x4x1x16xf32>
    tpu.vector_store %arg5[%c0_104, %c0_105, %c4_106, %c0_107], %114 {strides = array<i32>} : memref<2x4x16x16xf32, #tpu.memory_space<vmem>>, vector<1x4x1x16xf32>,
    %115 = vector.extract_strided_slice %94 {offsets = [0, 109], sizes = [4, 16], strides = [1, 1]} : vector<4x324xf32> to vector<4x16xf32>
    %c0_108 = arith.constant 0 : index
    %c0_109 = arith.constant 0 : index
    %c5 = arith.constant 5 : index
    %c0_110 = arith.constant 0 : index
    %116 = vector.load %arg5[%c0_108, %c0_109, %c5, %c0_110] : memref<2x4x16x16xf32, #tpu.memory_space<vmem>>, vector<1x4x1x16xf32>
    %117 = vector.shape_cast %116 : vector<1x4x1x16xf32> to vector<4x16xf32>
    %118 = vector.shape_cast %115 : vector<4x16xf32> to vector<1x4x1x16xf32>
    tpu.vector_store %arg5[%c0_108, %c0_109, %c5, %c0_110], %118 {strides = array<i32>} : memref<2x4x16x16xf32, #tpu.memory_space<vmem>>, vector<1x4x1x16xf32>,
    %119 = vector.extract_strided_slice %94 {offsets = [0, 127], sizes = [4, 16], strides = [1, 1]} : vector<4x324xf32> to vector<4x16xf32>
    %c0_111 = arith.constant 0 : index
    %c0_112 = arith.constant 0 : index
    %c6 = arith.constant 6 : index
    %c0_113 = arith.constant 0 : index
    %120 = vector.load %arg5[%c0_111, %c0_112, %c6, %c0_113] : memref<2x4x16x16xf32, #tpu.memory_space<vmem>>, vector<1x4x1x16xf32>
    %121 = vector.shape_cast %120 : vector<1x4x1x16xf32> to vector<4x16xf32>
    %122 = vector.shape_cast %119 : vector<4x16xf32> to vector<1x4x1x16xf32>
    tpu.vector_store %arg5[%c0_111, %c0_112, %c6, %c0_113], %122 {strides = array<i32>} : memref<2x4x16x16xf32, #tpu.memory_space<vmem>>, vector<1x4x1x16xf32>,
    %123 = vector.extract_strided_slice %94 {offsets = [0, 145], sizes = [4, 16], strides = [1, 1]} : vector<4x324xf32> to vector<4x16xf32>
    %c0_114 = arith.constant 0 : index
    %c0_115 = arith.constant 0 : index
    %c7 = arith.constant 7 : index
    %c0_116 = arith.constant 0 : index
    %124 = vector.load %arg5[%c0_114, %c0_115, %c7, %c0_116] : memref<2x4x16x16xf32, #tpu.memory_space<vmem>>, vector<1x4x1x16xf32>
    %125 = vector.shape_cast %124 : vector<1x4x1x16xf32> to vector<4x16xf32>
    %126 = vector.shape_cast %123 : vector<4x16xf32> to vector<1x4x1x16xf32>
    tpu.vector_store %arg5[%c0_114, %c0_115, %c7, %c0_116], %126 {strides = array<i32>} : memref<2x4x16x16xf32, #tpu.memory_space<vmem>>, vector<1x4x1x16xf32>,
    %127 = vector.extract_strided_slice %94 {offsets = [0, 163], sizes = [4, 16], strides = [1, 1]} : vector<4x324xf32> to vector<4x16xf32>
    %c0_117 = arith.constant 0 : index
    %c0_118 = arith.constant 0 : index
    %c8_119 = arith.constant 8 : index
    %c0_120 = arith.constant 0 : index
    %128 = vector.load %arg5[%c0_117, %c0_118, %c8_119, %c0_120] : memref<2x4x16x16xf32, #tpu.memory_space<vmem>>, vector<1x4x1x16xf32>
    %129 = vector.shape_cast %128 : vector<1x4x1x16xf32> to vector<4x16xf32>
    %130 = vector.shape_cast %127 : vector<4x16xf32> to vector<1x4x1x16xf32>
    tpu.vector_store %arg5[%c0_117, %c0_118, %c8_119, %c0_120], %130 {strides = array<i32>} : memref<2x4x16x16xf32, #tpu.memory_space<vmem>>, vector<1x4x1x16xf32>,
    %131 = vector.extract_strided_slice %94 {offsets = [0, 181], sizes = [4, 16], strides = [1, 1]} : vector<4x324xf32> to vector<4x16xf32>
    %c0_121 = arith.constant 0 : index
    %c0_122 = arith.constant 0 : index
    %c9 = arith.constant 9 : index
    %c0_123 = arith.constant 0 : index
    %132 = vector.load %arg5[%c0_121, %c0_122, %c9, %c0_123] : memref<2x4x16x16xf32, #tpu.memory_space<vmem>>, vector<1x4x1x16xf32>
    %133 = vector.shape_cast %132 : vector<1x4x1x16xf32> to vector<4x16xf32>
    %134 = vector.shape_cast %131 : vector<4x16xf32> to vector<1x4x1x16xf32>
    tpu.vector_store %arg5[%c0_121, %c0_122, %c9, %c0_123], %134 {strides = array<i32>} : memref<2x4x16x16xf32, #tpu.memory_space<vmem>>, vector<1x4x1x16xf32>,
    %135 = vector.extract_strided_slice %94 {offsets = [0, 199], sizes = [4, 16], strides = [1, 1]} : vector<4x324xf32> to vector<4x16xf32>
    %c0_124 = arith.constant 0 : index
    %c0_125 = arith.constant 0 : index
    %c10 = arith.constant 10 : index
    %c0_126 = arith.constant 0 : index
    %136 = vector.load %arg5[%c0_124, %c0_125, %c10, %c0_126] : memref<2x4x16x16xf32, #tpu.memory_space<vmem>>, vector<1x4x1x16xf32>
    %137 = vector.shape_cast %136 : vector<1x4x1x16xf32> to vector<4x16xf32>
    %138 = vector.shape_cast %135 : vector<4x16xf32> to vector<1x4x1x16xf32>
    tpu.vector_store %arg5[%c0_124, %c0_125, %c10, %c0_126], %138 {strides = array<i32>} : memref<2x4x16x16xf32, #tpu.memory_space<vmem>>, vector<1x4x1x16xf32>,
    %139 = vector.extract_strided_slice %94 {offsets = [0, 217], sizes = [4, 16], strides = [1, 1]} : vector<4x324xf32> to vector<4x16xf32>
    %c0_127 = arith.constant 0 : index
    %c0_128 = arith.constant 0 : index
    %c11 = arith.constant 11 : index
    %c0_129 = arith.constant 0 : index
    %140 = vector.load %arg5[%c0_127, %c0_128, %c11, %c0_129] : memref<2x4x16x16xf32, #tpu.memory_space<vmem>>, vector<1x4x1x16xf32>
    %141 = vector.shape_cast %140 : vector<1x4x1x16xf32> to vector<4x16xf32>
    %142 = vector.shape_cast %139 : vector<4x16xf32> to vector<1x4x1x16xf32>
    tpu.vector_store %arg5[%c0_127, %c0_128, %c11, %c0_129], %142 {strides = array<i32>} : memref<2x4x16x16xf32, #tpu.memory_space<vmem>>, vector<1x4x1x16xf32>,
    %143 = vector.extract_strided_slice %94 {offsets = [0, 235], sizes = [4, 16], strides = [1, 1]} : vector<4x324xf32> to vector<4x16xf32>
    %c0_130 = arith.constant 0 : index
    %c0_131 = arith.constant 0 : index
    %c12_132 = arith.constant 12 : index
    %c0_133 = arith.constant 0 : index
    %144 = vector.load %arg5[%c0_130, %c0_131, %c12_132, %c0_133] : memref<2x4x16x16xf32, #tpu.memory_space<vmem>>, vector<1x4x1x16xf32>
    %145 = vector.shape_cast %144 : vector<1x4x1x16xf32> to vector<4x16xf32>
    %146 = vector.shape_cast %143 : vector<4x16xf32> to vector<1x4x1x16xf32>
    tpu.vector_store %arg5[%c0_130, %c0_131, %c12_132, %c0_133], %146 {strides = array<i32>} : memref<2x4x16x16xf32, #tpu.memory_space<vmem>>, vector<1x4x1x16xf32>,
    %147 = vector.extract_strided_slice %94 {offsets = [0, 253], sizes = [4, 16], strides = [1, 1]} : vector<4x324xf32> to vector<4x16xf32>
    %c0_134 = arith.constant 0 : index
    %c0_135 = arith.constant 0 : index
    %c13 = arith.constant 13 : index
    %c0_136 = arith.constant 0 : index
    %148 = vector.load %arg5[%c0_134, %c0_135, %c13, %c0_136] : memref<2x4x16x16xf32, #tpu.memory_space<vmem>>, vector<1x4x1x16xf32>
    %149 = vector.shape_cast %148 : vector<1x4x1x16xf32> to vector<4x16xf32>
    %150 = vector.shape_cast %147 : vector<4x16xf32> to vector<1x4x1x16xf32>
    tpu.vector_store %arg5[%c0_134, %c0_135, %c13, %c0_136], %150 {strides = array<i32>} : memref<2x4x16x16xf32, #tpu.memory_space<vmem>>, vector<1x4x1x16xf32>,
    %151 = vector.extract_strided_slice %94 {offsets = [0, 271], sizes = [4, 16], strides = [1, 1]} : vector<4x324xf32> to vector<4x16xf32>
    %c0_137 = arith.constant 0 : index
    %c0_138 = arith.constant 0 : index
    %c14 = arith.constant 14 : index
    %c0_139 = arith.constant 0 : index
    %152 = vector.load %arg5[%c0_137, %c0_138, %c14, %c0_139] : memref<2x4x16x16xf32, #tpu.memory_space<vmem>>, vector<1x4x1x16xf32>
    %153 = vector.shape_cast %152 : vector<1x4x1x16xf32> to vector<4x16xf32>
    %154 = vector.shape_cast %151 : vector<4x16xf32> to vector<1x4x1x16xf32>
    tpu.vector_store %arg5[%c0_137, %c0_138, %c14, %c0_139], %154 {strides = array<i32>} : memref<2x4x16x16xf32, #tpu.memory_space<vmem>>, vector<1x4x1x16xf32>,
    %155 = vector.extract_strided_slice %94 {offsets = [0, 289], sizes = [4, 16], strides = [1, 1]} : vector<4x324xf32> to vector<4x16xf32>
    %c0_140 = arith.constant 0 : index
    %c0_141 = arith.constant 0 : index
    %c15 = arith.constant 15 : index
    %c0_142 = arith.constant 0 : index
    %156 = vector.load %arg5[%c0_140, %c0_141, %c15, %c0_142] : memref<2x4x16x16xf32, #tpu.memory_space<vmem>>, vector<1x4x1x16xf32>
    %157 = vector.shape_cast %156 : vector<1x4x1x16xf32> to vector<4x16xf32>
    %158 = vector.shape_cast %155 : vector<4x16xf32> to vector<1x4x1x16xf32>
    tpu.vector_store %arg5[%c0_140, %c0_141, %c15, %c0_142], %158 {strides = array<i32>} : memref<2x4x16x16xf32, #tpu.memory_space<vmem>>, vector<1x4x1x16xf32>,
    %159 = vector.extract_strided_slice %88 {offsets = [0, 384], sizes = [4, 324], strides = [1, 1]} : vector<4x768xf32> to vector<4x324xf32>
    %c1_143 = arith.constant 1 : index
    %c0_144 = arith.constant 0 : index
    %c0_145 = arith.constant 0 : index
    %160 = vector.load %arg1[%c1_143, %c0_144, %c0_145] : memref<2x4x324xf32, #tpu.memory_space<vmem>>, vector<1x4x324xf32>
    %161 = vector.shape_cast %160 : vector<1x4x324xf32> to vector<4x324xf32>
    %162 = arith.addf %159, %161 : vector<4x324xf32>
    %cst_146 = arith.constant 0.000000e+00 : f32
    %163 = vector.broadcast %cst_146 : f32 to vector<4x324xf32>
    %164 = arith.maximumf %162, %163 : vector<4x324xf32>
    %165 = vector.extract_strided_slice %164 {offsets = [0, 19], sizes = [4, 16], strides = [1, 1]} : vector<4x324xf32> to vector<4x16xf32>
    %c1_147 = arith.constant 1 : index
    %c0_148 = arith.constant 0 : index
    %c0_149 = arith.constant 0 : index
    %c0_150 = arith.constant 0 : index
    %166 = vector.load %arg5[%c1_147, %c0_148, %c0_149, %c0_150] : memref<2x4x16x16xf32, #tpu.memory_space<vmem>>, vector<1x4x1x16xf32>
    %167 = vector.shape_cast %166 : vector<1x4x1x16xf32> to vector<4x16xf32>
    %168 = vector.shape_cast %165 : vector<4x16xf32> to vector<1x4x1x16xf32>
    tpu.vector_store %arg5[%c1_147, %c0_148, %c0_149, %c0_150], %168 {strides = array<i32>} : memref<2x4x16x16xf32, #tpu.memory_space<vmem>>, vector<1x4x1x16xf32>,
    %169 = vector.extract_strided_slice %164 {offsets = [0, 37], sizes = [4, 16], strides = [1, 1]} : vector<4x324xf32> to vector<4x16xf32>
    %c1_151 = arith.constant 1 : index
    %c0_152 = arith.constant 0 : index
    %c1_153 = arith.constant 1 : index
    %c0_154 = arith.constant 0 : index
    %170 = vector.load %arg5[%c1_151, %c0_152, %c1_153, %c0_154] : memref<2x4x16x16xf32, #tpu.memory_space<vmem>>, vector<1x4x1x16xf32>
    %171 = vector.shape_cast %170 : vector<1x4x1x16xf32> to vector<4x16xf32>
    %172 = vector.shape_cast %169 : vector<4x16xf32> to vector<1x4x1x16xf32>
    tpu.vector_store %arg5[%c1_151, %c0_152, %c1_153, %c0_154], %172 {strides = array<i32>} : memref<2x4x16x16xf32, #tpu.memory_space<vmem>>, vector<1x4x1x16xf32>,
    %173 = vector.extract_strided_slice %164 {offsets = [0, 55], sizes = [4, 16], strides = [1, 1]} : vector<4x324xf32> to vector<4x16xf32>
    %c1_155 = arith.constant 1 : index
    %c0_156 = arith.constant 0 : index
    %c2_157 = arith.constant 2 : index
    %c0_158 = arith.constant 0 : index
    %174 = vector.load %arg5[%c1_155, %c0_156, %c2_157, %c0_158] : memref<2x4x16x16xf32, #tpu.memory_space<vmem>>, vector<1x4x1x16xf32>
    %175 = vector.shape_cast %174 : vector<1x4x1x16xf32> to vector<4x16xf32>
    %176 = vector.shape_cast %173 : vector<4x16xf32> to vector<1x4x1x16xf32>
    tpu.vector_store %arg5[%c1_155, %c0_156, %c2_157, %c0_158], %176 {strides = array<i32>} : memref<2x4x16x16xf32, #tpu.memory_space<vmem>>, vector<1x4x1x16xf32>,
    %177 = vector.extract_strided_slice %164 {offsets = [0, 73], sizes = [4, 16], strides = [1, 1]} : vector<4x324xf32> to vector<4x16xf32>
    %c1_159 = arith.constant 1 : index
    %c0_160 = arith.constant 0 : index
    %c3_161 = arith.constant 3 : index
    %c0_162 = arith.constant 0 : index
    %178 = vector.load %arg5[%c1_159, %c0_160, %c3_161, %c0_162] : memref<2x4x16x16xf32, #tpu.memory_space<vmem>>, vector<1x4x1x16xf32>
    %179 = vector.shape_cast %178 : vector<1x4x1x16xf32> to vector<4x16xf32>
    %180 = vector.shape_cast %177 : vector<4x16xf32> to vector<1x4x1x16xf32>
    tpu.vector_store %arg5[%c1_159, %c0_160, %c3_161, %c0_162], %180 {strides = array<i32>} : memref<2x4x16x16xf32, #tpu.memory_space<vmem>>, vector<1x4x1x16xf32>,
    %181 = vector.extract_strided_slice %164 {offsets = [0, 91], sizes = [4, 16], strides = [1, 1]} : vector<4x324xf32> to vector<4x16xf32>
    %c1_163 = arith.constant 1 : index
    %c0_164 = arith.constant 0 : index
    %c4_165 = arith.constant 4 : index
    %c0_166 = arith.constant 0 : index
    %182 = vector.load %arg5[%c1_163, %c0_164, %c4_165, %c0_166] : memref<2x4x16x16xf32, #tpu.memory_space<vmem>>, vector<1x4x1x16xf32>
    %183 = vector.shape_cast %182 : vector<1x4x1x16xf32> to vector<4x16xf32>
    %184 = vector.shape_cast %181 : vector<4x16xf32> to vector<1x4x1x16xf32>
    tpu.vector_store %arg5[%c1_163, %c0_164, %c4_165, %c0_166], %184 {strides = array<i32>} : memref<2x4x16x16xf32, #tpu.memory_space<vmem>>, vector<1x4x1x16xf32>,
    %185 = vector.extract_strided_slice %164 {offsets = [0, 109], sizes = [4, 16], strides = [1, 1]} : vector<4x324xf32> to vector<4x16xf32>
    %c1_167 = arith.constant 1 : index
    %c0_168 = arith.constant 0 : index
    %c5_169 = arith.constant 5 : index
    %c0_170 = arith.constant 0 : index
    %186 = vector.load %arg5[%c1_167, %c0_168, %c5_169, %c0_170] : memref<2x4x16x16xf32, #tpu.memory_space<vmem>>, vector<1x4x1x16xf32>
    %187 = vector.shape_cast %186 : vector<1x4x1x16xf32> to vector<4x16xf32>
    %188 = vector.shape_cast %185 : vector<4x16xf32> to vector<1x4x1x16xf32>
    tpu.vector_store %arg5[%c1_167, %c0_168, %c5_169, %c0_170], %188 {strides = array<i32>} : memref<2x4x16x16xf32, #tpu.memory_space<vmem>>, vector<1x4x1x16xf32>,
    %189 = vector.extract_strided_slice %164 {offsets = [0, 127], sizes = [4, 16], strides = [1, 1]} : vector<4x324xf32> to vector<4x16xf32>
    %c1_171 = arith.constant 1 : index
    %c0_172 = arith.constant 0 : index
    %c6_173 = arith.constant 6 : index
    %c0_174 = arith.constant 0 : index
    %190 = vector.load %arg5[%c1_171, %c0_172, %c6_173, %c0_174] : memref<2x4x16x16xf32, #tpu.memory_space<vmem>>, vector<1x4x1x16xf32>
    %191 = vector.shape_cast %190 : vector<1x4x1x16xf32> to vector<4x16xf32>
    %192 = vector.shape_cast %189 : vector<4x16xf32> to vector<1x4x1x16xf32>
    tpu.vector_store %arg5[%c1_171, %c0_172, %c6_173, %c0_174], %192 {strides = array<i32>} : memref<2x4x16x16xf32, #tpu.memory_space<vmem>>, vector<1x4x1x16xf32>,
    %193 = vector.extract_strided_slice %164 {offsets = [0, 145], sizes = [4, 16], strides = [1, 1]} : vector<4x324xf32> to vector<4x16xf32>
    %c1_175 = arith.constant 1 : index
    %c0_176 = arith.constant 0 : index
    %c7_177 = arith.constant 7 : index
    %c0_178 = arith.constant 0 : index
    %194 = vector.load %arg5[%c1_175, %c0_176, %c7_177, %c0_178] : memref<2x4x16x16xf32, #tpu.memory_space<vmem>>, vector<1x4x1x16xf32>
    %195 = vector.shape_cast %194 : vector<1x4x1x16xf32> to vector<4x16xf32>
    %196 = vector.shape_cast %193 : vector<4x16xf32> to vector<1x4x1x16xf32>
    tpu.vector_store %arg5[%c1_175, %c0_176, %c7_177, %c0_178], %196 {strides = array<i32>} : memref<2x4x16x16xf32, #tpu.memory_space<vmem>>, vector<1x4x1x16xf32>,
    %197 = vector.extract_strided_slice %164 {offsets = [0, 163], sizes = [4, 16], strides = [1, 1]} : vector<4x324xf32> to vector<4x16xf32>
    %c1_179 = arith.constant 1 : index
    %c0_180 = arith.constant 0 : index
    %c8_181 = arith.constant 8 : index
    %c0_182 = arith.constant 0 : index
    %198 = vector.load %arg5[%c1_179, %c0_180, %c8_181, %c0_182] : memref<2x4x16x16xf32, #tpu.memory_space<vmem>>, vector<1x4x1x16xf32>
    %199 = vector.shape_cast %198 : vector<1x4x1x16xf32> to vector<4x16xf32>
    %200 = vector.shape_cast %197 : vector<4x16xf32> to vector<1x4x1x16xf32>
    tpu.vector_store %arg5[%c1_179, %c0_180, %c8_181, %c0_182], %200 {strides = array<i32>} : memref<2x4x16x16xf32, #tpu.memory_space<vmem>>, vector<1x4x1x16xf32>,
    %201 = vector.extract_strided_slice %164 {offsets = [0, 181], sizes = [4, 16], strides = [1, 1]} : vector<4x324xf32> to vector<4x16xf32>
    %c1_183 = arith.constant 1 : index
    %c0_184 = arith.constant 0 : index
    %c9_185 = arith.constant 9 : index
    %c0_186 = arith.constant 0 : index
    %202 = vector.load %arg5[%c1_183, %c0_184, %c9_185, %c0_186] : memref<2x4x16x16xf32, #tpu.memory_space<vmem>>, vector<1x4x1x16xf32>
    %203 = vector.shape_cast %202 : vector<1x4x1x16xf32> to vector<4x16xf32>
    %204 = vector.shape_cast %201 : vector<4x16xf32> to vector<1x4x1x16xf32>
    tpu.vector_store %arg5[%c1_183, %c0_184, %c9_185, %c0_186], %204 {strides = array<i32>} : memref<2x4x16x16xf32, #tpu.memory_space<vmem>>, vector<1x4x1x16xf32>,
    %205 = vector.extract_strided_slice %164 {offsets = [0, 199], sizes = [4, 16], strides = [1, 1]} : vector<4x324xf32> to vector<4x16xf32>
    %c1_187 = arith.constant 1 : index
    %c0_188 = arith.constant 0 : index
    %c10_189 = arith.constant 10 : index
    %c0_190 = arith.constant 0 : index
    %206 = vector.load %arg5[%c1_187, %c0_188, %c10_189, %c0_190] : memref<2x4x16x16xf32, #tpu.memory_space<vmem>>, vector<1x4x1x16xf32>
    %207 = vector.shape_cast %206 : vector<1x4x1x16xf32> to vector<4x16xf32>
    %208 = vector.shape_cast %205 : vector<4x16xf32> to vector<1x4x1x16xf32>
    tpu.vector_store %arg5[%c1_187, %c0_188, %c10_189, %c0_190], %208 {strides = array<i32>} : memref<2x4x16x16xf32, #tpu.memory_space<vmem>>, vector<1x4x1x16xf32>,
    %209 = vector.extract_strided_slice %164 {offsets = [0, 217], sizes = [4, 16], strides = [1, 1]} : vector<4x324xf32> to vector<4x16xf32>
    %c1_191 = arith.constant 1 : index
    %c0_192 = arith.constant 0 : index
    %c11_193 = arith.constant 11 : index
    %c0_194 = arith.constant 0 : index
    %210 = vector.load %arg5[%c1_191, %c0_192, %c11_193, %c0_194] : memref<2x4x16x16xf32, #tpu.memory_space<vmem>>, vector<1x4x1x16xf32>
    %211 = vector.shape_cast %210 : vector<1x4x1x16xf32> to vector<4x16xf32>
    %212 = vector.shape_cast %209 : vector<4x16xf32> to vector<1x4x1x16xf32>
    tpu.vector_store %arg5[%c1_191, %c0_192, %c11_193, %c0_194], %212 {strides = array<i32>} : memref<2x4x16x16xf32, #tpu.memory_space<vmem>>, vector<1x4x1x16xf32>,
    %213 = vector.extract_strided_slice %164 {offsets = [0, 235], sizes = [4, 16], strides = [1, 1]} : vector<4x324xf32> to vector<4x16xf32>
    %c1_195 = arith.constant 1 : index
    %c0_196 = arith.constant 0 : index
    %c12_197 = arith.constant 12 : index
    %c0_198 = arith.constant 0 : index
    %214 = vector.load %arg5[%c1_195, %c0_196, %c12_197, %c0_198] : memref<2x4x16x16xf32, #tpu.memory_space<vmem>>, vector<1x4x1x16xf32>
    %215 = vector.shape_cast %214 : vector<1x4x1x16xf32> to vector<4x16xf32>
    %216 = vector.shape_cast %213 : vector<4x16xf32> to vector<1x4x1x16xf32>
    tpu.vector_store %arg5[%c1_195, %c0_196, %c12_197, %c0_198], %216 {strides = array<i32>} : memref<2x4x16x16xf32, #tpu.memory_space<vmem>>, vector<1x4x1x16xf32>,
    %217 = vector.extract_strided_slice %164 {offsets = [0, 253], sizes = [4, 16], strides = [1, 1]} : vector<4x324xf32> to vector<4x16xf32>
    %c1_199 = arith.constant 1 : index
    %c0_200 = arith.constant 0 : index
    %c13_201 = arith.constant 13 : index
    %c0_202 = arith.constant 0 : index
    %218 = vector.load %arg5[%c1_199, %c0_200, %c13_201, %c0_202] : memref<2x4x16x16xf32, #tpu.memory_space<vmem>>, vector<1x4x1x16xf32>
    %219 = vector.shape_cast %218 : vector<1x4x1x16xf32> to vector<4x16xf32>
    %220 = vector.shape_cast %217 : vector<4x16xf32> to vector<1x4x1x16xf32>
    tpu.vector_store %arg5[%c1_199, %c0_200, %c13_201, %c0_202], %220 {strides = array<i32>} : memref<2x4x16x16xf32, #tpu.memory_space<vmem>>, vector<1x4x1x16xf32>,
    %221 = vector.extract_strided_slice %164 {offsets = [0, 271], sizes = [4, 16], strides = [1, 1]} : vector<4x324xf32> to vector<4x16xf32>
    %c1_203 = arith.constant 1 : index
    %c0_204 = arith.constant 0 : index
    %c14_205 = arith.constant 14 : index
    %c0_206 = arith.constant 0 : index
    %222 = vector.load %arg5[%c1_203, %c0_204, %c14_205, %c0_206] : memref<2x4x16x16xf32, #tpu.memory_space<vmem>>, vector<1x4x1x16xf32>
    %223 = vector.shape_cast %222 : vector<1x4x1x16xf32> to vector<4x16xf32>
    %224 = vector.shape_cast %221 : vector<4x16xf32> to vector<1x4x1x16xf32>
    tpu.vector_store %arg5[%c1_203, %c0_204, %c14_205, %c0_206], %224 {strides = array<i32>} : memref<2x4x16x16xf32, #tpu.memory_space<vmem>>, vector<1x4x1x16xf32>,
    %225 = vector.extract_strided_slice %164 {offsets = [0, 289], sizes = [4, 16], strides = [1, 1]} : vector<4x324xf32> to vector<4x16xf32>
    %c1_207 = arith.constant 1 : index
    %c0_208 = arith.constant 0 : index
    %c15_209 = arith.constant 15 : index
    %c0_210 = arith.constant 0 : index
    %226 = vector.load %arg5[%c1_207, %c0_208, %c15_209, %c0_210] : memref<2x4x16x16xf32, #tpu.memory_space<vmem>>, vector<1x4x1x16xf32>
    %227 = vector.shape_cast %226 : vector<1x4x1x16xf32> to vector<4x16xf32>
    %228 = vector.shape_cast %225 : vector<4x16xf32> to vector<1x4x1x16xf32>
    tpu.vector_store %arg5[%c1_207, %c0_208, %c15_209, %c0_210], %228 {strides = array<i32>} : memref<2x4x16x16xf32, #tpu.memory_space<vmem>>, vector<1x4x1x16xf32>,
    return
  }
  func.func @transform_0(%arg0: i32) -> (i32, i32, i32) {
    %c0_i32 = arith.constant 0 : i32
    %c0_i32_0 = arith.constant 0 : i32
    %c0_i32_1 = arith.constant 0 : i32
    return %arg0, %c0_i32, %c0_i32_0 : i32, i32, i32
  }
  func.func @transform_1(%arg0: i32) -> (i32, i32) {
    %c0_i32 = arith.constant 0 : i32
    %c0_i32_0 = arith.constant 0 : i32
    %c0_i32_1 = arith.constant 0 : i32
    return %c0_i32, %c0_i32_0 : i32, i32
  }
  func.func @transform_2(%arg0: i32) -> (i32, i32) {
    %c0_i32 = arith.constant 0 : i32
    %c0_i32_0 = arith.constant 0 : i32
    %c0_i32_1 = arith.constant 0 : i32
    return %c0_i32, %c0_i32_0 : i32, i32
  }
  func.func @transform_3(%arg0: i32) -> (i32, i32) {
    %c0_i32 = arith.constant 0 : i32
    %c0_i32_0 = arith.constant 0 : i32
    %c0_i32_1 = arith.constant 0 : i32
    return %c0_i32, %c0_i32_0 : i32, i32
  }
  func.func @transform_4(%arg0: i32) -> (i32, i32, i32, i32) {
    %c0_i32 = arith.constant 0 : i32
    %c0_i32_0 = arith.constant 0 : i32
    %c0_i32_1 = arith.constant 0 : i32
    %c0_i32_2 = arith.constant 0 : i32
    return %arg0, %c0_i32, %c0_i32_0, %c0_i32_1 : i32, i32, i32, i32
  }
}

</mosaic_0001>

<bundles_post_ra>
// kernel: basic_block.1
= control target key start
LH: loop header
LB: loop body
LE: loop exit
PB: predicated region body
PF: predicated region fallthrough
CT: control target
= control target key end

     0   :  { %v34_v2 = vlaneseq  ;;  %v5312_v4 = vmov 1983009808   ;;  %vm47_vm0 = vcmask 1041408   ;;  %vm48_vm1 = vcmask 1043458   ;;  %s6538_s0 = inlined_call_operand.vmem [shape: f32[2,4,324], index: 0, kind: input, shape index: {}]   ;;  %s6539_s1 = inlined_call_operand.vmem [shape: bf16[4,36], index: 1, kind: input, shape index: {}]   ;;  %s6540_s2 = inlined_call_operand.vmem [shape: bf16[4,36], index: 2, kind: input, shape index: {}]   ;;  %s6541_s3 = inlined_call_operand.vmem [shape: f32[1,768], index: 3, kind: input, shape index: {}]   ;;  %s6542_s4 = inlined_call_operand.hbm [shape: f32[2,4,16,16], index: 4, kind: output, shape index: {}]  }
   0x1   :  { %v19_v0 = vld [vmem:[%s6538_s0] sm:$0xff]  ;;  %v20_v1 = vld [vmem:[%s6538_s0 + $0x8] sm:$0xf]  ;;  %v32_v5 = vunpack.c.l.s4 %v5312_v4  ;;  %v5003_v6 = vld [vmem:[%s6538_s0 + $0xc] sm:$0xff] }
   0x2   :  { %v22_v3 = vcombine.high %v19_v0, %v19_v0  ;;  %v5380_v7 = vshrl.u32 %v34_v2, 7  ;;  %v5004_v8 = vld [vmem:[%s6538_s0 + $0x14] sm:$0xf]  ;;  %v57_v9 = vcombine.high %v5003_v6, %v5003_v6  ;;  %v26_v10 = vpack.c.bf16 %v20_v1, %v20_v1 }
   0x3   :  { %v33_v12 = vunpack.c.0.s8 %v32_v5  ;;  %v61_v13 = vpack.c.bf16 %v5004_v8, %v5004_v8 }
   0x4   :  { %v5002_v11 = vpack.c.bf16 %v22_v3, %v19_v0  ;;  %v5005_v14 = vpack.c.bf16 %v57_v9, %v5003_v6 }
   0x5   :  { %9 = vsyncpa [#allocation4], 0  ;;  %v5386_v15 = vsub.s32 %v33_v12, %v5380_v7  ;;  %vm50_vm3 = vcmask 553988   ;;  %v5313_v22 = vmov 0   ;;  %v5399_v26 = vld [vmem:[%s6539_s1] sm:$0x3] }
   0x6   :  { %vm49_vm2 = vmor %vm48_vm1, %vm47_vm0  ;;  %208 = vmatprep.mubr.bf16.mxu0 %v5313_v22  ;;  %249 = vmatprep.mubr.bf16.mxu1 %v5313_v22  ;;  %s5314_s25 = smov 18   ;;  %s5315_s26 = smov 124   ;;  %v5426_v38 = vld.sshfl [vmem:[%s6539_s1] sm:$0x3 pattern:$0x76325410] }
   0x7   :  { %v37_v16 = vrot.slane %v5002_v11, %v5386_v15  ;;  %v44_v17 = vrot.slane %v26_v10, %v5386_v15  ;;  %v72_v18 = vrot.slane %v5005_v14, %v5386_v15  ;;  %vm51_vm4 = vmor %vm50_vm3, %vm49_vm2  ;;  %v79_v19 = vrot.slane %v61_v13, %v5386_v15  ;;  %s5316_s27 = smov 19   ;;  %s5317_s28 = smov 17  }
   0x8   :  { %v95_v30 = vrot.slane %v5399_v26, %v5386_v15  ;;  %s5318_s5 = smov 120   ;;  %s5319_s1 = smov 1   ;;  %vm147_vm5 = vcmask 146432   ;;  %vm154_vm6 = vcmask 31744   ;;  %vm313_vm7 = vcmask 154624  }
   0x9   :  { %v45_v20 = vcombine.low %v37_v16, %v44_v17  ;;  %v80_v21 = vcombine.low %v72_v18, %v79_v19  ;;  %s5320_s6 = smov 116   ;;  %s5321_s7 = smov 112   ;;  %vm526_vm8 = vcmask 138240   ;;  %vm745_vm9 = vcmask 7168  }
   0xa   :  { %s5322_s8 = smov 127   ;;  %s5323_s9 = smov 108   ;;  %vm1154_vm10 = vcmask 1039360   ;;  %vm1373_vm11 = vcmask 908288   ;;  %vm1592_vm12 = vcmask 900096   ;;  %vm1811_vm13 = vcmask 891904  }
   0xb   :  { %52 = vst.msk [vmem:[#allocation2 + $0x2] sm:$0x3f] %vm51_vm4, %v45_v20  ;;  %82 = vst.msk [vmem:[#allocation2 + $0x8] sm:$0x3f] %vm51_vm4, %v80_v21  ;;  %s5324_s10 = smov 111   ;;  %s5325_s11 = smov 104  }
   0xc   :  { %s5326_s12 = smov 110   ;;  %s5327_s13 = smov 100  }
   0xd   :  { %s5328_s14 = smov 109   ;;  %s5329_s15 = smov 96  }
  0x12   :  { %v86_v23 = vld [vmem:[#allocation2] sm:$0xff]  ;;  %v87_v27 = vld [vmem:[#allocation2 + $0x8] sm:$0x3f] }
  0x13   :  { %v107_v24 = vrot.slane %v86_v23, %v5386_v15  ;;  %v100_v25 = vcombine.high %v86_v23, %v86_v23  ;;  %v124_v31 = vrot.slane %v87_v27, %v5386_v15  ;;  %v117_v32 = vcombine.high %v87_v27, %v87_v27  ;;  %v466_v36 = vld [vmem:[#allocation2 + $0x8] sm:$0x3f] }
  0x14   :  { %v503_v37 = vrot.slane %v466_v36, %v5386_v15  ;;  %v496_v39 = vcombine.high %v466_v36, %v466_v36  ;;  %v685_v42 = vld [vmem:[#allocation2 + $0x8] sm:$0x3f] }
  0x15   :  { %133 = vrot.lane.b32.xlu0 %v107_v24, %s5314_s25  ;;  %v114_v28 = vrot.slane %v100_v25, %v5386_v15  ;;  %v115_v29 = vcombine.high %v107_v24, %v107_v24  ;;  %v132_v33 = vcombine.high %v124_v31, %v124_v31  ;;  %v131_v34 = vrot.slane %v117_v32, %v5386_v15  ;;  %v1093_v47 = vld [vmem:[#allocation2 + $0x2] sm:$0xff]  ;;  %v1094_v51 = vld [vmem:[#allocation2 + $0xa] sm:$0x3f] }
  0x16   :  { %v511_v40 = vcombine.high %v503_v37, %v503_v37  ;;  %v510_v41 = vrot.slane %v496_v39, %v5386_v15  ;;  %v722_v43 = vrot.slane %v685_v42, %v5386_v15  ;;  %v715_v44 = vcombine.high %v685_v42, %v685_v42  ;;  %v1313_v58 = vld [vmem:[#allocation2 + $0xa] sm:$0x3f] }
  0x17   :  { %137 = vrot.lane.b32.xlu1 %v114_v28, %s5314_s25  ;;  %v116_v35 = vcombine.high %v114_v28, %v114_v28  ;;  %v5448_v48 = vrot.slane %v1093_v47, %v5386_v15  ;;  %v1107_v49 = vcombine.high %v1093_v47, %v1093_v47  ;;  %v1131_v53 = vrot.slane %v1094_v51, %v5386_v15  ;;  %v1532_v63 = vld [vmem:[#allocation2 + $0xa] sm:$0x3f] }
  0x18   :  { %v730_v45 = vcombine.high %v722_v43, %v722_v43  ;;  %v729_v46 = vrot.slane %v715_v44, %v5386_v15  ;;  %v1124_v54 = vcombine.high %v1094_v51, %v1094_v51  ;;  %v1350_v59 = vrot.slane %v1313_v58, %v5386_v15  ;;  %v1751_v4 = vld [vmem:[#allocation2 + $0xa] sm:$0x3f] }
  0x19   :  { %135 = vrot.lane.b32.xlu0 %v115_v29, %s5314_s25  ;;  %v5455_v50 = vcombine.high %v5448_v48, %v5448_v48  ;;  %v5460_v52 = vrot.slane %v1107_v49, %v5386_v15  ;;  %v1139_v55 = vcombine.high %v1131_v53, %v1131_v53  ;;  %v1343_v60 = vcombine.high %v1313_v58, %v1313_v58 }
  0x1a   :  { %v1138_v56 = vrot.slane %v1124_v54, %v5386_v15  ;;  %v1358_v61 = vcombine.high %v1350_v59, %v1350_v59  ;;  %v1569_v0 = vrot.slane %v1532_v63, %v5386_v15  ;;  %v1562_v1 = vcombine.high %v1532_v63, %v1532_v63 }
  0x1b   :  { %96 = vrot.lane.b32.xlu1 %v95_v30, %s5315_s26  ;;  %v5474_v57 = vcombine.high %v5460_v52, %v5460_v52  ;;  %v1357_v62 = vrot.slane %v1343_v60, %v5386_v15  ;;  %v1788_v8 = vrot.slane %v1751_v4, %v5386_v15  ;;  %v1781_v10 = vcombine.high %v1751_v4, %v1751_v4 }
  0x1c   :  { %v1577_v2 = vcombine.high %v1569_v0, %v1569_v0  ;;  %v1576_v3 = vrot.slane %v1562_v1, %v5386_v15 }
  0x1d   :  { %141 = vrot.lane.b32.xlu0 %v124_v31, %s5314_s25  ;;  %v1796_v16 = vcombine.high %v1788_v8, %v1788_v8  ;;  %v1795_v18 = vrot.slane %v1781_v10, %v5386_v15 }
  0x1f   :  { %143 = vrot.lane.b32.xlu1 %v132_v33, %s5314_s25 }
  0x21   :  { %145 = vrot.lane.b32.xlu0 %v131_v34, %s5314_s25 }
  0x23   :  { %299 = vrot.lane.b32.xlu1 %v107_v24, %s5316_s27 }
  0x25   :  { %301 = vrot.lane.b32.xlu0 %v115_v29, %s5316_s27 }
  0x27   :  { %303 = vrot.lane.b32.xlu1 %v114_v28, %s5316_s27 }
  0x29   :  { %307 = vrot.lane.b32.xlu0 %v124_v31, %s5316_s27 }
  0x2b   :  { %309 = vrot.lane.b32.xlu1 %v132_v33, %s5316_s27 }
  0x2d   :  { %311 = vrot.lane.b32.xlu0 %v131_v34, %s5316_s27 }
  0x2f   :  { %139 = vrot.lane.b32.xlu1 %v116_v35, %s5314_s25 }
  0x31   :  { %512 = vrot.lane.b32.xlu0 %v107_v24, %s5317_s28 }
  0x33   :  { %514 = vrot.lane.b32.xlu1 %v115_v29, %s5317_s28 }
  0x35   :  { %516 = vrot.lane.b32.xlu0 %v114_v28, %s5317_s28 }
  0x37   :  { %475 = vrot.lane.b32.xlu1 %v5426_v38, %s5318_s5 }
  0x39   :  { %520 = vrot.lane.b32.xlu0 %v503_v37, %s5317_s28 }
  0x3b   :  { %522 = vrot.lane.b32.xlu1 %v511_v40, %s5317_s28 }
  0x3d   :  { %524 = vrot.lane.b32.xlu0 %v510_v41, %s5317_s28 }
  0x3f   :  { %305 = vrot.lane.b32.xlu1 %v116_v35, %s5316_s27 }
  0x41   :  { %731 = vrot.lane.b32.xlu0 %v107_v24, %s5319_s1 }
  0x43   :  { %733 = vrot.lane.b32.xlu1 %v115_v29, %s5319_s1 }
  0x45   :  { %735 = vrot.lane.b32.xlu0 %v114_v28, %s5319_s1 }
  0x47   :  { %694 = vrot.lane.b32.xlu1 %v5426_v38, %s5320_s6 }
  0x49   :  { %518 = vrot.lane.b32.xlu0 %v116_v35, %s5317_s28 }
  0x4b   :  { %739 = vrot.lane.b32.xlu1 %v722_v43, %s5319_s1 }
  0x4d   :  { %741 = vrot.lane.b32.xlu0 %v730_v45, %s5319_s1 }
  0x4f   :  { %743 = vrot.lane.b32.xlu1 %v729_v46, %s5319_s1 }
  0x51   :  { %737 = vrot.lane.b32.xlu0 %v116_v35, %s5319_s1 }
  0x53   :  { %913 = vrot.lane.b32.xlu1 %v5426_v38, %s5321_s7 }
  0x55   :  { %1140 = vrot.lane.b32.xlu0 %v5448_v48, %s5322_s8 }
  0x57   :  { %1142 = vrot.lane.b32.xlu1 %v5455_v50, %s5322_s8 }
  0x59   :  { %1144 = vrot.lane.b32.xlu0 %v5460_v52, %s5322_s8 }
  0x5b   :  { %1103 = vrot.lane.b32.xlu1 %v5426_v38, %s5323_s9 }
  0x5d   :  { %1148 = vrot.lane.b32.xlu0 %v1131_v53, %s5322_s8 }
  0x5f   :  { %1150 = vrot.lane.b32.xlu1 %v1139_v55, %s5322_s8 }
  0x61   :  { %1152 = vrot.lane.b32.xlu0 %v1138_v56, %s5322_s8 }
  0x63   :  { %1146 = vrot.lane.b32.xlu1 %v5474_v57, %s5322_s8 }
  0x65   :  { %1359 = vrot.lane.b32.xlu0 %v5448_v48, %s5324_s10 }
  0x67   :  { %1361 = vrot.lane.b32.xlu1 %v5455_v50, %s5324_s10 }
  0x69   :  { %1363 = vrot.lane.b32.xlu0 %v5460_v52, %s5324_s10 }
  0x6b   :  { %1322 = vrot.lane.b32.xlu1 %v5426_v38, %s5325_s11 }
  0x6d   :  { %1365 = vrot.lane.b32.xlu0 %v5474_v57, %s5324_s10 }
  0x6f   :  { %1367 = vrot.lane.b32.xlu1 %v1350_v59, %s5324_s10 }
  0x71   :  { %1369 = vrot.lane.b32.xlu0 %v1358_v61, %s5324_s10 }
  0x73   :  { %1371 = vrot.lane.b32.xlu1 %v1357_v62, %s5324_s10 }
  0x75   :  { %1578 = vrot.lane.b32.xlu0 %v5448_v48, %s5326_s12 }
  0x77   :  { %1580 = vrot.lane.b32.xlu1 %v5455_v50, %s5326_s12 }
  0x79   :  { %1582 = vrot.lane.b32.xlu0 %v5460_v52, %s5326_s12 }
  0x7b   :  { %1584 = vrot.lane.b32.xlu1 %v5474_v57, %s5326_s12 }
  0x7d   :  { %1586 = vrot.lane.b32.xlu0 %v1569_v0, %s5326_s12 }
  0x7f   :  { %1541 = vrot.lane.b32.xlu1 %v5426_v38, %s5327_s13 }
  0x81   :  { %1588 = vrot.lane.b32.xlu0 %v1577_v2, %s5326_s12 }
  0x83   :  { %1590 = vrot.lane.b32.xlu1 %v1576_v3, %s5326_s12 }
  0x85   :  { %1797 = vrot.lane.b32.xlu0 %v5448_v48, %s5328_s14 }
  0x87   :  { %v134_v5 = vpop.permute.xlu0 %133  ;;  %1799 = vrot.lane.b32.xlu1 %v5455_v50, %s5328_s14 }
  0x89   :  { %v138_v6 = vpop.permute.xlu1 %137  ;;  %1801 = vrot.lane.b32.xlu0 %v5460_v52, %s5328_s14 }
  0x8b   :  { %v136_v9 = vpop.permute.xlu0 %135  ;;  %1803 = vrot.lane.b32.xlu1 %v5474_v57, %s5328_s14 }
  0x8c   :  { %v149_v11 = vsel %vm147_vm5, %v136_v9, %v138_v6  ;;  %v148_v12 = vsel %vm147_vm5, %v134_v5, %v136_v9 }
  0x8d   :  { %5006 = vmatprep.subr.msk.bf16.mxu0 %vm47_vm0, %v149_v11  ;;  %v97_v13 = vpop.permute.xlu1 %96  ;;  %v159_v14 = vsel %vm47_vm0, %v148_v12, 0  ;;  %1805 = vrot.lane.b32.xlu0 %v1788_v8, %s5328_s14 }
  0x8e   :  { %177 = vmatpush1.bf16.msra.mxu0 %v159_v14 }
  0x8f   :  { %v142_v17 = vpop.permute.xlu0 %141  ;;  %1760 = vrot.lane.b32.xlu1 %v5426_v38, %s5329_s15 }
  0x91   :  { %5007 = vmatmul.mubr.msk.bf16.vlgmr.msra.gmra.mrb[0].mxu0 %vm154_vm6, %v97_v13  ;;  %v144_v19 = vpop.permute.xlu1 %143  ;;  %1807 = vrot.lane.b32.xlu0 %v1796_v16, %s5328_s14 }
  0x92   :  { %v152_v20 = vsel %vm147_vm5, %v142_v17, %v144_v19  ;;  %290 = vmatprep.mubr.bf16.mxu0 %v5313_v22 }
  0x93   :  { %v146_v21 = vpop.permute.xlu0 %145  ;;  %1809 = vrot.lane.b32.xlu1 %v1795_v18, %s5328_s14  ;;  %v171_v25 = vsel %vm47_vm0, %v152_v20, 0  ;;  %v5033_v20 = vld.sshfl [vmem:[#allocation2 + $0xa] sm:$0x33 pattern:$0x76325410] }
  0x94   :  { %v153_v23 = vsel %vm147_vm5, %v144_v19, %v146_v21 }
  0x95   :  { %5010 = vmatprep.subr.msk.bf16.mxu0 %vm47_vm0, %v153_v23  ;;  %v300_v24 = vpop.permute.xlu1 %299 }
  0x96   :  { %259 = vmatpush1.bf16.msra.mxu0 %v171_v25  ;;  %v946_v25 = vsel %vm47_vm0, %v5448_v48, 0 }
  0x97   :  { %v302_v27 = vpop.permute.xlu0 %301 }
  0x98   :  { %v314_v28 = vsel %vm313_vm7, %v300_v24, %v302_v27 }
  0x99   :  { %5011 = vmatmul.mubr.msk.bf16.vlgmr.msra.gmra.mrb[4].mxu0 %vm154_vm6, %v97_v13  ;;  %v304_v29 = vpop.permute.xlu1 %303  ;;  %v324_v32 = vsel %vm47_vm0, %v314_v28, 0 }
  0x9a   :  { %v315_v30 = vsel %vm313_vm7, %v302_v27, %v304_v29  ;;  %373 = vmatprep.mubr.bf16.mxu0 %v5313_v22  ;;  %v941_v27 = vcombine.high %v5033_v20, %v5033_v20 }
  0x9b   :  { %v308_v31 = vpop.permute.xlu0 %307  ;;  %5012 = vmatprep.subr.msk.bf16.mxu0 %vm47_vm0, %v315_v30 }
  0x9c   :  { %342 = vmatpush1.bf16.msra.mxu0 %v324_v32 }
  0x9d   :  { %v310_v33 = vpop.permute.xlu1 %309 }
  0x9e   :  { %v318_v34 = vsel %vm313_vm7, %v308_v31, %v310_v33 }
  0x9f   :  { %v312_v35 = vpop.permute.xlu0 %311  ;;  %v336_v36 = vsel %vm47_vm0, %v318_v34, 0 }
  0xa0   :  { %v319_v37 = vsel %vm313_vm7, %v310_v33, %v312_v35 }
  0xa1   :  { %5013 = vmatmul.mubr.msk.bf16.vlgmr.msra.gmra.mrb[0].mxu0 %vm154_vm6, %v5399_v26  ;;  %5016 = vmatprep.subr.msk.bf16.mxu0 %vm47_vm0, %v319_v37  ;;  %v140_v38 = vpop.permute.xlu1 %139 }
  0xa2   :  { %424 = vmatpush1.bf16.msra.mxu0 %v336_v36  ;;  %v151_v39 = vsel %vm147_vm5, %v140_v38, %v142_v17  ;;  %v150_v40 = vsel %vm147_vm5, %v138_v6, %v140_v38  ;;  %455 = vmatprep.mubr.bf16.mxu0 %v5313_v22 }
  0xa3   :  { %v513_v41 = vpop.permute.xlu0 %512  ;;  %5008 = vmatprep.subr.msk.bf16.mxu1 %vm47_vm0, %v151_v39  ;;  %v165_v42 = vsel %vm47_vm0, %v150_v40, 0 }
  0xa4   :  { %218 = vmatpush1.bf16.msra.mxu1 %v165_v42 }
  0xa5   :  { %v515_v43 = vpop.permute.xlu1 %514 }
  0xa6   :  { %v527_v44 = vsel %vm526_vm8, %v513_v41, %v515_v43 }
  0xa7   :  { %v517_v45 = vpop.permute.xlu0 %516  ;;  %5009 = vmatmul.mubr.msk.bf16.vlgmr.msra.gmra.mrb[0].mxu1 %vm154_vm6, %v97_v13  ;;  %v537_v46 = vsel %vm47_vm0, %v527_v44, 0 }
  0xa8   :  { %v528_v47 = vsel %vm526_vm8, %v515_v43, %v517_v45  ;;  %414 = vmatprep.mubr.bf16.mxu1 %v5313_v22 }
  0xa9   :  { %5017 = vmatmul.mubr.msk.bf16.vlgmr.msra.gmra.mrb[4].mxu0 %vm154_vm6, %v5399_v26  ;;  %5019 = vmatprep.subr.msk.bf16.mxu0 %vm47_vm0, %v528_v47  ;;  %v476_v49 = vpop.permute.xlu1 %475 }
  0xaa   :  { %555 = vmatpush1.bf16.msra.mxu0 %v537_v46  ;;  %586 = vmatprep.mubr.bf16.mxu0 %v5313_v22 }
  0xab   :  { %v521_v51 = vpop.permute.xlu0 %520 }
  0xad   :  { %v523_v53 = vpop.permute.xlu1 %522 }
  0xae   :  { %v531_v54 = vsel %vm526_vm8, %v521_v51, %v523_v53 }
  0xaf   :  { %v525_v55 = vpop.permute.xlu0 %524  ;;  %v549_v56 = vsel %vm47_vm0, %v531_v54, 0 }
  0xb0   :  { %v532_v58 = vsel %vm526_vm8, %v523_v53, %v525_v55 }
  0xb1   :  { %5020 = vmatmul.mubr.msk.bf16.vlgmr.msra.gmra.mrb[0].mxu0 %vm154_vm6, %v476_v49  ;;  %5023 = vmatprep.subr.msk.bf16.mxu0 %vm47_vm0, %v532_v58  ;;  %v306_v59 = vpop.permute.xlu1 %305 }
  0xb2   :  { %v316_v60 = vsel %vm313_vm7, %v304_v29, %v306_v59  ;;  %637 = vmatpush1.bf16.msra.mxu0 %v549_v56  ;;  %v317_v61 = vsel %vm313_vm7, %v306_v59, %v308_v31  ;;  %668 = vmatprep.mubr.bf16.mxu0 %v5313_v22  ;;  %v958_v31 = vsel %vm47_vm0, %v5033_v20, 0 }
  0xb3   :  { %v732_v62 = vpop.permute.xlu0 %731  ;;  %5014 = vmatprep.subr.msk.bf16.mxu1 %vm47_vm0, %v317_v61  ;;  %v330_v63 = vsel %vm47_vm0, %v316_v60, 0 }
  0xb4   :  { %383 = vmatpush1.bf16.msra.mxu1 %v330_v63 }
  0xb5   :  { %v734_v0 = vpop.permute.xlu1 %733 }
  0xb6   :  { %v746_v1 = vsel %vm745_vm9, %v732_v62, %v734_v0 }
  0xb7   :  { %v736_v2 = vpop.permute.xlu0 %735  ;;  %5015 = vmatmul.mubr.msk.bf16.vlgmr.msra.gmra.mrb[0].mxu1 %vm154_vm6, %v5399_v26  ;;  %v756_v3 = vsel %vm47_vm0, %v746_v1, 0 }
  0xb8   :  { %v747_v4 = vsel %vm745_vm9, %v734_v0, %v736_v2  ;;  %627 = vmatprep.mubr.bf16.mxu1 %v5313_v22 }
  0xb9   :  { %5024 = vmatmul.mubr.msk.bf16.vlgmr.msra.gmra.mrb[4].mxu0 %vm154_vm6, %v476_v49  ;;  %5026 = vmatprep.subr.msk.bf16.mxu0 %vm47_vm0, %v747_v4  ;;  %v695_v5 = vpop.permute.xlu1 %694 }
  0xba   :  { %774 = vmatpush1.bf16.msra.mxu0 %v756_v3  ;;  %805 = vmatprep.mubr.bf16.mxu0 %v5313_v22 }
  0xbb   :  { %v519_v6 = vpop.permute.xlu0 %518 }
  0xbc   :  { %v529_v8 = vsel %vm526_vm8, %v517_v45, %v519_v6  ;;  %v530_v9 = vsel %vm526_vm8, %v519_v6, %v521_v51 }
  0xbd   :  { %5021 = vmatprep.subr.msk.bf16.mxu1 %vm47_vm0, %v530_v9  ;;  %v740_v26 = vpop.permute.xlu1 %739  ;;  %v543_v10 = vsel %vm47_vm0, %v529_v8, 0 }
  0xbe   :  { %596 = vmatpush1.bf16.msra.mxu1 %v543_v10 }
  0xbf   :  { %v742_v11 = vpop.permute.xlu0 %741 }
  0xc0   :  { %v750_v12 = vsel %vm745_vm9, %v740_v26, %v742_v11 }
  0xc1   :  { %5027 = vmatmul.mubr.msk.bf16.vlgmr.msra.gmra.mrb[0].mxu0 %vm154_vm6, %v695_v5  ;;  %v744_v13 = vpop.permute.xlu1 %743  ;;  %v768_v17 = vsel %vm47_vm0, %v750_v12, 0 }
  0xc2   :  { %v751_v14 = vsel %vm745_vm9, %v742_v11, %v744_v13  ;;  %887 = vmatprep.mubr.bf16.mxu0 %v5313_v22 }
  0xc3   :  { %v738_v16 = vpop.permute.xlu0 %737  ;;  %5022 = vmatmul.mubr.msk.bf16.vlgmr.msra.gmra.mrb[0].mxu1 %vm154_vm6, %v476_v49  ;;  %5030 = vmatprep.subr.msk.bf16.mxu0 %vm47_vm0, %v751_v14 }
  0xc4   :  { %v748_v18 = vsel %vm745_vm9, %v736_v2, %v738_v16  ;;  %856 = vmatpush1.bf16.msra.mxu0 %v768_v17  ;;  %v749_v19 = vsel %vm745_vm9, %v738_v16, %v740_v26  ;;  %846 = vmatprep.mubr.bf16.mxu1 %v5313_v22 }
  0xc5   :  { %5028 = vmatprep.subr.msk.bf16.mxu1 %vm47_vm0, %v749_v19  ;;  %v914_v21 = vpop.permute.xlu1 %913  ;;  %v762_v23 = vsel %vm47_vm0, %v748_v18, 0  ;;  %5034 = vmatprep.subr.msk.bf16.mxu0 %vm47_vm0, %v5455_v50  ;;  %v952_v50 = vsel %vm47_vm0, %v5460_v52, 0 }
  0xc6   :  { %815 = vmatpush1.bf16.msra.mxu1 %v762_v23 }
  0xc7   :  { %v1141_v24 = vpop.permute.xlu0 %1140  ;;  %5036 = vmatprep.subr.msk.bf16.mxu1 %vm47_vm0, %v5474_v57 }
  0xc9   :  { %5031 = vmatmul.mubr.msk.bf16.vlgmr.msra.gmra.mrb[4].mxu0 %vm154_vm6, %v695_v5  ;;  %v1143_v28 = vpop.permute.xlu1 %1142 }
  0xca   :  { %964 = vmatpush1.bf16.msra.mxu0 %v946_v25  ;;  %995 = vmatprep.mubr.bf16.mxu0 %v5313_v22  ;;  %v1155_v34 = vsel %vm1154_vm10, %v1141_v24, %v1143_v28 }
  0xcb   :  { %v1145_v29 = vpop.permute.xlu0 %1144  ;;  %5038 = vmatprep.subr.msk.bf16.mxu0 %vm47_vm0, %v941_v27  ;;  %v1165_v39 = vsel %vm47_vm0, %v1155_v34, 0 }
  0xcc   :  { %v1156_v57 = vsel %vm1154_vm10, %v1143_v28, %v1145_v29 }
  0xcd   :  { %v1104_v30 = vpop.permute.xlu1 %1103 }
  0xcf   :  { %5029 = vmatmul.mubr.msk.bf16.vlgmr.msra.gmra.mrb[0].mxu1 %vm154_vm6, %v695_v5  ;;  %v1149_v48 = vpop.permute.xlu0 %1148 }
  0xd0   :  { %1005 = vmatpush1.bf16.msra.mxu1 %v952_v50  ;;  %1036 = vmatprep.mubr.bf16.mxu1 %v5313_v22 }
  0xd1   :  { %5035 = vmatmul.mubr.msk.bf16.vlgmr.msra.gmra.mrb[0].mxu0 %vm154_vm6, %v914_v21  ;;  %v1151_v32 = vpop.permute.xlu1 %1150 }
  0xd2   :  { %1046 = vmatpush1.bf16.msra.mxu0 %v958_v31  ;;  %1077 = vmatprep.mubr.bf16.mxu0 %v5313_v22  ;;  %v1159_v44 = vsel %vm1154_vm10, %v1149_v48, %v1151_v32 }
  0xd3   :  { %5041 = vmatprep.subr.msk.bf16.mxu0 %vm47_vm0, %v1156_v57  ;;  %v1153_v52 = vpop.permute.xlu0 %1152  ;;  %v1177_v47 = vsel %vm47_vm0, %v1159_v44, 0 }
  0xd4   :  { %v1160_v38 = vsel %vm1154_vm10, %v1151_v32, %v1153_v52  ;;  %v83_v52 = vld [vmem:[%s6541_s3] sm:$0x3f] }
  0xd5   :  { %v1147_v33 = vpop.permute.xlu1 %1146  ;;  %vm84_vm14 = vcmp.gt.f32.partialorder %v83_v52, 0.5 }
  0xd6   :  { %v1157_v35 = vsel %vm1154_vm10, %v1145_v29, %v1147_v33  ;;  %v1158_v36 = vsel %vm1154_vm10, %v1147_v33, %v1149_v48  ;;  %v1985_v33 = vsub.s32 2, %v5380_v7  ;;  %v1974_v34 = vsel %vm84_vm14, 1, %v5313_v22 }
  0xd7   :  { %5043 = vmatprep.subr.msk.bf16.mxu1 %vm47_vm0, %v1158_v36  ;;  %v1360_v37 = vpop.permute.xlu0 %1359  ;;  %v1171_v40 = vsel %vm47_vm0, %v1157_v35, 0  ;;  %v1989_v35 = vsub.s32 3, %v5380_v7 }
  0xd8   :  { %v1986_v36 = vrot.slane %v1974_v34, %v1985_v33 }
  0xd9   :  { %5039 = vmatmul.mubr.msk.bf16.vlgmr.msra.gmra.mrb[4].mxu0 %vm154_vm6, %v914_v21  ;;  %v1362_v41 = vpop.permute.xlu1 %1361 }
  0xda   :  { %1183 = vmatpush1.bf16.msra.mxu0 %v1165_v39  ;;  %1214 = vmatprep.mubr.bf16.mxu0 %v5313_v22  ;;  %v1374_v58 = vsel %vm1373_vm11, %v1360_v37, %v1362_v41  ;;  %v1990_v37 = vrot.slane %v1974_v34, %v1989_v35  ;;  %v5697_v39 = vsub.s32 1, %v5380_v7  ;;  %vm2001_vm15 = vcmp.eq.s32.totalorder %v1986_v36, 1 }
  0xdb   :  { %5037 = vmatmul.mubr.msk.bf16.vlgmr.msra.gmra.mrb[0].mxu1 %vm154_vm6, %v914_v21  ;;  %5045 = vmatprep.subr.msk.bf16.mxu0 %vm47_vm0, %v1160_v38  ;;  %v1364_v42 = vpop.permute.xlu0 %1363  ;;  %v1384_v61 = vsel %vm47_vm0, %v1374_v58, 0  ;;  %v5694_v38 = vsub.s32 0, %v5380_v7 }
  0xdc   :  { %1224 = vmatpush1.bf16.msra.mxu1 %v1171_v40  ;;  %1255 = vmatprep.mubr.bf16.mxu1 %v5313_v22  ;;  %v1375_v46 = vsel %vm1373_vm11, %v1362_v41, %v1364_v42  ;;  %vm2002_vm1 = vcmp.eq.s32.totalorder %v1990_v37, 1 }
  0xdd   :  { %v1323_v43 = vpop.permute.xlu1 %1322 }
  0xdf   :  { %v1366_v45 = vpop.permute.xlu0 %1365 }
  0xe0   :  { %v1376_v51 = vsel %vm1373_vm11, %v1364_v42, %v1366_v45 }
  0xe1   :  { %5042 = vmatmul.mubr.msk.bf16.vlgmr.msra.gmra.mrb[0].mxu0 %vm154_vm6, %v1104_v30  ;;  %v1368_v49 = vpop.permute.xlu1 %1367  ;;  %v1390_v55 = vsel %vm47_vm0, %v1376_v51, 0 }
  0xe2   :  { %1265 = vmatpush1.bf16.msra.mxu0 %v1177_v47  ;;  %v1377_v53 = vsel %vm1373_vm11, %v1366_v45, %v1368_v49  ;;  %1296 = vmatprep.mubr.bf16.mxu0 %v5313_v22  ;;  %v1978_v45 = vrot.slane %v1974_v34, %v5694_v38 }
  0xe3   :  { %5048 = vmatprep.subr.msk.bf16.mxu0 %vm47_vm0, %v1375_v46  ;;  %5050 = vmatprep.subr.msk.bf16.mxu1 %vm47_vm0, %v1377_v53  ;;  %v1370_v54 = vpop.permute.xlu0 %1369 }
  0xe4   :  { %v1378_v0 = vsel %vm1373_vm11, %v1368_v49, %v1370_v54  ;;  %v1982_v49 = vrot.slane %v1974_v34, %v5697_v39  ;;  %vm1999_vm2 = vcmp.eq.s32.totalorder %v1978_v45, 1 }
  0xe5   :  { %v1372_v56 = vpop.permute.xlu1 %1371  ;;  %v1396_v3 = vsel %vm47_vm0, %v1378_v0, 0 }
  0xe6   :  { %v1379_v60 = vsel %vm1373_vm11, %v1370_v54, %v1372_v56  ;;  %vm2000_vm3 = vcmp.eq.s32.totalorder %v1982_v49, 1 }
  0xe7   :  { %5044 = vmatmul.mubr.msk.bf16.vlgmr.msra.gmra.mrb[0].mxu1 %vm154_vm6, %v1104_v30  ;;  %v1579_v59 = vpop.permute.xlu0 %1578 }
  0xe8   :  { %1443 = vmatpush1.bf16.msra.mxu1 %v1390_v55  ;;  %1474 = vmatprep.mubr.bf16.mxu1 %v5313_v22  ;;  %v1993_v55 = vsub.s32 4, %v5380_v7 }
  0xe9   :  { %5046 = vmatmul.mubr.msk.bf16.vlgmr.msra.gmra.mrb[4].mxu0 %vm154_vm6, %v1104_v30  ;;  %v1581_v62 = vpop.permute.xlu1 %1580 }
  0xea   :  { %1402 = vmatpush1.bf16.msra.mxu0 %v1384_v61  ;;  %1433 = vmatprep.mubr.bf16.mxu0 %v5313_v22  ;;  %v1593_v11 = vsel %vm1592_vm12, %v1579_v59, %v1581_v62  ;;  %v1997_v59 = vsub.s32 5, %v5380_v7 }
  0xeb   :  { %5052 = vmatprep.subr.msk.bf16.mxu0 %vm47_vm0, %v1379_v60  ;;  %v1583_v63 = vpop.permute.xlu0 %1582  ;;  %v1603_v14 = vsel %vm47_vm0, %v1593_v11, 0 }
  0xec   :  { %v1594_v5 = vsel %vm1592_vm12, %v1581_v62, %v1583_v63 }
  0xed   :  { %v1585_v1 = vpop.permute.xlu1 %1584 }
  0xee   :  { %v1595_v2 = vsel %vm1592_vm12, %v1583_v63, %v1585_v1 }
  0xef   :  { %v1587_v4 = vpop.permute.xlu0 %1586  ;;  %v1609_v8 = vsel %vm47_vm0, %v1595_v2, 0 }
  0xf0   :  { %v1596_v6 = vsel %vm1592_vm12, %v1585_v1, %v1587_v4  ;;  %v1994_v1 = vrot.slane %v1974_v34, %v1993_v55 }
  0xf1   :  { %5049 = vmatmul.mubr.msk.bf16.vlgmr.msra.gmra.mrb[0].mxu0 %vm154_vm6, %v1323_v43  ;;  %5057 = vmatprep.subr.msk.bf16.mxu1 %vm47_vm0, %v1596_v6  ;;  %v1542_v9 = vpop.permute.xlu1 %1541 }
  0xf2   :  { %1484 = vmatpush1.bf16.msra.mxu0 %v1396_v3  ;;  %1515 = vmatprep.mubr.bf16.mxu0 %v5313_v22  ;;  %v1998_v3 = vrot.slane %v1974_v34, %v1997_v59  ;;  %vm2003_vm4 = vcmp.eq.s32.totalorder %v1994_v1, 1 }
  0xf3   :  { %5051 = vmatmul.mubr.msk.bf16.vlgmr.msra.gmra.mrb[0].mxu1 %vm154_vm6, %v1323_v43  ;;  %5055 = vmatprep.subr.msk.bf16.mxu0 %vm47_vm0, %v1594_v5  ;;  %v1589_v26 = vpop.permute.xlu0 %1588 }
  0xf4   :  { %1662 = vmatpush1.bf16.msra.mxu1 %v1609_v8  ;;  %1693 = vmatprep.mubr.bf16.mxu1 %v5313_v22  ;;  %v1597_v19 = vsel %vm1592_vm12, %v1587_v4, %v1589_v26  ;;  %vm2004_vm14 = vcmp.eq.s32.totalorder %v1998_v3, 1 }
  0xf5   :  { %v1591_v10 = vpop.permute.xlu1 %1590  ;;  %v1615_v27 = vsel %vm47_vm0, %v1597_v19, 0 }
  0xf6   :  { %v1598_v13 = vsel %vm1592_vm12, %v1589_v26, %v1591_v10 }
  0xf7   :  { %v1798_v12 = vpop.permute.xlu0 %1797 }
  0xf9   :  { %5053 = vmatmul.mubr.msk.bf16.vlgmr.msra.gmra.mrb[4].mxu0 %vm154_vm6, %v1323_v43  ;;  %v1800_v16 = vpop.permute.xlu1 %1799 }
  0xfa   :  { %1621 = vmatpush1.bf16.msra.mxu0 %v1603_v14  ;;  %1652 = vmatprep.mubr.bf16.mxu0 %v5313_v22  ;;  %v1812_v30 = vsel %vm1811_vm13, %v1798_v12, %v1800_v16 }
  0xfb   :  { %5059 = vmatprep.subr.msk.bf16.mxu0 %vm47_vm0, %v1598_v13  ;;  %v1802_v17 = vpop.permute.xlu0 %1801  ;;  %v1822_v31 = vsel %vm47_vm0, %v1812_v30, 0 }
  0xfc   :  { %v1813_v24 = vsel %vm1811_vm13, %v1800_v16, %v1802_v17 }
  0xfd   :  { %v1804_v18 = vpop.permute.xlu1 %1803 }
  0xfe   :  { %v1814_v20 = vsel %vm1811_vm13, %v1802_v17, %v1804_v18 }
  0xff   :  { %5058 = vmatmul.mubr.msk.bf16.vlgmr.msra.gmra.mrb[0].mxu1 %vm154_vm6, %v1542_v9  ;;  %v1806_v21 = vpop.permute.xlu0 %1805  ;;  %v1828_v23 = vsel %vm47_vm0, %v1814_v20, 0  ;;  %v5712_v20 = vld [vmem:[%s6540_s2] sm:$0x3] }
 0x100   :  { %v1815_v25 = vsel %vm1811_vm13, %v1804_v18, %v1806_v21  ;;  %1912 = vmatprep.mubr.bf16.mxu1 %v5313_v22 }
 0x101   :  { %5056 = vmatmul.mubr.msk.bf16.vlgmr.msra.gmra.mrb[0].mxu0 %vm154_vm6, %v1542_v9  ;;  %5064 = vmatprep.subr.msk.bf16.mxu1 %vm47_vm0, %v1815_v25  ;;  %v1761_v28 = vpop.permute.xlu1 %1760 }
 0x102   :  { %1703 = vmatpush1.bf16.msra.mxu0 %v1615_v27  ;;  %1881 = vmatpush1.bf16.msra.mxu1 %v1828_v23 }
 0x103   :  { %5062 = vmatprep.subr.msk.bf16.mxu0 %vm47_vm0, %v1813_v24  ;;  %1734 = vmatprep.mubr.bf16.mxu0 %v5313_v22  ;;  %v1808_v50 = vpop.permute.xlu0 %1807  ;;  %v2062_v24 = vrot.slane %v5712_v20, %v5386_v15 }
 0x104   :  { %v1816_v57 = vsel %vm1811_vm13, %v1806_v21, %v1808_v50 }
 0x105   :  { %v1810_v29 = vpop.permute.xlu1 %1809  ;;  %v1834_v32 = vsel %vm47_vm0, %v1816_v57, 0 }
 0x106   :  { %v1817_v48 = vsel %vm1811_vm13, %v1808_v50, %v1810_v29 }
 0x109   :  { %5060 = vmatmul.mubr.msk.bf16.vlgmr.msra.gmra.mrb[4].mxu0 %vm154_vm6, %v1542_v9 }
 0x10a   :  { %1840 = vmatpush1.bf16.msra.mxu0 %v1822_v31  ;;  %1871 = vmatprep.mubr.bf16.mxu0 %v5313_v22 }
 0x10b   :  { %5065 = vmatmul.mubr.msk.bf16.vlgmr.msra.gmra.mrb[0].mxu1 %vm154_vm6, %v1761_v28  ;;  %5066 = vmatprep.subr.msk.bf16.mxu0 %vm47_vm0, %v1817_v48  ;;  %v5739_v48 = vld.sshfl [vmem:[%s6540_s2] sm:$0x3 pattern:$0x76325410] }
 0x10c   :  { %2173 = vmatprep.mubr.bf16.mxu1 %v5313_v22 }
 0x111   :  { %5063 = vmatmul.mubr.msk.bf16.vlgmr.msra.gmra.mrb[0].mxu0 %vm154_vm6, %v1761_v28 }
 0x112   :  { %1922 = vmatpush1.bf16.msra.mxu0 %v1834_v32  ;;  %1953 = vmatprep.mubr.bf16.mxu0 %v5313_v22 }
 0x119   :  { %5067 = vmatmul.mubr.msk.bf16.vlgmr.msra.gmra.mrb[4].mxu0 %vm154_vm6, %v1761_v28 }
 0x11a   :  { %2767 = vmatprep.mubr.bf16.mxu0 %v5313_v22 }
 0x1de   :  { %v1914_v40 = vpop.f32.mrb[0].mxu1 }
 0x1df   :  { %v1970_v41 = vmax.f32 %v1914_v40, 0.0  ;;  %v1916_v42 = vpop.f32.mrb[1].mxu1 }
 0x1e0   :  { %v1971_v43 = vmax.f32 %v1916_v42, 0.0  ;;  %v1918_v44 = vpop.f32.mrb[2].mxu1 }
 0x1e1   :  { %v2007_v46 = vsel %vm2001_vm15, %v1970_v41, 0.0  ;;  %v1919_v47 = vpop.f32.mrb[3].mxu1 }
 0x1e2   :  { %v2008_v51 = vsel %vm2002_vm1, %v1971_v43, 0.0 }
 0x1e3   :  { %v5069_v53 = vpack.c.bf16 %v2008_v51, %v2007_v46 }
 0x1e4   :  { %v1873_v54 = vpop.f32.mrb[0].mxu0 }
 0x1e5   :  { %v1968_v56 = vmax.f32 %v1873_v54, 0.0  ;;  %v1875_v58 = vpop.f32.mrb[1].mxu0  ;;  %v5704_v4 = vrot.slane %v5069_v53, %v5386_v15 }
 0x1e6   :  { %v1969_v60 = vmax.f32 %v1875_v58, 0.0  ;;  %v1877_v61 = vpop.f32.mrb[2].mxu0 }
 0x1e7   :  { %v2005_v62 = vsel %vm1999_vm2, %v1968_v56, 0.0  ;;  %v1878_v63 = vpop.f32.mrb[3].mxu0  ;;  %v5287_v37 = vcombine.low %v5704_v4, %v5704_v4 }
 0x1e8   :  { %v2006_v0 = vsel %vm2000_vm3, %v1969_v60, 0.0 }
 0x1e9   :  { %v5068_v2 = vpack.c.bf16 %v2006_v0, %v2005_v62  ;;  %v5772_v41 = vrot.slane %v5287_v37, %v5386_v15 }
 0x1eb   :  { %v2031_v5 = vrot.slane %v5068_v2, %v5386_v15  ;;  %v5780_v43 = vcombine.high %v5772_v41, %v5772_v41 }
 0x1ec   :  { %v1955_v6 = vpop.f32.mrb[4].mxu0 }
 0x1ed   :  { %v2039_v8 = vcombine.low %v2031_v5, %v5704_v4  ;;  %v1972_v9 = vmax.f32 %v1955_v6, 0.0  ;;  %v1957_v26 = vpop.f32.mrb[5].mxu0 }
 0x1ee   :  { %v1973_v10 = vmax.f32 %v1957_v26, 0.0  ;;  %v1959_v11 = vpop.f32.mrb[6].mxu0 }
 0x1ef   :  { %2050 = vst [vmem:[#allocation2 + $0x2] sm:$0xff] %v2039_v8  ;;  %v2009_v12 = vsel %vm2003_vm4, %v1972_v9, 0.0  ;;  %v1960_v13 = vpop.f32.mrb[7].mxu0  ;;  %v5759_v36 = vrot.slane %v2039_v8, %v5386_v15 }
 0x1f0   :  { %v2010_v14 = vsel %vm2004_vm14, %v1973_v10, 0.0 }
 0x1f1   :  { %v5070_v16 = vpack.c.bf16 %v2010_v14, %v2009_v12  ;;  %v5769_v40 = vcombine.high %v5759_v36, %v5759_v36 }
 0x1f3   :  { %5071 = vst.sshfl [vmem:[#allocation2 + $0xa] sm:$0x33 pattern:$0x76325410] %v5070_v16 }
 0x1f6   :  { %v2053_v17 = vld [vmem:[#allocation2] sm:$0xff] }
 0x1f7   :  { %v2074_v18 = vrot.slane %v2053_v17, %v5386_v15  ;;  %v2067_v19 = vcombine.high %v2053_v17, %v2053_v17 }
 0x1f9   :  { %2100 = vrot.lane.b32.xlu0 %v2074_v18, %s5314_s25  ;;  %v2082_v21 = vcombine.high %v2074_v18, %v2074_v18  ;;  %v2081_v23 = vrot.slane %v2067_v19, %v5386_v15 }
 0x1fa   :  { %v2054_v25 = vld [vmem:[#allocation2 + $0x8] sm:$0x3f] }
 0x1fb   :  { %2102 = vrot.lane.b32.xlu1 %v2082_v21, %s5314_s25  ;;  %v2083_v27 = vcombine.high %v2081_v23, %v2081_v23  ;;  %v2091_v28 = vrot.slane %v2054_v25, %v5386_v15  ;;  %v2084_v29 = vcombine.high %v2054_v25, %v2054_v25  ;;  %v2430_v31 = vld [vmem:[#allocation2 + $0x8] sm:$0x3f] }
 0x1fc   :  { %v2467_v57 = vrot.slane %v2430_v31, %v5386_v15  ;;  %v2648_v32 = vld [vmem:[#allocation2 + $0x8] sm:$0x3f]  ;;  %v2460_v52 = vcombine.high %v2430_v31, %v2430_v31 }
 0x1fd   :  { %2104 = vrot.lane.b32.xlu0 %v2081_v23, %s5314_s25  ;;  %v2099_v30 = vcombine.high %v2091_v28, %v2091_v28  ;;  %v2098_v50 = vrot.slane %v2084_v29, %v5386_v15  ;;  %v2685_v33 = vrot.slane %v2648_v32, %v5386_v15  ;;  %v2678_v42 = vcombine.high %v2648_v32, %v2648_v32  ;;  %v3056_v45 = vld [vmem:[#allocation2 + $0xa] sm:$0x3f] }
 0x1fe   :  { %v2474_v34 = vrot.slane %v2460_v52, %v5386_v15  ;;  %v2475_v35 = vcombine.high %v2467_v57, %v2467_v57  ;;  %v3093_v47 = vrot.slane %v3056_v45, %v5386_v15  ;;  %v3274_v49 = vld [vmem:[#allocation2 + $0xa] sm:$0x3f]  ;;  %v3086_v53 = vcombine.high %v3056_v45, %v3056_v45 }
 0x1ff   :  { %2063 = vrot.lane.b32.xlu1 %v2062_v24, %s5315_s26  ;;  %v2692_v44 = vrot.slane %v2678_v42, %v5386_v15  ;;  %v2693_v46 = vcombine.high %v2685_v33, %v2685_v33  ;;  %v3311_v51 = vrot.slane %v3274_v49, %v5386_v15  ;;  %v3304_v56 = vcombine.high %v3274_v49, %v3274_v49  ;;  %v3492_v59 = vld [vmem:[#allocation2 + $0xa] sm:$0x3f]  ;;  %s5331_s26 = smov 113  }
 0x200   :  { %v3101_v54 = vcombine.high %v3093_v47, %v3093_v47  ;;  %v3100_v55 = vrot.slane %v3086_v53, %v5386_v15  ;;  %v3529_v61 = vrot.slane %v3492_v59, %v5386_v15  ;;  %v3522_v62 = vcombine.high %v3492_v59, %v3492_v59  ;;  %v3710_v1 = vld [vmem:[#allocation2 + $0xa] sm:$0x3f] }
 0x201   :  { %2106 = vrot.lane.b32.xlu0 %v2083_v27, %s5314_s25  ;;  %v3319_v58 = vcombine.high %v3311_v51, %v3311_v51  ;;  %v3318_v60 = vrot.slane %v3304_v56, %v5386_v15  ;;  %v3747_v6 = vrot.slane %v3710_v1, %v5386_v15  ;;  %v3740_v10 = vcombine.high %v3710_v1, %v3710_v1 }
 0x202   :  { %v3537_v0 = vcombine.high %v3529_v61, %v3529_v61  ;;  %v3536_v3 = vrot.slane %v3522_v62, %v5386_v15 }
 0x203   :  { %2108 = vrot.lane.b32.xlu1 %v2091_v28, %s5314_s25  ;;  %v3755_v12 = vcombine.high %v3747_v6, %v3747_v6  ;;  %v3754_v16 = vrot.slane %v3740_v10, %v5386_v15 }
 0x205   :  { %2110 = vrot.lane.b32.xlu0 %v2099_v30, %s5314_s25 }
 0x207   :  { %2112 = vrot.lane.b32.xlu1 %v2098_v50, %s5314_s25 }
 0x209   :  { %2264 = vrot.lane.b32.xlu0 %v2074_v18, %s5316_s27 }
 0x20b   :  { %2266 = vrot.lane.b32.xlu1 %v2082_v21, %s5316_s27 }
 0x20d   :  { %2268 = vrot.lane.b32.xlu0 %v2081_v23, %s5316_s27 }
 0x20f   :  { %2270 = vrot.lane.b32.xlu1 %v2083_v27, %s5316_s27 }
 0x211   :  { %2272 = vrot.lane.b32.xlu0 %v2091_v28, %s5316_s27 }
 0x213   :  { %2476 = vrot.lane.b32.xlu1 %v2074_v18, %s5317_s28 }
 0x215   :  { %2276 = vrot.lane.b32.xlu0 %v2098_v50, %s5316_s27 }
 0x217   :  { %2274 = vrot.lane.b32.xlu1 %v2099_v30, %s5316_s27 }
 0x219   :  { %2478 = vrot.lane.b32.xlu0 %v2082_v21, %s5317_s28 }
 0x21b   :  { %2480 = vrot.lane.b32.xlu1 %v2081_v23, %s5317_s28 }
 0x21d   :  { %2439 = vrot.lane.b32.xlu0 %v5739_v48, %s5318_s5  ;;  %s5334_s5 = smov 73  }
 0x21f   :  { %2482 = vrot.lane.b32.xlu1 %v2083_v27, %s5317_s28 }
 0x221   :  { %2484 = vrot.lane.b32.xlu0 %v2467_v57, %s5317_s28 }
 0x223   :  { %2694 = vrot.lane.b32.xlu1 %v2074_v18, %s5319_s1 }
 0x225   :  { %2696 = vrot.lane.b32.xlu0 %v2082_v21, %s5319_s1 }
 0x227   :  { %2698 = vrot.lane.b32.xlu1 %v2081_v23, %s5319_s1 }
 0x229   :  { %2700 = vrot.lane.b32.xlu0 %v2083_v27, %s5319_s1 }
 0x22b   :  { %2702 = vrot.lane.b32.xlu1 %v2685_v33, %s5319_s1 }
 0x22d   :  { %2488 = vrot.lane.b32.xlu0 %v2474_v34, %s5317_s28 }
 0x22f   :  { %2486 = vrot.lane.b32.xlu1 %v2475_v35, %s5317_s28  ;;  %s5332_s28 = smov 95  }
 0x231   :  { %2657 = vrot.lane.b32.xlu0 %v5739_v48, %s5320_s6  ;;  %s5335_s6 = smov 55  }
 0x233   :  { %2875 = vrot.lane.b32.xlu1 %v5739_v48, %s5321_s7  ;;  %s5336_s7 = smov 37  }
 0x235   :  { %3102 = vrot.lane.b32.xlu0 %v5759_v36, %s5322_s8 }
 0x237   :  { %3104 = vrot.lane.b32.xlu1 %v5769_v40, %s5322_s8 }
 0x239   :  { %3106 = vrot.lane.b32.xlu0 %v5772_v41, %s5322_s8 }
 0x23b   :  { %3108 = vrot.lane.b32.xlu1 %v5780_v43, %s5322_s8 }
 0x23d   :  { %2706 = vrot.lane.b32.xlu0 %v2692_v44, %s5319_s1 }
 0x23f   :  { %2704 = vrot.lane.b32.xlu1 %v2693_v46, %s5319_s1 }
 0x241   :  { %3110 = vrot.lane.b32.xlu0 %v3093_v47, %s5322_s8 }
 0x243   :  { %3065 = vrot.lane.b32.xlu1 %v5739_v48, %s5323_s9  ;;  %s5338_s9 = smov 75  }
 0x245   :  { %3320 = vrot.lane.b32.xlu0 %v5759_v36, %s5324_s10 }
 0x247   :  { %3322 = vrot.lane.b32.xlu1 %v5769_v40, %s5324_s10 }
 0x249   :  { %3324 = vrot.lane.b32.xlu0 %v5772_v41, %s5324_s10 }
 0x24b   :  { %3283 = vrot.lane.b32.xlu1 %v5739_v48, %s5325_s11  ;;  %s5339_s11 = smov 57  }
 0x24d   :  { %3326 = vrot.lane.b32.xlu0 %v5780_v43, %s5324_s10 }
 0x24f   :  { %3328 = vrot.lane.b32.xlu1 %v3311_v51, %s5324_s10 }
 0x251   :  { %3538 = vrot.lane.b32.xlu0 %v5759_v36, %s5326_s12 }
 0x253   :  { %3540 = vrot.lane.b32.xlu1 %v5769_v40, %s5326_s12 }
 0x255   :  { %3112 = vrot.lane.b32.xlu0 %v3101_v54, %s5322_s8 }
 0x257   :  { %3114 = vrot.lane.b32.xlu1 %v3100_v55, %s5322_s8  ;;  %s5337_s8 = smov 93  }
 0x259   :  { %3542 = vrot.lane.b32.xlu0 %v5772_v41, %s5326_s12 }
 0x25b   :  { %3544 = vrot.lane.b32.xlu1 %v5780_v43, %s5326_s12 }
 0x25d   :  { %3330 = vrot.lane.b32.xlu0 %v3319_v58, %s5324_s10 }
 0x25f   :  { %3332 = vrot.lane.b32.xlu1 %v3318_v60, %s5324_s10 }
 0x261   :  { %3546 = vrot.lane.b32.xlu0 %v3529_v61, %s5326_s12 }
 0x263   :  { %3501 = vrot.lane.b32.xlu1 %v5739_v48, %s5327_s13  ;;  %s5341_s13 = smov 21  }
 0x265   :  { %3756 = vrot.lane.b32.xlu0 %v5759_v36, %s5328_s14 }
 0x267   :  { %3758 = vrot.lane.b32.xlu1 %v5769_v40, %s5328_s14 }
 0x269   :  { %3760 = vrot.lane.b32.xlu0 %v5772_v41, %s5328_s14 }
 0x26b   :  { %v2101_v63 = vpop.permute.xlu0 %2100  ;;  %3719 = vrot.lane.b32.xlu1 %v5739_v48, %s5329_s15  ;;  %s5342_s15 = smov 3  }
 0x26d   :  { %3548 = vrot.lane.b32.xlu0 %v3537_v0, %s5326_s12  ;;  %v2103_v2 = vpop.permute.xlu1 %2102 }
 0x26e   :  { %v2114_v4 = vsel %vm147_vm5, %v2101_v63, %v2103_v2 }
 0x26f   :  { %v2105_v5 = vpop.permute.xlu0 %2104  ;;  %3550 = vrot.lane.b32.xlu1 %v3536_v3, %s5326_s12  ;;  %v2124_v26 = vsel %vm47_vm0, %v2114_v4, 0  ;;  %s5340_s12 = smov 39  }
 0x270   :  { %v2115_v8 = vsel %vm147_vm5, %v2103_v2, %v2105_v5 }
 0x271   :  { %3762 = vrot.lane.b32.xlu0 %v5780_v43, %s5328_s14  ;;  %5072 = vmatprep.subr.msk.bf16.mxu1 %vm47_vm0, %v2115_v8  ;;  %v2064_v9 = vpop.permute.xlu1 %2063 }
 0x272   :  { %2142 = vmatpush1.bf16.msra.mxu1 %v2124_v26 }
 0x273   :  { %v2107_v11 = vpop.permute.xlu0 %2106  ;;  %3764 = vrot.lane.b32.xlu1 %v3747_v6, %s5328_s14 }
 0x274   :  { %v2116_v13 = vsel %vm147_vm5, %v2105_v5, %v2107_v11 }
 0x275   :  { %3766 = vrot.lane.b32.xlu0 %v3755_v12, %s5328_s14  ;;  %5073 = vmatmul.mubr.msk.bf16.vlgmr.msra.gmra.mrb[4].mxu1 %vm154_vm6, %v2064_v9  ;;  %v2109_v14 = vpop.permute.xlu1 %2108  ;;  %v2130_v19 = vsel %vm47_vm0, %v2116_v13, 0 }
 0x276   :  { %v2117_v17 = vsel %vm147_vm5, %v2107_v11, %v2109_v14  ;;  %2214 = vmatprep.mubr.bf16.mxu1 %v5313_v22 }
 0x277   :  { %v2111_v18 = vpop.permute.xlu0 %2110  ;;  %3768 = vrot.lane.b32.xlu1 %v3754_v16, %s5328_s14  ;;  %5074 = vmatprep.subr.msk.bf16.mxu1 %vm47_vm0, %v2117_v17 }
 0x278   :  { %2183 = vmatpush1.bf16.msra.mxu1 %v2130_v19  ;;  %v2118_v23 = vsel %vm147_vm5, %v2109_v14, %v2111_v18 }
 0x279   :  { %v2113_v21 = vpop.permute.xlu1 %2112  ;;  %v2136_v15 = vsel %vm47_vm0, %v2118_v23, 0 }
 0x27a   :  { %v2119_v24 = vsel %vm147_vm5, %v2111_v18, %v2113_v21  ;;  %vm4372_vm5 = vcmask 23552  }
 0x27b   :  { %v2265_v25 = vpop.permute.xlu0 %2264  ;;  %5076 = vmatprep.subr.msk.bf16.mxu1 %vm47_vm0, %v2119_v24 }
 0x27d   :  { %5075 = vmatmul.mubr.msk.bf16.vlgmr.msra.gmra.mrb[8].mxu1 %vm154_vm6, %v2064_v9  ;;  %v2267_v27 = vpop.permute.xlu1 %2266 }
 0x27e   :  { %2224 = vmatpush1.bf16.msra.mxu1 %v2136_v15  ;;  %2255 = vmatprep.mubr.bf16.mxu1 %v5313_v22  ;;  %v2278_v50 = vsel %vm313_vm7, %v2265_v25, %v2267_v27 }
 0x27f   :  { %v2269_v28 = vpop.permute.xlu0 %2268  ;;  %v2288_v57 = vsel %vm47_vm0, %v2278_v50, 0 }
 0x280   :  { %v2279_v29 = vsel %vm313_vm7, %v2267_v27, %v2269_v28 }
 0x281   :  { %5078 = vmatprep.subr.msk.bf16.mxu1 %vm47_vm0, %v2279_v29  ;;  %v2271_v30 = vpop.permute.xlu1 %2270 }
 0x282   :  { %v2280_v34 = vsel %vm313_vm7, %v2269_v28, %v2271_v30  ;;  %v2914_v28 = vsel %vm47_vm0, %v5772_v41, 0 }
 0x283   :  { %v2273_v48 = vpop.permute.xlu0 %2272  ;;  %v2294_v37 = vsel %vm47_vm0, %v2280_v34, 0 }
 0x284   :  { %v2281_v31 = vsel %vm313_vm7, %v2271_v30, %v2273_v48  ;;  %v5099_v30 = vld.sshfl [vmem:[#allocation2 + $0xa] sm:$0x33 pattern:$0x76325410] }
 0x285   :  { %5077 = vmatmul.mubr.msk.bf16.vlgmr.msra.gmra.mrb[12].mxu1 %vm154_vm6, %v2064_v9  ;;  %v2477_v32 = vpop.permute.xlu1 %2476  ;;  %v2903_v41 = vcombine.high %v5099_v30, %v5099_v30 }
 0x286   :  { %2306 = vmatpush1.bf16.msra.mxu1 %v2288_v57  ;;  %2337 = vmatprep.mubr.bf16.mxu1 %v5313_v22 }
 0x287   :  { %5080 = vmatprep.subr.msk.bf16.mxu1 %vm47_vm0, %v2281_v31  ;;  %v2277_v52 = vpop.permute.xlu0 %2276 }
 0x289   :  { %v2275_v33 = vpop.permute.xlu1 %2274 }
 0x28a   :  { %v2283_v44 = vsel %vm313_vm7, %v2275_v33, %v2277_v52  ;;  %v2282_v47 = vsel %vm313_vm7, %v2273_v48, %v2275_v33 }
 0x28b   :  { %v2479_v35 = vpop.permute.xlu0 %2478  ;;  %v2300_v51 = vsel %vm47_vm0, %v2282_v47, 0 }
 0x28c   :  { %v2490_v59 = vsel %vm526_vm8, %v2477_v32, %v2479_v35 }
 0x28d   :  { %5079 = vmatmul.mubr.msk.bf16.vlgmr.msra.gmra.mrb[16].mxu1 %vm154_vm6, %v5712_v20  ;;  %v2481_v42 = vpop.permute.xlu1 %2480  ;;  %v2500_v63 = vsel %vm47_vm0, %v2490_v59, 0 }
 0x28e   :  { %2347 = vmatpush1.bf16.msra.mxu1 %v2294_v37  ;;  %2378 = vmatprep.mubr.bf16.mxu1 %v5313_v22  ;;  %v2491_v54 = vsel %vm526_vm8, %v2479_v35, %v2481_v42 }
 0x28f   :  { %5082 = vmatprep.subr.msk.bf16.mxu1 %vm47_vm0, %v2283_v44  ;;  %v2440_v45 = vpop.permute.xlu0 %2439 }
 0x291   :  { %v2483_v46 = vpop.permute.xlu1 %2482 }
 0x292   :  { %v2492_v4 = vsel %vm526_vm8, %v2481_v42, %v2483_v46 }
 0x293   :  { %v2485_v49 = vpop.permute.xlu0 %2484 }
 0x294   :  { %v2493_v1 = vsel %vm526_vm8, %v2483_v46, %v2485_v49 }
 0x295   :  { %5081 = vmatmul.mubr.msk.bf16.vlgmr.msra.gmra.mrb[20].mxu1 %vm154_vm6, %v5712_v20  ;;  %v2695_v53 = vpop.permute.xlu1 %2694 }
 0x296   :  { %2388 = vmatpush1.bf16.msra.mxu1 %v2300_v51  ;;  %2419 = vmatprep.mubr.bf16.mxu1 %v5313_v22 }
 0x297   :  { %5085 = vmatprep.subr.msk.bf16.mxu1 %vm47_vm0, %v2491_v54  ;;  %v2697_v55 = vpop.permute.xlu0 %2696 }
 0x298   :  { %v2708_v56 = vsel %vm745_vm9, %v2695_v53, %v2697_v55 }
 0x299   :  { %v2699_v58 = vpop.permute.xlu1 %2698  ;;  %v2718_v62 = vsel %vm47_vm0, %v2708_v56, 0 }
 0x29a   :  { %v2709_v60 = vsel %vm745_vm9, %v2697_v55, %v2699_v58 }
 0x29b   :  { %v2701_v61 = vpop.permute.xlu0 %2700  ;;  %5092 = vmatprep.subr.msk.bf16.mxu0 %vm47_vm0, %v2709_v60 }
 0x29c   :  { %2736 = vmatpush1.bf16.msra.mxu0 %v2718_v62  ;;  %v2710_v18 = vsel %vm745_vm9, %v2699_v58, %v2701_v61 }
 0x29d   :  { %5083 = vmatmul.mubr.msk.bf16.vlgmr.msra.gmra.mrb[24].mxu1 %vm154_vm6, %v5712_v20  ;;  %v2703_v0 = vpop.permute.xlu1 %2702  ;;  %v2506_v20 = vsel %vm47_vm0, %v2492_v4, 0  ;;  %v2724_v25 = vsel %vm47_vm0, %v2710_v18, 0 }
 0x29e   :  { %2518 = vmatpush1.bf16.msra.mxu1 %v2500_v63  ;;  %2549 = vmatprep.mubr.bf16.mxu1 %v5313_v22  ;;  %v2711_v14 = vsel %vm745_vm9, %v2701_v61, %v2703_v0 }
 0x29f   :  { %5087 = vmatprep.subr.msk.bf16.mxu1 %vm47_vm0, %v2493_v1  ;;  %v2489_v2 = vpop.permute.xlu0 %2488 }
 0x2a1   :  { %v2487_v3 = vpop.permute.xlu1 %2486 }
 0x2a2   :  { %v2495_v8 = vsel %vm526_vm8, %v2487_v3, %v2489_v2  ;;  %v2494_v10 = vsel %vm526_vm8, %v2485_v49, %v2487_v3 }
 0x2a3   :  { %v2658_v5 = vpop.permute.xlu0 %2657  ;;  %v2512_v12 = vsel %vm47_vm0, %v2494_v10, 0 }
 0x2a4   :  { %5093 = vmatmul.mubr.msk.bf16.vlgmr.msra.gmra.mrb[8].mxu0 %vm154_vm6, %v2658_v5 }
 0x2a5   :  { %5086 = vmatmul.mubr.msk.bf16.vlgmr.msra.gmra.mrb[28].mxu1 %vm154_vm6, %v2440_v45  ;;  %v5892_v6 = vpop.permute.xlu1 %2875  ;;  %2849 = vmatprep.mubr.bf16.mxu0 %v5313_v22 }
 0x2a6   :  { %2559 = vmatpush1.bf16.msra.mxu1 %v2506_v20  ;;  %2590 = vmatprep.mubr.bf16.mxu1 %v5313_v22 }
 0x2a7   :  { %5089 = vmatprep.subr.msk.bf16.mxu1 %vm47_vm0, %v2495_v8  ;;  %v3103_v9 = vpop.permute.xlu0 %3102 }
 0x2a9   :  { %v3105_v26 = vpop.permute.xlu1 %3104 }
 0x2aa   :  { %v3116_v48 = vsel %vm1154_vm10, %v3103_v9, %v3105_v26 }
 0x2ab   :  { %v3107_v11 = vpop.permute.xlu0 %3106  ;;  %v3126_v32 = vsel %vm47_vm0, %v3116_v48, 0 }
 0x2ac   :  { %v3117_v29 = vsel %vm1154_vm10, %v3105_v26, %v3107_v11 }
 0x2ad   :  { %5088 = vmatmul.mubr.msk.bf16.vlgmr.msra.gmra.mrb[32].mxu1 %vm154_vm6, %v2440_v45  ;;  %v3109_v13 = vpop.permute.xlu1 %3108 }
 0x2ae   :  { %2600 = vmatpush1.bf16.msra.mxu1 %v2512_v12  ;;  %2631 = vmatprep.mubr.bf16.mxu1 %v5313_v22 }
 0x2af   :  { %5094 = vmatprep.subr.msk.bf16.mxu1 %vm47_vm0, %v2711_v14  ;;  %v2707_v16 = vpop.permute.xlu0 %2706 }
 0x2b1   :  { %v2705_v17 = vpop.permute.xlu1 %2704 }
 0x2b2   :  { %v2712_v19 = vsel %vm745_vm9, %v2703_v0, %v2705_v17  ;;  %v2713_v21 = vsel %vm745_vm9, %v2705_v17, %v2707_v16 }
 0x2b3   :  { %v3111_v23 = vpop.permute.xlu0 %3110  ;;  %5096 = vmatprep.subr.msk.bf16.mxu0 %vm47_vm0, %v2713_v21  ;;  %v2730_v24 = vsel %vm47_vm0, %v2712_v19, 0 }
 0x2b4   :  { %2818 = vmatpush1.bf16.msra.mxu0 %v2730_v24  ;;  %v3119_v35 = vsel %vm1154_vm10, %v3109_v13, %v3111_v23 }
 0x2b5   :  { %5090 = vmatmul.mubr.msk.bf16.vlgmr.msra.gmra.mrb[36].mxu1 %vm154_vm6, %v2440_v45  ;;  %5102 = vmatprep.subr.msk.bf16.mxu0 %vm47_vm0, %v5780_v43  ;;  %v5913_v15 = vpop.permute.xlu1 %3065  ;;  %v3118_v45 = vsel %vm1154_vm10, %v3107_v11, %v3109_v13 }
 0x2b6   :  { %2777 = vmatpush1.bf16.msra.mxu1 %v2724_v25  ;;  %2808 = vmatprep.mubr.bf16.mxu1 %v5313_v22  ;;  %v3132_v54 = vsel %vm47_vm0, %v3118_v45, 0 }
 0x2b7   :  { %5100 = vmatprep.subr.msk.bf16.mxu1 %vm47_vm0, %v5769_v40  ;;  %v3321_v27 = vpop.permute.xlu0 %3320  ;;  %5097 = vmatmul.mubr.msk.bf16.vlgmr.msra.gmra.mrb[12].mxu0 %vm154_vm6, %v2658_v5  ;;  %v2908_v40 = vsel %vm47_vm0, %v5759_v36, 0  ;;  %v2920_v36 = vsel %vm47_vm0, %v5099_v30, 0 }
 0x2b8   :  { %2967 = vmatpush1.bf16.msra.mxu0 %v2914_v28  ;;  %2998 = vmatprep.mubr.bf16.mxu0 %v5313_v22 }
 0x2b9   :  { %5107 = vmatprep.subr.msk.bf16.mxu0 %vm47_vm0, %v3117_v29  ;;  %v3323_v43 = vpop.permute.xlu1 %3322 }
 0x2ba   :  { %v3334_v62 = vsel %vm1373_vm11, %v3321_v27, %v3323_v43 }
 0x2bb   :  { %v3325_v50 = vpop.permute.xlu0 %3324  ;;  %v3344_v1 = vsel %vm47_vm0, %v3334_v62, 0 }
 0x2bc   :  { %v3335_v56 = vsel %vm1373_vm11, %v3323_v43, %v3325_v50 }
 0x2bd   :  { %5095 = vmatmul.mubr.msk.bf16.vlgmr.msra.gmra.mrb[40].mxu1 %vm154_vm6, %v2658_v5  ;;  %v5928_v31 = vpop.permute.xlu1 %3283 }
 0x2be   :  { %2926 = vmatpush1.bf16.msra.mxu1 %v2908_v40  ;;  %2957 = vmatprep.mubr.bf16.mxu1 %v5313_v22 }
 0x2bf   :  { %5104 = vmatprep.subr.msk.bf16.mxu1 %vm47_vm0, %v2903_v41  ;;  %v3327_v57 = vpop.permute.xlu0 %3326  ;;  %5103 = vmatmul.mubr.msk.bf16.vlgmr.msra.gmra.mrb[16].mxu0 %vm154_vm6, %v5892_v6 }
 0x2c0   :  { %3144 = vmatpush1.bf16.msra.mxu0 %v3126_v32  ;;  %3175 = vmatprep.mubr.bf16.mxu0 %v5313_v22  ;;  %v3336_v51 = vsel %vm1373_vm11, %v3325_v50, %v3327_v57 }
 0x2c1   :  { %v3329_v52 = vpop.permute.xlu1 %3328  ;;  %v3350_v59 = vsel %vm47_vm0, %v3336_v51, 0 }
 0x2c2   :  { %v3337_v53 = vsel %vm1373_vm11, %v3327_v57, %v3329_v52 }
 0x2c3   :  { %v3539_v33 = vpop.permute.xlu0 %3538 }
 0x2c5   :  { %5101 = vmatmul.mubr.msk.bf16.vlgmr.msra.gmra.mrb[44].mxu1 %vm154_vm6, %v5892_v6  ;;  %v3541_v34 = vpop.permute.xlu1 %3540 }
 0x2c6   :  { %3008 = vmatpush1.bf16.msra.mxu1 %v2920_v36  ;;  %3039 = vmatprep.mubr.bf16.mxu1 %v5313_v22  ;;  %v3552_v0 = vsel %vm1592_vm12, %v3539_v33, %v3541_v34 }
 0x2c7   :  { %5109 = vmatprep.subr.msk.bf16.mxu1 %vm47_vm0, %v3119_v35  ;;  %v3113_v37 = vpop.permute.xlu0 %3112  ;;  %5108 = vmatmul.mubr.msk.bf16.vlgmr.msra.gmra.mrb[20].mxu0 %vm154_vm6, %v5913_v15  ;;  %v3562_v5 = vsel %vm47_vm0, %v3552_v0, 0 }
 0x2c8   :  { %v3120_v42 = vsel %vm1154_vm10, %v3111_v23, %v3113_v37  ;;  %3257 = vmatprep.mubr.bf16.mxu0 %v5313_v22 }
 0x2c9   :  { %v3115_v44 = vpop.permute.xlu1 %3114  ;;  %v3138_v49 = vsel %vm47_vm0, %v3120_v42, 0 }
 0x2ca   :  { %v3121_v46 = vsel %vm1154_vm10, %v3113_v37, %v3115_v44 }
 0x2cb   :  { %v3543_v47 = vpop.permute.xlu0 %3542  ;;  %5111 = vmatprep.subr.msk.bf16.mxu0 %vm47_vm0, %v3121_v46 }
 0x2cc   :  { %3226 = vmatpush1.bf16.msra.mxu0 %v3138_v49  ;;  %v3553_v60 = vsel %vm1592_vm12, %v3541_v34, %v3543_v47 }
 0x2cd   :  { %5105 = vmatmul.mubr.msk.bf16.vlgmr.msra.gmra.mrb[48].mxu1 %vm154_vm6, %v5892_v6  ;;  %5116 = vmatprep.subr.msk.bf16.mxu0 %vm47_vm0, %v3337_v53  ;;  %v3545_v55 = vpop.permute.xlu1 %3544 }
 0x2ce   :  { %3185 = vmatpush1.bf16.msra.mxu1 %v3132_v54  ;;  %3216 = vmatprep.mubr.bf16.mxu1 %v5313_v22  ;;  %v3554_v14 = vsel %vm1592_vm12, %v3543_v47, %v3545_v55 }
 0x2cf   :  { %5114 = vmatprep.subr.msk.bf16.mxu1 %vm47_vm0, %v3335_v56  ;;  %v3331_v58 = vpop.permute.xlu0 %3330  ;;  %5112 = vmatmul.mubr.msk.bf16.vlgmr.msra.gmra.mrb[24].mxu0 %vm154_vm6, %v5913_v15  ;;  %v3568_v21 = vsel %vm47_vm0, %v3554_v14, 0 }
 0x2d0   :  { %3403 = vmatpush1.bf16.msra.mxu0 %v3350_v59  ;;  %3434 = vmatprep.mubr.bf16.mxu0 %v5313_v22  ;;  %v3338_v6 = vsel %vm1373_vm11, %v3329_v52, %v3331_v58 }
 0x2d1   :  { %5121 = vmatprep.subr.msk.bf16.mxu0 %vm47_vm0, %v3553_v60  ;;  %v3333_v61 = vpop.permute.xlu1 %3332  ;;  %v3356_v9 = vsel %vm47_vm0, %v3338_v6, 0 }
 0x2d2   :  { %v3339_v3 = vsel %vm1373_vm11, %v3331_v58, %v3333_v61 }
 0x2d3   :  { %v3547_v63 = vpop.permute.xlu0 %3546 }
 0x2d4   :  { %v3555_v10 = vsel %vm1592_vm12, %v3545_v55, %v3547_v63 }
 0x2d5   :  { %5110 = vmatmul.mubr.msk.bf16.vlgmr.msra.gmra.mrb[52].mxu1 %vm154_vm6, %v5913_v15  ;;  %v3502_v2 = vpop.permute.xlu1 %3501 }
 0x2d6   :  { %3362 = vmatpush1.bf16.msra.mxu1 %v3344_v1  ;;  %3393 = vmatprep.mubr.bf16.mxu1 %v5313_v22 }
 0x2d7   :  { %5118 = vmatprep.subr.msk.bf16.mxu1 %vm47_vm0, %v3339_v3  ;;  %v3757_v4 = vpop.permute.xlu0 %3756  ;;  %5117 = vmatmul.mubr.msk.bf16.vlgmr.msra.gmra.mrb[28].mxu0 %vm154_vm6, %v5928_v31 }
 0x2d8   :  { %3580 = vmatpush1.bf16.msra.mxu0 %v3562_v5  ;;  %3611 = vmatprep.mubr.bf16.mxu0 %v5313_v22 }
 0x2d9   :  { %v3759_v20 = vpop.permute.xlu1 %3758 }
 0x2da   :  { %v3770_v27 = vsel %vm1811_vm13, %v3757_v4, %v3759_v20 }
 0x2db   :  { %v3761_v8 = vpop.permute.xlu0 %3760  ;;  %v3780_v43 = vsel %vm47_vm0, %v3770_v27, 0 }
 0x2dc   :  { %v3771_v24 = vsel %vm1811_vm13, %v3759_v20, %v3761_v8 }
 0x2dd   :  { %5115 = vmatmul.mubr.msk.bf16.vlgmr.msra.gmra.mrb[56].mxu1 %vm154_vm6, %v5928_v31  ;;  %v3720_v26 = vpop.permute.xlu1 %3719 }
 0x2de   :  { %3444 = vmatpush1.bf16.msra.mxu1 %v3356_v9  ;;  %3475 = vmatprep.mubr.bf16.mxu1 %v5313_v22 }
 0x2df   :  { %5123 = vmatprep.subr.msk.bf16.mxu1 %vm47_vm0, %v3555_v10  ;;  %v3549_v11 = vpop.permute.xlu0 %3548  ;;  %5122 = vmatmul.mubr.msk.bf16.vlgmr.msra.gmra.mrb[32].mxu0 %vm154_vm6, %v3502_v2 }
 0x2e0   :  { %v3556_v12 = vsel %vm1592_vm12, %v3547_v63, %v3549_v11  ;;  %3693 = vmatprep.mubr.bf16.mxu0 %v5313_v22 }
 0x2e1   :  { %v3551_v13 = vpop.permute.xlu1 %3550  ;;  %v3574_v18 = vsel %vm47_vm0, %v3556_v12, 0 }
 0x2e2   :  { %v3557_v16 = vsel %vm1592_vm12, %v3549_v11, %v3551_v13 }
 0x2e3   :  { %v3763_v17 = vpop.permute.xlu0 %3762  ;;  %5125 = vmatprep.subr.msk.bf16.mxu0 %vm47_vm0, %v3557_v16 }
 0x2e4   :  { %3662 = vmatpush1.bf16.msra.mxu0 %v3574_v18  ;;  %v3772_v19 = vsel %vm1811_vm13, %v3761_v8, %v3763_v17 }
 0x2e5   :  { %5119 = vmatmul.mubr.msk.bf16.vlgmr.msra.gmra.mrb[60].mxu1 %vm154_vm6, %v5928_v31  ;;  %v3765_v23 = vpop.permute.xlu1 %3764  ;;  %v3786_v15 = vsel %vm47_vm0, %v3772_v19, 0 }
 0x2e6   :  { %3621 = vmatpush1.bf16.msra.mxu1 %v3568_v21  ;;  %v3773_v25 = vsel %vm1811_vm13, %v3763_v17, %v3765_v23  ;;  %3652 = vmatprep.mubr.bf16.mxu1 %v5313_v22 }
 0x2e7   :  { %5128 = vmatprep.subr.msk.bf16.mxu1 %vm47_vm0, %v3771_v24  ;;  %5126 = vmatmul.mubr.msk.bf16.vlgmr.msra.gmra.mrb[36].mxu0 %vm154_vm6, %v3502_v2  ;;  %v3767_v29 = vpop.permute.xlu0 %3766 }
 0x2e8   :  { %5130 = vmatprep.subr.msk.bf16.mxu0 %vm47_vm0, %v3773_v25  ;;  %3870 = vmatprep.mubr.bf16.mxu0 %v5313_v22  ;;  %v3774_v50 = vsel %vm1811_vm13, %v3765_v23, %v3767_v29 }
 0x2e9   :  { %3839 = vmatpush1.bf16.msra.mxu0 %v3786_v15  ;;  %v3769_v28 = vpop.permute.xlu1 %3768  ;;  %v3792_v48 = vsel %vm47_vm0, %v3774_v50, 0 }
 0x2ea   :  { %v3775_v30 = vsel %vm1811_vm13, %v3767_v29, %v3769_v28 }
 0x2ed   :  { %5124 = vmatmul.mubr.msk.bf16.vlgmr.msra.gmra.mrb[64].mxu1 %vm154_vm6, %v3502_v2 }
 0x2ee   :  { %3798 = vmatpush1.bf16.msra.mxu1 %v3780_v43  ;;  %3829 = vmatprep.mubr.bf16.mxu1 %v5313_v22 }
 0x2ef   :  { %5132 = vmatprep.subr.msk.bf16.mxu1 %vm47_vm0, %v3775_v30  ;;  %5131 = vmatmul.mubr.msk.bf16.vlgmr.msra.gmra.mrb[40].mxu0 %vm154_vm6, %v3720_v26  ;;  %vm3990_vm0 = vcmask 122880  }
 0x2f5   :  { %5129 = vmatmul.mubr.msk.bf16.vlgmr.msra.gmra.mrb[68].mxu1 %vm154_vm6, %v3720_v26 }
 0x2f6   :  { %3880 = vmatpush1.bf16.msra.mxu1 %v3792_v48  ;;  %3911 = vmatprep.mubr.bf16.mxu1 %v5313_v22 }
 0x2fd   :  { %5133 = vmatmul.mubr.msk.bf16.vlgmr.msra.gmra.mrb[72].mxu1 %vm154_vm6, %v3720_v26 }
 0x348   :  { %v2175_v40 = vpop.f32.mrb[4].mxu1 }
 0x349   :  { %v2177_v31 = vpop.f32.mrb[5].mxu1 }
 0x34a   :  { %v2179_v41 = vpop.f32.mrb[6].mxu1 }
 0x34b   :  { %v2180_v57 = vpop.f32.mrb[7].mxu1 }
 0x350   :  { %v2216_v32 = vpop.f32.mrb[8].mxu1 }
 0x351   :  { %v2218_v52 = vpop.f32.mrb[9].mxu1 }
 0x352   :  { %v2220_v33 = vpop.f32.mrb[10].mxu1 }
 0x353   :  { %v2221_v36 = vpop.f32.mrb[11].mxu1 }
 0x358   :  { %v2257_v34 = vpop.f32.mrb[12].mxu1 }
 0x359   :  { %v2259_v35 = vpop.f32.mrb[13].mxu1 }
 0x35a   :  { %v2261_v37 = vpop.f32.mrb[14].mxu1 }
 0x35b   :  { %v2262_v42 = vpop.f32.mrb[15].mxu1 }
 0x360   :  { %v2339_v44 = vpop.f32.mrb[16].mxu1 }
 0x361   :  { %v2340_v45 = vadd.f32 %v2339_v44, %v2175_v40  ;;  %v2341_v46 = vpop.f32.mrb[17].mxu1 }
 0x362   :  { %v2342_v47 = vadd.f32 %v2341_v46, %v2177_v31  ;;  %v2343_v49 = vpop.f32.mrb[18].mxu1 }
 0x363   :  { %v2344_v22 = vpop.f32.mrb[19].mxu1 }
 0x368   :  { %v2380_v51 = vpop.f32.mrb[20].mxu1 }
 0x369   :  { %v2381_v53 = vadd.f32 %v2380_v51, %v2216_v32  ;;  %v2382_v54 = vpop.f32.mrb[21].mxu1 }
 0x36a   :  { %v2383_v55 = vadd.f32 %v2382_v54, %v2218_v52  ;;  %v2384_v56 = vpop.f32.mrb[22].mxu1 }
 0x36b   :  { %v2385_v58 = vpop.f32.mrb[23].mxu1 }
 0x370   :  { %v2421_v59 = vpop.f32.mrb[24].mxu1 }
 0x371   :  { %v2422_v60 = vadd.f32 %v2421_v59, %v2257_v34  ;;  %v2423_v61 = vpop.f32.mrb[25].mxu1 }
 0x372   :  { %v2424_v62 = vadd.f32 %v2423_v61, %v2259_v35  ;;  %v2425_v63 = vpop.f32.mrb[26].mxu1 }
 0x373   :  { %v2426_v0 = vpop.f32.mrb[27].mxu1 }
 0x377   :  { %v2769_v1 = vpop.f32.mrb[8].mxu0 }
 0x378   :  { %v2551_v2 = vpop.f32.mrb[28].mxu1  ;;  %v2771_v3 = vpop.f32.mrb[9].mxu0 }
 0x379   :  { %v2640_v4 = vadd.f32 %v2551_v2, %v2340_v45  ;;  %v2553_v5 = vpop.f32.mrb[29].mxu1  ;;  %v2773_v20 = vpop.f32.mrb[10].mxu0 }
 0x37a   :  { %v2641_v6 = vadd.f32 %v2553_v5, %v2342_v47  ;;  %v2555_v8 = vpop.f32.mrb[30].mxu1  ;;  %v2774_v9 = vpop.f32.mrb[11].mxu0 }
 0x37b   :  { %v2556_v26 = vpop.f32.mrb[31].mxu1  ;;  %v2858_v10 = vadd.f32 %v2769_v1, %v2640_v4 }
 0x37c   :  { %v2859_v11 = vadd.f32 %v2771_v3, %v2641_v6 }
 0x380   :  { %v2592_v12 = vpop.f32.mrb[32].mxu1 }
 0x381   :  { %v2642_v13 = vadd.f32 %v2592_v12, %v2381_v53  ;;  %v2594_v14 = vpop.f32.mrb[33].mxu1 }
 0x382   :  { %v2643_v16 = vadd.f32 %v2594_v14, %v2383_v55  ;;  %v2596_v17 = vpop.f32.mrb[34].mxu1 }
 0x383   :  { %v2597_v18 = vpop.f32.mrb[35].mxu1 }
 0x388   :  { %v2633_v19 = vpop.f32.mrb[36].mxu1 }
 0x389   :  { %v2644_v21 = vadd.f32 %v2633_v19, %v2422_v60  ;;  %v2635_v23 = vpop.f32.mrb[37].mxu1 }
 0x38a   :  { %v2645_v24 = vadd.f32 %v2635_v23, %v2424_v62  ;;  %v2637_v25 = vpop.f32.mrb[38].mxu1  ;;  %v2851_v15 = vpop.f32.mrb[12].mxu0 }
 0x38b   :  { %v2862_v27 = vadd.f32 %v2851_v15, %v2644_v21  ;;  %v2638_v28 = vpop.f32.mrb[39].mxu1  ;;  %v2853_v29 = vpop.f32.mrb[13].mxu0 }
 0x38c   :  { %v2863_v43 = vadd.f32 %v2853_v29, %v2645_v24  ;;  %v2855_v30 = vpop.f32.mrb[14].mxu0 }
 0x38d   :  { %v2856_v50 = vpop.f32.mrb[15].mxu0 }
 0x390   :  { %v2810_v48 = vpop.f32.mrb[40].mxu1 }
 0x391   :  { %v2860_v40 = vadd.f32 %v2810_v48, %v2642_v13  ;;  %v2812_v31 = vpop.f32.mrb[41].mxu1 }
 0x392   :  { %v2861_v41 = vadd.f32 %v2812_v31, %v2643_v16  ;;  %v2814_v57 = vpop.f32.mrb[42].mxu1  ;;  %v3000_v32 = vpop.f32.mrb[16].mxu0 }
 0x393   :  { %v3050_v52 = vadd.f32 %v3000_v32, %v2860_v40  ;;  %v2815_v33 = vpop.f32.mrb[43].mxu1  ;;  %v3002_v36 = vpop.f32.mrb[17].mxu0 }
 0x394   :  { %v3051_v34 = vadd.f32 %v3002_v36, %v2861_v41  ;;  %v3004_v35 = vpop.f32.mrb[18].mxu0 }
 0x395   :  { %v3005_v37 = vpop.f32.mrb[19].mxu0 }
 0x396   :  { %v5330_v37 = vmov 1966171168  }
 0x398   :  { %v2959_v42 = vpop.f32.mrb[44].mxu1 }
 0x399   :  { %v3048_v44 = vadd.f32 %v2959_v42, %v2858_v10  ;;  %v2961_v45 = vpop.f32.mrb[45].mxu1  ;;  %v3939_v42 = vunpack.c.l.s4 %v5330_v37 }
 0x39a   :  { %v3049_v46 = vadd.f32 %v2961_v45, %v2859_v11  ;;  %v2963_v47 = vpop.f32.mrb[46].mxu1  ;;  %v3177_v49 = vpop.f32.mrb[20].mxu0 }
 0x39b   :  { %v3266_v22 = vadd.f32 %v3177_v49, %v3048_v44  ;;  %v2964_v51 = vpop.f32.mrb[47].mxu1  ;;  %v3179_v53 = vpop.f32.mrb[21].mxu0  ;;  %v3940_v47 = vunpack.c.0.s8 %v3939_v42 }
 0x39c   :  { %v3267_v54 = vadd.f32 %v3179_v53, %v3049_v46  ;;  %v3181_v55 = vpop.f32.mrb[22].mxu0  ;;  %v3927_v53 = vld [vmem:[%s6538_s0 + $0x8] sm:$0xf] }
 0x39d   :  { %v3182_v56 = vpop.f32.mrb[23].mxu0 }
 0x3a0   :  { %v3041_v58 = vpop.f32.mrb[48].mxu1 }
 0x3a1   :  { %v3052_v59 = vadd.f32 %v3041_v58, %v2862_v27  ;;  %v3043_v60 = vpop.f32.mrb[49].mxu1  ;;  %v6021_v58 = vld [vmem:[%s6538_s0 + $0xc] sm:$0xff] }
 0x3a2   :  { %v3053_v61 = vadd.f32 %v3043_v60, %v2863_v43  ;;  %v3045_v62 = vpop.f32.mrb[50].mxu1  ;;  %v3259_v63 = vpop.f32.mrb[24].mxu0 }
 0x3a3   :  { %v3270_v0 = vadd.f32 %v3259_v63, %v3052_v59  ;;  %v3046_v1 = vpop.f32.mrb[51].mxu1  ;;  %v3261_v2 = vpop.f32.mrb[25].mxu0  ;;  %v6024_v62 = vsub.s32 %v3940_v47, %v5380_v7 }
 0x3a4   :  { %v3271_v3 = vadd.f32 %v3261_v2, %v3053_v61  ;;  %v3263_v4 = vpop.f32.mrb[26].mxu0 }
 0x3a5   :  { %v3264_v5 = vpop.f32.mrb[27].mxu0 }
 0x3a8   :  { %v3218_v20 = vpop.f32.mrb[52].mxu1 }
 0x3a9   :  { %v3268_v6 = vadd.f32 %v3218_v20, %v3050_v52  ;;  %v3220_v8 = vpop.f32.mrb[53].mxu1 }
 0x3aa   :  { %v3269_v9 = vadd.f32 %v3220_v8, %v3051_v34  ;;  %v3222_v26 = vpop.f32.mrb[54].mxu1  ;;  %v3436_v10 = vpop.f32.mrb[28].mxu0 }
 0x3ab   :  { %v3486_v11 = vadd.f32 %v3436_v10, %v3268_v6  ;;  %v3223_v12 = vpop.f32.mrb[55].mxu1  ;;  %v3438_v13 = vpop.f32.mrb[29].mxu0 }
 0x3ac   :  { %v3487_v14 = vadd.f32 %v3438_v13, %v3269_v9  ;;  %v3440_v16 = vpop.f32.mrb[30].mxu0 }
 0x3ad   :  { %v3441_v17 = vpop.f32.mrb[31].mxu0 }
 0x3b0   :  { %v3395_v18 = vpop.f32.mrb[56].mxu1 }
 0x3b1   :  { %v3484_v19 = vadd.f32 %v3395_v18, %v3266_v22  ;;  %v3397_v21 = vpop.f32.mrb[57].mxu1 }
 0x3b2   :  { %v3485_v23 = vadd.f32 %v3397_v21, %v3267_v54  ;;  %v3399_v24 = vpop.f32.mrb[58].mxu1  ;;  %v3613_v25 = vpop.f32.mrb[32].mxu0 }
 0x3b3   :  { %v3702_v15 = vadd.f32 %v3613_v25, %v3484_v19  ;;  %v3400_v27 = vpop.f32.mrb[59].mxu1  ;;  %v3615_v28 = vpop.f32.mrb[33].mxu0 }
 0x3b4   :  { %v3703_v29 = vadd.f32 %v3615_v28, %v3485_v23  ;;  %v3617_v43 = vpop.f32.mrb[34].mxu0 }
 0x3b5   :  { %v3618_v30 = vpop.f32.mrb[35].mxu0 }
 0x3b8   :  { %v3477_v50 = vpop.f32.mrb[60].mxu1 }
 0x3b9   :  { %v3488_v48 = vadd.f32 %v3477_v50, %v3270_v0  ;;  %v3479_v40 = vpop.f32.mrb[61].mxu1  ;;  %v3926_v0 = vld [vmem:[%s6538_s0] sm:$0xff] }
 0x3ba   :  { %v3489_v31 = vadd.f32 %v3479_v40, %v3271_v3  ;;  %v3481_v41 = vpop.f32.mrb[62].mxu1  ;;  %v3695_v57 = vpop.f32.mrb[36].mxu0  ;;  %v3929_v5 = vcombine.high %v3926_v0, %v3926_v0 }
 0x3bb   :  { %v3706_v32 = vadd.f32 %v3695_v57, %v3488_v48  ;;  %v3482_v52 = vpop.f32.mrb[63].mxu1  ;;  %v3697_v33 = vpop.f32.mrb[37].mxu0 }
 0x3bc   :  { %v3707_v36 = vadd.f32 %v3697_v33, %v3489_v31  ;;  %v3699_v34 = vpop.f32.mrb[38].mxu0 }
 0x3bd   :  { %v3700_v35 = vpop.f32.mrb[39].mxu0  ;;  %v4460_v34 = vcombine.high %v6021_v58, %v6021_v58 }
 0x3c0   :  { %v3654_v44 = vpop.f32.mrb[64].mxu1 }
 0x3c1   :  { %v3704_v45 = vadd.f32 %v3654_v44, %v3486_v11  ;;  %v3656_v46 = vpop.f32.mrb[65].mxu1 }
 0x3c2   :  { %v3705_v49 = vadd.f32 %v3656_v46, %v3487_v14  ;;  %v3658_v22 = vpop.f32.mrb[66].mxu1  ;;  %v3872_v51 = vpop.f32.mrb[40].mxu0 }
 0x3c3   :  { %v3922_v54 = vadd.f32 %v3872_v51, %v3704_v45  ;;  %v3659_v55 = vpop.f32.mrb[67].mxu1  ;;  %v3874_v56 = vpop.f32.mrb[41].mxu0  ;;  %v5135_v45 = vld [vmem:[%s6538_s0 + $0x14] sm:$0xf]  ;;  %s5333_s0 = smov 91  }
 0x3c4   :  { %v3923_v59 = vadd.f32 %v3874_v56, %v3705_v49  ;;  %v3876_v60 = vpop.f32.mrb[42].mxu0 }
 0x3c5   :  { %v3933_v61 = vadd.f32 %v3927_v53, %v3922_v54  ;;  %v3877_v63 = vpop.f32.mrb[43].mxu0 }
 0x3c6   :  { %v6030_v1 = vadd.f32 %v6021_v58, %v3923_v59 }
 0x3c7   :  { %v3936_v2 = vmax.f32 %v3933_v61, 0.0 }
 0x3c8   :  { %v4465_v3 = vmax.f32 %v6030_v1, 0.0  ;;  %v3831_v4 = vpop.f32.mrb[68].mxu1 }
 0x3c9   :  { %v4391_v20 = vrot.slane %v3936_v2, %v6024_v62  ;;  %v3920_v6 = vadd.f32 %v3831_v4, %v3702_v15  ;;  %v3833_v8 = vpop.f32.mrb[69].mxu1 }
 0x3ca   :  { %v3921_v9 = vadd.f32 %v3833_v8, %v3703_v29  ;;  %v3835_v7 = vpop.f32.mrb[70].mxu1  ;;  %v4475_v11 = vrot.slane %v4465_v3, %v6024_v62 }
 0x3cb   :  { %v4392_v26 = vcombine.high %v4391_v20, %v4391_v20  ;;  %v6035_v10 = vrot.slane %v4391_v20, %v6024_v62  ;;  %v3931_v12 = vadd.f32 %v3926_v0, %v3920_v6  ;;  %v3836_v13 = vpop.f32.mrb[71].mxu1 }
 0x3cc   :  { %v3932_v14 = vadd.f32 %v3929_v5, %v3921_v9  ;;  %v4476_v21 = vcombine.high %v4475_v11, %v4475_v11  ;;  %v6048_v25 = vrot.slane %v4475_v11, %v6024_v62 }
 0x3cd   :  { %v6039_v16 = vrot.slane %v4392_v26, %v6024_v62  ;;  %v3934_v17 = vmax.f32 %v3931_v12, 0.0  ;;  %v4412_v18 = vrot.slane %v6035_v10, %v5694_v38  ;;  %v4407_v13 = vcombine.high %v6035_v10, %v6035_v10 }
 0x3ce   :  { %v3935_v19 = vmax.f32 %v3932_v14, 0.0  ;;  %v6057_v57 = vrot.slane %v4476_v21, %v6024_v62  ;;  %v4496_v42 = vrot.slane %v6048_v25, %v5694_v38 }
 0x3cf   :  { %v3944_v23 = vrot.slane %v3934_v17, %v6024_v62  ;;  %4425 = vrot.lane.b32.xlu0 %v4412_v18, %s5331_s26  ;;  %v4416_v24 = vrot.slane %v6039_v16, %v5694_v38  ;;  %v4408_v14 = vcombine.high %v6039_v16, %v6039_v16 }
 0x3d0   :  { %v4076_v15 = vcombine.low %v3934_v17, %v3935_v19  ;;  %v3913_v27 = vpop.f32.mrb[72].mxu1  ;;  %v4168_v43 = vrot.slane %v3935_v19, %v6024_v62  ;;  %v4299_v30 = vcombine.low %v3935_v19, %v3936_v2  ;;  %v4500_v49 = vrot.slane %v6057_v57, %v5694_v38 }
 0x3d1   :  { %v3945_v28 = vcombine.high %v3944_v23, %v3944_v23  ;;  %v6051_v29 = vrot.slane %v3944_v23, %v6024_v62  ;;  %4427 = vrot.lane.b32.xlu1 %v4416_v24, %s5331_s26  ;;  %v3915_v50 = vpop.f32.mrb[73].mxu1  ;;  %v3924_v40 = vadd.f32 %v3913_v27, %v3706_v32  ;;  %v4420_v17 = vrot.slane %v4407_v13, %v5694_v38 }
 0x3d2   :  { %v4083_v48 = vrot.slane %v4076_v15, %v6024_v62  ;;  %v3925_v31 = vadd.f32 %v3915_v50, %v3707_v36  ;;  %v3917_v41 = vpop.f32.mrb[74].mxu1  ;;  %v4169_v33 = vcombine.high %v4168_v43, %v4168_v43  ;;  %v6069_v32 = vrot.slane %v4168_v43, %v6024_v62 }
 0x3d3   :  { %v6060_v52 = vrot.slane %v3945_v28, %v6024_v62  ;;  %4441 = vrot.lane.b32.xlu0 %v4412_v18, %s5332_s28  ;;  %v3918_v35 = vpop.f32.mrb[75].mxu1  ;;  %v4306_v36 = vrot.slane %v4299_v30, %v6024_v62  ;;  %v4463_v51 = vadd.f32 %v4460_v34, %v3924_v40  ;;  %v4491_v18 = vcombine.high %v6048_v25, %v6048_v25 }
 0x3d4   :  { %v6066_v37 = vrot.slane %v4083_v48, %v6024_v62  ;;  %v6075_v44 = vrot.slane %v4169_v33, %v6024_v62  ;;  %v4084_v46 = vcombine.high %v4083_v48, %v4083_v48  ;;  %v4464_v53 = vadd.f32 %v5135_v45, %v3925_v31 }
 0x3d5   :  { %4443 = vrot.lane.b32.xlu1 %v4416_v24, %s5332_s28  ;;  %v6082_v47 = vrot.slane %v4306_v36, %v6024_v62  ;;  %v4307_v22 = vcombine.high %v4306_v36, %v4306_v36  ;;  %v4466_v54 = vmax.f32 %v4463_v51, 0.0  ;;  %v4492_v10 = vcombine.high %v6057_v57, %v6057_v57 }
 0x3d6   :  { %v4467_v55 = vmax.f32 %v4464_v53, 0.0  ;;  %v6089_v56 = vrot.slane %v4084_v46, %v6024_v62  ;;  %v4504_v16 = vrot.slane %v4491_v18, %v5694_v38  ;;  %v3965_v21 = vrot.slane %v6051_v29, %v5694_v38 }
 0x3d7   :  { %4509 = vrot.lane.b32.xlu0 %v4496_v42, %s5328_s14  ;;  %v4607_v58 = vcombine.low %v4465_v3, %v4466_v54  ;;  %v4698_v59 = vrot.slane %v4466_v54, %v6024_v62  ;;  %v6094_v60 = vrot.slane %v4307_v22, %v6024_v62  ;;  %v4508_v19 = vrot.slane %v4492_v10, %v5694_v38 }
 0x3d8   :  { %v4829_v61 = vcombine.low %v4466_v54, %v4467_v55  ;;  %v4920_v63 = vrot.slane %v4467_v55, %v6024_v62  ;;  %v3969_v23 = vrot.slane %v6060_v52, %v5694_v38  ;;  %v4189_v24 = vrot.slane %v6069_v32, %v5694_v38 }
 0x3d9   :  { %4511 = vrot.lane.b32.xlu1 %v4500_v49, %s5328_s14  ;;  %v4614_v0 = vrot.slane %v4607_v58, %v6024_v62  ;;  %v4699_v1 = vcombine.high %v4698_v59, %v4698_v59  ;;  %v6099_v2 = vrot.slane %v4698_v59, %v6024_v62  ;;  %v4108_v25 = vrot.slane %v6066_v37, %v5697_v39 }
 0x3da   :  { %v4836_v3 = vrot.slane %v4829_v61, %v6024_v62  ;;  %v4921_v4 = vcombine.high %v4920_v63, %v4920_v63  ;;  %v6104_v5 = vrot.slane %v4920_v63, %v6024_v62  ;;  %v4193_v15 = vrot.slane %v6075_v44, %v5694_v38 }
 0x3db   :  { %4526 = vrot.lane.b32.xlu0 %v4496_v42, %s5333_s0  ;;  %v6107_v20 = vrot.slane %v4614_v0, %v6024_v62  ;;  %v6110_v6 = vrot.slane %v4699_v1, %v6024_v62  ;;  %v4615_v26 = vcombine.high %v4614_v0, %v4614_v0  ;;  %v3960_v27 = vcombine.high %v6051_v29, %v6051_v29 }
 0x3dc   :  { %v4837_v8 = vcombine.high %v4836_v3, %v4836_v3  ;;  %v6114_v9 = vrot.slane %v4836_v3, %v6024_v62  ;;  %v6117_v7 = vrot.slane %v4921_v4, %v6024_v62  ;;  %v3961_v29 = vcombine.high %v6060_v52, %v6060_v52 }
 0x3dd   :  { %4528 = vrot.lane.b32.xlu1 %v4500_v49, %s5333_s0  ;;  %v6126_v12 = vrot.slane %v4615_v26, %v6024_v62  ;;  %v3973_v28 = vrot.slane %v3960_v27, %v5694_v38  ;;  %v4331_v50 = vrot.slane %v6082_v47, %v5697_v39  ;;  %v4184_v36 = vcombine.high %v6069_v32, %v6069_v32 }
 0x3de   :  { %v6121_v11 = vrot.slane %v4837_v8, %v6024_v62  ;;  %v4424_v62 = vrot.slane %v4408_v14, %v5694_v38  ;;  %v3977_v40 = vrot.slane %v3961_v29, %v5694_v38  ;;  %v4104_v45 = vrot.slane %v6066_v37, %v5694_v38 }
 0x3df   :  { %4542 = vrot.lane.b32.xlu0 %v4496_v42, %s5334_s5  ;;  %v4116_v54 = vrot.slane %v6089_v56, %v5697_v39  ;;  %v4099_v55 = vcombine.high %v6066_v37, %v6066_v37  ;;  %v4185_v59 = vcombine.high %v6075_v44, %v6075_v44  ;;  %v4327_v13 = vrot.slane %v6082_v47, %v5694_v38 }
 0x3e1   :  { %4544 = vrot.lane.b32.xlu1 %v4500_v49, %s5334_s5  ;;  %v4124_v63 = vrot.slane %v4099_v55, %v5697_v39  ;;  %v4201_v37 = vrot.slane %v4185_v59, %v5694_v38  ;;  %v4941_v59 = vrot.slane %v6104_v5, %v5694_v38 }
 0x3e3   :  { %4558 = vrot.lane.b32.xlu0 %v4496_v42, %s5335_s6 }
 0x3e5   :  { %4560 = vrot.lane.b32.xlu1 %v4500_v49, %s5335_s6 }
 0x3e7   :  { %4574 = vrot.lane.b32.xlu0 %v4496_v42, %s5336_s7 }
 0x3e9   :  { %4576 = vrot.lane.b32.xlu1 %v4500_v49, %s5336_s7 }
 0x3eb   :  { %4590 = vrot.lane.b32.xlu0 %v4496_v42, %s5316_s27 }
 0x3ed   :  { %4592 = vrot.lane.b32.xlu1 %v4500_v49, %s5316_s27  ;;  %v4197_v49 = vrot.slane %v4184_v36, %v5694_v38 }
 0x3ef   :  { %4429 = vrot.lane.b32.xlu0 %v4420_v17, %s5331_s26 }
 0x3f1   :  { %4431 = vrot.lane.b32.xlu1 %v4424_v62, %s5331_s26 }
 0x3f3   :  { %4445 = vrot.lane.b32.xlu0 %v4420_v17, %s5332_s28 }
 0x3f5   :  { %4447 = vrot.lane.b32.xlu1 %v4424_v62, %s5332_s28  ;;  %v4112_v62 = vrot.slane %v6089_v56, %v5694_v38 }
 0x3f7   :  { %4513 = vrot.lane.b32.xlu0 %v4504_v16, %s5328_s14 }
 0x3f9   :  { %4515 = vrot.lane.b32.xlu1 %v4508_v19, %s5328_s14 }
 0x3fb   :  { %4530 = vrot.lane.b32.xlu0 %v4504_v16, %s5333_s0 }
 0x3fd   :  { %4532 = vrot.lane.b32.xlu1 %v4508_v19, %s5333_s0 }
 0x3ff   :  { %4546 = vrot.lane.b32.xlu0 %v4504_v16, %s5334_s5 }
 0x401   :  { %4548 = vrot.lane.b32.xlu1 %v4508_v19, %s5334_s5 }
 0x403   :  { %4562 = vrot.lane.b32.xlu0 %v4504_v16, %s5335_s6 }
 0x405   :  { %4564 = vrot.lane.b32.xlu1 %v4508_v19, %s5335_s6 }
 0x407   :  { %4578 = vrot.lane.b32.xlu0 %v4504_v16, %s5336_s7 }
 0x409   :  { %4580 = vrot.lane.b32.xlu1 %v4508_v19, %s5336_s7 }
 0x40b   :  { %4594 = vrot.lane.b32.xlu0 %v4504_v16, %s5316_s27  ;;  %v4120_v16 = vrot.slane %v4099_v55, %v5694_v38 }
 0x40d   :  { %4596 = vrot.lane.b32.xlu1 %v4508_v19, %s5316_s27 }
 0x40f   :  { %3978 = vrot.lane.b32.xlu0 %v3965_v21, %s5328_s14 }
 0x411   :  { %3980 = vrot.lane.b32.xlu1 %v3969_v23, %s5328_s14 }
 0x413   :  { %3995 = vrot.lane.b32.xlu0 %v3965_v21, %s5333_s0 }
 0x415   :  { %3997 = vrot.lane.b32.xlu1 %v3969_v23, %s5333_s0 }
 0x417   :  { %4011 = vrot.lane.b32.xlu0 %v3965_v21, %s5334_s5 }
 0x419   :  { %4013 = vrot.lane.b32.xlu1 %v3969_v23, %s5334_s5 }
 0x41b   :  { %4027 = vrot.lane.b32.xlu0 %v3965_v21, %s5335_s6 }
 0x41d   :  { %4029 = vrot.lane.b32.xlu1 %v3969_v23, %s5335_s6 }
 0x41f   :  { %4043 = vrot.lane.b32.xlu0 %v3965_v21, %s5336_s7 }
 0x421   :  { %4045 = vrot.lane.b32.xlu1 %v3969_v23, %s5336_s7 }
 0x423   :  { %4059 = vrot.lane.b32.xlu0 %v3965_v21, %s5316_s27 }
 0x425   :  { %4061 = vrot.lane.b32.xlu1 %v3969_v23, %s5316_s27  ;;  %v4335_v23 = vrot.slane %v6094_v60, %v5694_v38 }
 0x427   :  { %4202 = vrot.lane.b32.xlu0 %v4189_v24, %s5324_s10 }
 0x429   :  { %4135 = vrot.lane.b32.xlu1 %v4108_v25, %s5319_s1 }
 0x42b   :  { %4218 = vrot.lane.b32.xlu0 %v4189_v24, %s5337_s8 }
 0x42d   :  { %4204 = vrot.lane.b32.xlu1 %v4193_v15, %s5324_s10 }
 0x42f   :  { %4234 = vrot.lane.b32.xlu0 %v4189_v24, %s5338_s9 }
 0x431   :  { %4220 = vrot.lane.b32.xlu1 %v4193_v15, %s5337_s8 }
 0x433   :  { %4250 = vrot.lane.b32.xlu0 %v4189_v24, %s5339_s11 }
 0x435   :  { %4236 = vrot.lane.b32.xlu1 %v4193_v15, %s5338_s9 }
 0x437   :  { %4266 = vrot.lane.b32.xlu0 %v4189_v24, %s5340_s12 }
 0x439   :  { %4252 = vrot.lane.b32.xlu1 %v4193_v15, %s5339_s11 }
 0x43b   :  { %4282 = vrot.lane.b32.xlu0 %v4189_v24, %s5341_s13  ;;  %v4322_v24 = vcombine.high %v6082_v47, %v6082_v47 }
 0x43d   :  { %4268 = vrot.lane.b32.xlu1 %v4193_v15, %s5340_s12  ;;  %v4347_v29 = vrot.slane %v4322_v24, %v5697_v39 }
 0x43f   :  { %3982 = vrot.lane.b32.xlu0 %v3973_v28, %s5328_s14 }
 0x441   :  { %v4426_v43 = vpop.permute.xlu0 %4425  ;;  %4284 = vrot.lane.b32.xlu1 %v4193_v15, %s5341_s13  ;;  %v4339_v15 = vrot.slane %v6094_v60, %v5697_v39 }
 0x442   :  { %4437 = vst.msk [vmem:[#allocation3 + $0xe] sm:$0x1] %vm3990_vm0, %v4426_v43  ;;  %v4100_v43 = vcombine.high %v6089_v56, %v6089_v56 }
 0x443   :  { %3999 = vrot.lane.b32.xlu0 %v3973_v28, %s5333_s0  ;;  %v4428_v30 = vpop.permute.xlu1 %4427 }
 0x444   :  { %4438 = vst.msk [vmem:[#allocation3 + $0x1e] sm:$0x1] %vm3990_vm0, %v4428_v30 }
 0x445   :  { %v4442_v48 = vpop.permute.xlu0 %4441  ;;  %4358 = vrot.lane.b32.xlu1 %v4331_v50, %s5342_s15  ;;  %v4128_v50 = vrot.slane %v4100_v43, %v5694_v38 }
 0x446   :  { %4453 = vst.msk [vmem:[#allocation3 + $0xf] sm:$0x1] %vm3990_vm0, %v4442_v48  ;;  %v4323_v48 = vcombine.high %v6094_v60, %v6094_v60 }
 0x447   :  { %4015 = vrot.lane.b32.xlu0 %v3973_v28, %s5334_s5  ;;  %v4444_v31 = vpop.permute.xlu1 %4443 }
 0x448   :  { %4454 = vst.msk [vmem:[#allocation3 + $0x1f] sm:$0x1] %vm3990_vm0, %v4444_v31  ;;  %v4355_v60 = vrot.slane %v4323_v48, %v5697_v39 }
 0x449   :  { %v4510_v41 = vpop.permute.xlu0 %4509  ;;  %3984 = vrot.lane.b32.xlu1 %v3977_v40, %s5328_s14 }
 0x44a   :  { %4522 = vst.msk [vmem:[#allocation3 + $0x40] sm:$0x1] %vm3990_vm0, %v4510_v41  ;;  %v4351_v41 = vrot.slane %v4323_v48, %v5694_v38 }
 0x44b   :  { %4031 = vrot.lane.b32.xlu0 %v3973_v28, %s5335_s6  ;;  %v4512_v57 = vpop.permute.xlu1 %4511 }
 0x44c   :  { %4523 = vst.msk [vmem:[#allocation3 + $0x50] sm:$0x1] %vm3990_vm0, %v4512_v57 }
 0x44d   :  { %v4527_v52 = vpop.permute.xlu0 %4526  ;;  %4001 = vrot.lane.b32.xlu1 %v3977_v40, %s5333_s0 }
 0x44e   :  { %4538 = vst.msk [vmem:[#allocation3 + $0x41] sm:$0x1] %vm3990_vm0, %v4527_v52  ;;  %v4719_v52 = vrot.slane %v6099_v2, %v5694_v38 }
 0x44f   :  { %4047 = vrot.lane.b32.xlu0 %v3973_v28, %s5336_s7  ;;  %v4529_v33 = vpop.permute.xlu1 %4528 }
 0x450   :  { %4539 = vst.msk [vmem:[#allocation3 + $0x51] sm:$0x1] %vm3990_vm0, %v4529_v33 }
 0x451   :  { %v4543_v34 = vpop.permute.xlu0 %4542  ;;  %4017 = vrot.lane.b32.xlu1 %v3977_v40, %s5334_s5 }
 0x452   :  { %4554 = vst.msk [vmem:[#allocation3 + $0x42] sm:$0x1] %vm3990_vm0, %v4543_v34 }
 0x453   :  { %4063 = vrot.lane.b32.xlu0 %v3973_v28, %s5316_s27  ;;  %v4545_v35 = vpop.permute.xlu1 %4544  ;;  %v4343_v28 = vrot.slane %v4322_v24, %v5694_v38 }
 0x454   :  { %4555 = vst.msk [vmem:[#allocation3 + $0x52] sm:$0x1] %vm3990_vm0, %v4545_v35  ;;  %v4639_v35 = vrot.slane %v6107_v20, %v5697_v39 }
 0x455   :  { %v4559_v42 = vpop.permute.xlu0 %4558  ;;  %4033 = vrot.lane.b32.xlu1 %v3977_v40, %s5335_s6 }
 0x456   :  { %4570 = vst.msk [vmem:[#allocation3 + $0x43] sm:$0x1] %vm3990_vm0, %v4559_v42  ;;  %v4723_v42 = vrot.slane %v6110_v6, %v5694_v38 }
 0x457   :  { %4133 = vrot.lane.b32.xlu0 %v4104_v45, %s5319_s1  ;;  %v4561_v46 = vpop.permute.xlu1 %4560 }
 0x458   :  { %4571 = vst.msk [vmem:[#allocation3 + $0x53] sm:$0x1] %vm3990_vm0, %v4561_v46 }
 0x459   :  { %v4575_v22 = vpop.permute.xlu0 %4574  ;;  %4049 = vrot.lane.b32.xlu1 %v3977_v40, %s5336_s7 }
 0x45a   :  { %4586 = vst.msk [vmem:[#allocation3 + $0x44] sm:$0x1] %vm3990_vm0, %v4575_v22 }
 0x45b   :  { %4206 = vrot.lane.b32.xlu0 %v4197_v49, %s5324_s10  ;;  %v4577_v32 = vpop.permute.xlu1 %4576 }
 0x45c   :  { %4587 = vst.msk [vmem:[#allocation3 + $0x54] sm:$0x1] %vm3990_vm0, %v4577_v32 }
 0x45d   :  { %v4591_v51 = vpop.permute.xlu0 %4590  ;;  %4065 = vrot.lane.b32.xlu1 %v3977_v40, %s5316_s27  ;;  %v4132_v40 = vrot.slane %v4100_v43, %v5697_v39  ;;  %s5343_s27 = smov [#allocation3]  }
 0x45e   :  { %4602 = vst.msk [vmem:[#allocation3 + $0x45] sm:$0x1] %vm3990_vm0, %v4591_v51 }
 0x45f   :  { %4222 = vrot.lane.b32.xlu0 %v4197_v49, %s5337_s8  ;;  %v4593_v53 = vpop.permute.xlu1 %4592 }
 0x460   :  { %4603 = vst.msk [vmem:[#allocation3 + $0x55] sm:$0x1] %vm3990_vm0, %v4593_v53 }
 0x461   :  { %v4430_v58 = vpop.permute.xlu0 %4429  ;;  %4139 = vrot.lane.b32.xlu1 %v4116_v54, %s5319_s1 }
 0x462   :  { %4439 = vst.msk [vmem:[#allocation3 + $0x2e] sm:$0x1] %vm3990_vm0, %v4430_v58 }
 0x463   :  { %4238 = vrot.lane.b32.xlu0 %v4197_v49, %s5338_s9  ;;  %v4432_v61 = vpop.permute.xlu1 %4431 }
 0x464   :  { %4440 = vst.msk [vmem:[#allocation3 + $0x3e] sm:$0x1] %vm3990_vm0, %v4432_v61 }
 0x465   :  { %v4446_v0 = vpop.permute.xlu0 %4445  ;;  %4143 = vrot.lane.b32.xlu1 %v4124_v63, %s5319_s1 }
 0x466   :  { %4455 = vst.msk [vmem:[#allocation3 + $0x2f] sm:$0x1] %vm3990_vm0, %v4446_v0 }
 0x467   :  { %4254 = vrot.lane.b32.xlu0 %v4197_v49, %s5339_s11  ;;  %v4448_v1 = vpop.permute.xlu1 %4447 }
 0x468   :  { %4456 = vst.msk [vmem:[#allocation3 + $0x3f] sm:$0x1] %vm3990_vm0, %v4448_v1  ;;  %v4714_v1 = vcombine.high %v6099_v2, %v6099_v2 }
 0x469   :  { %v4514_v44 = vpop.permute.xlu0 %4513  ;;  %4208 = vrot.lane.b32.xlu1 %v4201_v37, %s5324_s10 }
 0x46a   :  { %4524 = vst.msk [vmem:[#allocation3 + $0x60] sm:$0x1] %vm3990_vm0, %v4514_v44 }
 0x46b   :  { %4270 = vrot.lane.b32.xlu0 %v4197_v49, %s5340_s12  ;;  %v4516_v3 = vpop.permute.xlu1 %4515 }
 0x46c   :  { %4525 = vst.msk [vmem:[#allocation3 + $0x70] sm:$0x1] %vm3990_vm0, %v4516_v3  ;;  %v4635_v3 = vrot.slane %v6107_v20, %v5694_v38 }
 0x46d   :  { %v4531_v4 = vpop.permute.xlu0 %4530  ;;  %4224 = vrot.lane.b32.xlu1 %v4201_v37, %s5337_s8 }
 0x46e   :  { %4540 = vst.msk [vmem:[#allocation3 + $0x61] sm:$0x1] %vm3990_vm0, %v4531_v4 }
 0x46f   :  { %4286 = vrot.lane.b32.xlu0 %v4197_v49, %s5341_s13  ;;  %v4533_v8 = vpop.permute.xlu1 %4532 }
 0x470   :  { %4541 = vst.msk [vmem:[#allocation3 + $0x71] sm:$0x1] %vm3990_vm0, %v4533_v8  ;;  %v4945_v8 = vrot.slane %v6117_v7, %v5694_v38 }
 0x471   :  { %v4547_v26 = vpop.permute.xlu0 %4546  ;;  %4240 = vrot.lane.b32.xlu1 %v4201_v37, %s5338_s9 }
 0x472   :  { %4556 = vst.msk [vmem:[#allocation3 + $0x62] sm:$0x1] %vm3990_vm0, %v4547_v26  ;;  %v4727_v26 = vrot.slane %v4714_v1, %v5694_v38 }
 0x473   :  { %4356 = vrot.lane.b32.xlu0 %v4327_v13, %s5342_s15  ;;  %v4549_v14 = vpop.permute.xlu1 %4548 }
 0x474   :  { %4557 = vst.msk [vmem:[#allocation3 + $0x72] sm:$0x1] %vm3990_vm0, %v4549_v14 }
 0x475   :  { %v4563_v17 = vpop.permute.xlu0 %4562  ;;  %4256 = vrot.lane.b32.xlu1 %v4201_v37, %s5339_s11 }
 0x476   :  { %4572 = vst.msk [vmem:[#allocation3 + $0x63] sm:$0x1] %vm3990_vm0, %v4563_v17 }
 0x477   :  { %4137 = vrot.lane.b32.xlu0 %v4112_v62, %s5319_s1  ;;  %v4565_v18 = vpop.permute.xlu1 %4564  ;;  %v4647_v62 = vrot.slane %v6126_v12, %v5697_v39 }
 0x478   :  { %4573 = vst.msk [vmem:[#allocation3 + $0x73] sm:$0x1] %vm3990_vm0, %v4565_v18  ;;  %v4630_v18 = vcombine.high %v6107_v20, %v6107_v20 }
 0x479   :  { %v4579_v10 = vpop.permute.xlu0 %4578  ;;  %4272 = vrot.lane.b32.xlu1 %v4201_v37, %s5340_s12 }
 0x47a   :  { %4588 = vst.msk [vmem:[#allocation3 + $0x64] sm:$0x1] %vm3990_vm0, %v4579_v10 }
 0x47b   :  { %4141 = vrot.lane.b32.xlu0 %v4120_v16, %s5319_s1  ;;  %v4581_v19 = vpop.permute.xlu1 %4580  ;;  %v4715_v16 = vcombine.high %v6110_v6, %v6110_v6 }
 0x47c   :  { %4589 = vst.msk [vmem:[#allocation3 + $0x74] sm:$0x1] %vm3990_vm0, %v4581_v19 }
 0x47d   :  { %v4595_v21 = vpop.permute.xlu0 %4594  ;;  %4288 = vrot.lane.b32.xlu1 %v4201_v37, %s5341_s13  ;;  %v4861_v37 = vrot.slane %v6114_v9, %v5697_v39  ;;  %v4731_v20 = vrot.slane %v4715_v16, %v5694_v38 }
 0x47e   :  { %4604 = vst.msk [vmem:[#allocation3 + $0x65] sm:$0x1] %vm3990_vm0, %v4595_v21  ;;  %v4655_v21 = vrot.slane %v4630_v18, %v5697_v39 }
 0x47f   :  { %4360 = vrot.lane.b32.xlu0 %v4335_v23, %s5342_s15  ;;  %v4597_v25 = vpop.permute.xlu1 %4596 }
 0x480   :  { %4605 = vst.msk [vmem:[#allocation3 + $0x75] sm:$0x1] %vm3990_vm0, %v4597_v25 }
 0x481   :  { %v3979_v27 = vpop.permute.xlu0 %3978  ;;  %4362 = vrot.lane.b32.xlu1 %v4339_v15, %s5342_s15 }
 0x482   :  { %3991 = vst.msk [vmem:[#allocation3] sm:$0x1] %vm3990_vm0, %v3979_v27 }
 0x483   :  { %4364 = vrot.lane.b32.xlu0 %v4343_v28, %s5342_s15  ;;  %v3981_v47 = vpop.permute.xlu1 %3980  ;;  %v4936_v28 = vcombine.high %v6104_v5, %v6104_v5 }
 0x484   :  { %3992 = vst.msk [vmem:[#allocation3 + $0x10] sm:$0x1] %vm3990_vm0, %v3981_v47  ;;  %v4857_v47 = vrot.slane %v6114_v9, %v5694_v38 }
 0x485   :  { %v3996_v30 = vpop.permute.xlu0 %3995  ;;  %4366 = vrot.lane.b32.xlu1 %v4347_v29, %s5342_s15  ;;  %v4949_v5 = vrot.slane %v4936_v28, %v5694_v38 }
 0x486   :  { %4007 = vst.msk [vmem:[#allocation3 + $0x1] sm:$0x1] %vm3990_vm0, %v3996_v30 }
 0x487   :  { %4145 = vrot.lane.b32.xlu0 %v4128_v50, %s5319_s1  ;;  %v3998_v56 = vpop.permute.xlu1 %3997 }
 0x488   :  { %4008 = vst.msk [vmem:[#allocation3 + $0x11] sm:$0x1] %vm3990_vm0, %v3998_v56 }
 0x489   :  { %v4012_v31 = vpop.permute.xlu0 %4011  ;;  %4147 = vrot.lane.b32.xlu1 %v4132_v40, %s5319_s1  ;;  %v4643_v40 = vrot.slane %v6126_v12, %v5694_v38 }
 0x48a   :  { %4023 = vst.msk [vmem:[#allocation3 + $0x2] sm:$0x1] %vm3990_vm0, %v4012_v31 }
 0x48b   :  { %4368 = vrot.lane.b32.xlu0 %v4351_v41, %s5342_s15  ;;  %v4014_v57 = vpop.permute.xlu1 %4013 }
 0x48c   :  { %4024 = vst.msk [vmem:[#allocation3 + $0x12] sm:$0x1] %vm3990_vm0, %v4014_v57  ;;  %v4651_v57 = vrot.slane %v4630_v18, %v5694_v38 }
 0x48d   :  { %v4028_v33 = vpop.permute.xlu0 %4027  ;;  %4370 = vrot.lane.b32.xlu1 %v4355_v60, %s5342_s15 }
 0x48e   :  { %4039 = vst.msk [vmem:[#allocation3 + $0x3] sm:$0x1] %vm3990_vm0, %v4028_v33  ;;  %v4852_v33 = vcombine.high %v6114_v9, %v6114_v9 }
 0x48f   :  { %4732 = vrot.lane.b32.xlu0 %v4719_v52, %s5324_s10  ;;  %v4030_v34 = vpop.permute.xlu1 %4029 }
 0x490   :  { %4040 = vst.msk [vmem:[#allocation3 + $0x13] sm:$0x1] %vm3990_vm0, %v4030_v34  ;;  %v4873_v9 = vrot.slane %v4852_v33, %v5694_v38 }
 0x491   :  { %v4044_v36 = vpop.permute.xlu0 %4043  ;;  %4666 = vrot.lane.b32.xlu1 %v4639_v35, %s5319_s1  ;;  %v4865_v35 = vrot.slane %v6121_v11, %v5694_v38 }
 0x492   :  { %4055 = vst.msk [vmem:[#allocation3 + $0x4] sm:$0x1] %vm3990_vm0, %v4044_v36 }
 0x493   :  { %4748 = vrot.lane.b32.xlu0 %v4719_v52, %s5337_s8  ;;  %v4046_v45 = vpop.permute.xlu1 %4045 }
 0x494   :  { %4056 = vst.msk [vmem:[#allocation3 + $0x14] sm:$0x1] %vm3990_vm0, %v4046_v45  ;;  %v4937_v45 = vcombine.high %v6117_v7, %v6117_v7 }
 0x495   :  { %v4060_v46 = vpop.permute.xlu0 %4059  ;;  %4734 = vrot.lane.b32.xlu1 %v4723_v42, %s5324_s10 }
 0x496   :  { %4071 = vst.msk [vmem:[#allocation3 + $0x5] sm:$0x1] %vm3990_vm0, %v4060_v46 }
 0x497   :  { %4764 = vrot.lane.b32.xlu0 %v4719_v52, %s5338_s9  ;;  %v4062_v49 = vpop.permute.xlu1 %4061 }
 0x498   :  { %4072 = vst.msk [vmem:[#allocation3 + $0x15] sm:$0x1] %vm3990_vm0, %v4062_v49  ;;  %v4631_v49 = vcombine.high %v6126_v12, %v6126_v12 }
 0x499   :  { %v4203_v22 = vpop.permute.xlu0 %4202  ;;  %4750 = vrot.lane.b32.xlu1 %v4723_v42, %s5337_s8 }
 0x49a   :  { %4214 = vst.msk [vmem:[#allocation3 + $0x7] sm:$0x1] %vm3990_vm0, %v4203_v22 }
 0x49b   :  { %4780 = vrot.lane.b32.xlu0 %v4719_v52, %s5339_s11  ;;  %v6334_v32 = vpop.permute.xlu1 %4135 }
 0x49d   :  { %v4219_v51 = vpop.permute.xlu0 %4218  ;;  %4766 = vrot.lane.b32.xlu1 %v4723_v42, %s5338_s9 }
 0x49e   :  { %4230 = vst.msk [vmem:[#allocation3 + $0x8] sm:$0x1] %vm3990_vm0, %v4219_v51  ;;  %v4659_v51 = vrot.slane %v4631_v49, %v5694_v38 }
 0x49f   :  { %4796 = vrot.lane.b32.xlu0 %v4719_v52, %s5340_s12  ;;  %v4205_v53 = vpop.permute.xlu1 %4204 }
 0x4a0   :  { %4215 = vst.msk [vmem:[#allocation3 + $0x17] sm:$0x1] %vm3990_vm0, %v4205_v53  ;;  %v4853_v53 = vcombine.high %v6121_v11, %v6121_v11 }
 0x4a1   :  { %v4235_v54 = vpop.permute.xlu0 %4234  ;;  %4782 = vrot.lane.b32.xlu1 %v4723_v42, %s5339_s11 }
 0x4a2   :  { %4246 = vst.msk [vmem:[#allocation3 + $0x9] sm:$0x1] %vm3990_vm0, %v4235_v54  ;;  %v4663_v54 = vrot.slane %v4631_v49, %v5697_v39 }
 0x4a3   :  { %4812 = vrot.lane.b32.xlu0 %v4719_v52, %s5341_s13  ;;  %v4221_v55 = vpop.permute.xlu1 %4220  ;;  %v4869_v52 = vrot.slane %v6121_v11, %v5697_v39 }
 0x4a4   :  { %4231 = vst.msk [vmem:[#allocation3 + $0x18] sm:$0x1] %vm3990_vm0, %v4221_v55 }
 0x4a5   :  { %v4251_v58 = vpop.permute.xlu0 %4250  ;;  %4798 = vrot.lane.b32.xlu1 %v4723_v42, %s5340_s12 }
 0x4a6   :  { %4262 = vst.msk [vmem:[#allocation3 + $0xa] sm:$0x1] %vm3990_vm0, %v4251_v58  ;;  %v4881_v58 = vrot.slane %v4853_v53, %v5694_v38 }
 0x4a7   :  { %4954 = vrot.lane.b32.xlu0 %v4941_v59, %s5331_s26  ;;  %v4237_v61 = vpop.permute.xlu1 %4236 }
 0x4a8   :  { %4247 = vst.msk [vmem:[#allocation3 + $0x19] sm:$0x1] %vm3990_vm0, %v4237_v61  ;;  %v4885_v61 = vrot.slane %v4853_v53, %v5697_v39 }
 0x4a9   :  { %v4267_v63 = vpop.permute.xlu0 %4266  ;;  %4814 = vrot.lane.b32.xlu1 %v4723_v42, %s5341_s13  ;;  %v4877_v42 = vrot.slane %v4852_v33, %v5697_v39 }
 0x4aa   :  { %4278 = vst.msk [vmem:[#allocation3 + $0xb] sm:$0x1] %vm3990_vm0, %v4267_v63 }
 0x4ab   :  { %4970 = vrot.lane.b32.xlu0 %v4941_v59, %s5332_s28  ;;  %v4253_v0 = vpop.permute.xlu1 %4252 }
 0x4ac   :  { %4263 = vst.msk [vmem:[#allocation3 + $0x1a] sm:$0x1] %vm3990_vm0, %v4253_v0 }
 0x4ad   :  { %v4283_v44 = vpop.permute.xlu0 %4282  ;;  %4888 = vrot.lane.b32.xlu1 %v4861_v37, %s5342_s15 }
 0x4ae   :  { %4294 = vst.msk [vmem:[#allocation3 + $0xc] sm:$0x1] %vm3990_vm0, %v4283_v44 }
 0x4af   :  { %4664 = vrot.lane.b32.xlu0 %v4635_v3, %s5319_s1  ;;  %v4269_v4 = vpop.permute.xlu1 %4268 }
 0x4b0   :  { %4279 = vst.msk [vmem:[#allocation3 + $0x1b] sm:$0x1] %vm3990_vm0, %v4269_v4 }
 0x4b1   :  { %v3983_v13 = vpop.permute.xlu0 %3982  ;;  %4956 = vrot.lane.b32.xlu1 %v4945_v8, %s5331_s26 }
 0x4b2   :  { %3993 = vst.msk [vmem:[#allocation3 + $0x20] sm:$0x1] %vm3990_vm0, %v3983_v13 }
 0x4b3   :  { %4736 = vrot.lane.b32.xlu0 %v4727_v26, %s5324_s10  ;;  %v4285_v2 = vpop.permute.xlu1 %4284 }
 0x4b4   :  { %4295 = vst.msk [vmem:[#allocation3 + $0x1c] sm:$0x1] %vm3990_vm0, %v4285_v2 }
 0x4b5   :  { %v4000_v14 = vpop.permute.xlu0 %3999  ;;  %4972 = vrot.lane.b32.xlu1 %v4945_v8, %s5332_s28 }
 0x4b6   :  { %4009 = vst.msk [vmem:[#allocation3 + $0x21] sm:$0x1] %vm3990_vm0, %v4000_v14 }
 0x4b7   :  { %4752 = vrot.lane.b32.xlu0 %v4727_v26, %s5337_s8  ;;  %v6374_v17 = vpop.permute.xlu1 %4358 }
 0x4b9   :  { %v4016_v10 = vpop.permute.xlu0 %4015  ;;  %4670 = vrot.lane.b32.xlu1 %v4647_v62, %s5319_s1 }
 0x4ba   :  { %4025 = vst.msk [vmem:[#allocation3 + $0x22] sm:$0x1] %vm3990_vm0, %v4016_v10 }
 0x4bb   :  { %4768 = vrot.lane.b32.xlu0 %v4727_v26, %s5338_s9  ;;  %v3985_v19 = vpop.permute.xlu1 %3984 }
 0x4bc   :  { %3994 = vst.msk [vmem:[#allocation3 + $0x30] sm:$0x1] %vm3990_vm0, %v3985_v19 }
 0x4bd   :  { %v4032_v23 = vpop.permute.xlu0 %4031  ;;  %4674 = vrot.lane.b32.xlu1 %v4655_v21, %s5319_s1 }
 0x4be   :  { %4041 = vst.msk [vmem:[#allocation3 + $0x23] sm:$0x1] %vm3990_vm0, %v4032_v23 }
 0x4bf   :  { %4784 = vrot.lane.b32.xlu0 %v4727_v26, %s5339_s11  ;;  %v4002_v24 = vpop.permute.xlu1 %4001 }
 0x4c0   :  { %4010 = vst.msk [vmem:[#allocation3 + $0x31] sm:$0x1] %vm3990_vm0, %v4002_v24 }
 0x4c1   :  { %v4048_v6 = vpop.permute.xlu0 %4047  ;;  %4738 = vrot.lane.b32.xlu1 %v4731_v20, %s5324_s10 }
 0x4c2   :  { %4057 = vst.msk [vmem:[#allocation3 + $0x24] sm:$0x1] %vm3990_vm0, %v4048_v6 }
 0x4c3   :  { %4800 = vrot.lane.b32.xlu0 %v4727_v26, %s5340_s12  ;;  %v4018_v25 = vpop.permute.xlu1 %4017 }
 0x4c4   :  { %4026 = vst.msk [vmem:[#allocation3 + $0x32] sm:$0x1] %vm3990_vm0, %v4018_v25 }
 0x4c5   :  { %v4064_v15 = vpop.permute.xlu0 %4063  ;;  %4754 = vrot.lane.b32.xlu1 %v4731_v20, %s5337_s8 }
 0x4c6   :  { %4073 = vst.msk [vmem:[#allocation3 + $0x25] sm:$0x1] %vm3990_vm0, %v4064_v15 }
 0x4c7   :  { %4816 = vrot.lane.b32.xlu0 %v4727_v26, %s5341_s13  ;;  %v4034_v27 = vpop.permute.xlu1 %4033 }
 0x4c8   :  { %4042 = vst.msk [vmem:[#allocation3 + $0x33] sm:$0x1] %vm3990_vm0, %v4034_v27 }
 0x4c9   :  { %v4134_v43 = vpop.permute.xlu0 %4133  ;;  %4770 = vrot.lane.b32.xlu1 %v4731_v20, %s5338_s9 }
 0x4ca   :  { %v4150_v29 = vsel %vm745_vm9, %v4134_v43, %v6334_v32  ;;  %v4953_v32 = vrot.slane %v4937_v45, %v5694_v38 }
 0x4cb   :  { %4158 = vst.msk [vmem:[#allocation3 + $0x6] sm:$0x1] %vm3990_vm0, %v4150_v29  ;;  %4886 = vrot.lane.b32.xlu0 %v4857_v47, %s5342_s15  ;;  %v4050_v30 = vpop.permute.xlu1 %4049 }
 0x4cc   :  { %4058 = vst.msk [vmem:[#allocation3 + $0x34] sm:$0x1] %vm3990_vm0, %v4050_v30 }
 0x4cd   :  { %v4207_v50 = vpop.permute.xlu0 %4206  ;;  %4786 = vrot.lane.b32.xlu1 %v4731_v20, %s5339_s11 }
 0x4ce   :  { %4216 = vst.msk [vmem:[#allocation3 + $0x27] sm:$0x1] %vm3990_vm0, %v4207_v50 }
 0x4cf   :  { %4958 = vrot.lane.b32.xlu0 %v4949_v5, %s5331_s26  ;;  %v4066_v48 = vpop.permute.xlu1 %4065 }
 0x4d0   :  { %4074 = vst.msk [vmem:[#allocation3 + $0x35] sm:$0x1] %vm3990_vm0, %v4066_v48 }
 0x4d1   :  { %v4223_v56 = vpop.permute.xlu0 %4222  ;;  %4802 = vrot.lane.b32.xlu1 %v4731_v20, %s5340_s12 }
 0x4d2   :  { %4232 = vst.msk [vmem:[#allocation3 + $0x28] sm:$0x1] %vm3990_vm0, %v4223_v56 }
 0x4d3   :  { %4668 = vrot.lane.b32.xlu0 %v4643_v40, %s5319_s1  ;;  %v4140_v31 = vpop.permute.xlu1 %4139 }
 0x4d5   :  { %v4239_v41 = vpop.permute.xlu0 %4238  ;;  %4818 = vrot.lane.b32.xlu1 %v4731_v20, %s5341_s13 }
 0x4d6   :  { %4248 = vst.msk [vmem:[#allocation3 + $0x29] sm:$0x1] %vm3990_vm0, %v4239_v41 }
 0x4d7   :  { %4672 = vrot.lane.b32.xlu0 %v4651_v57, %s5319_s1  ;;  %v4144_v60 = vpop.permute.xlu1 %4143 }
 0x4d9   :  { %v4255_v34 = vpop.permute.xlu0 %4254  ;;  %4892 = vrot.lane.b32.xlu1 %v4869_v52, %s5342_s15 }
 0x4da   :  { %4264 = vst.msk [vmem:[#allocation3 + $0x2a] sm:$0x1] %vm3990_vm0, %v4255_v34 }
 0x4db   :  { %4890 = vrot.lane.b32.xlu0 %v4865_v35, %s5342_s15  ;;  %v4209_v36 = vpop.permute.xlu1 %4208 }
 0x4dc   :  { %4217 = vst.msk [vmem:[#allocation3 + $0x37] sm:$0x1] %vm3990_vm0, %v4209_v36 }
 0x4dd   :  { %v4271_v46 = vpop.permute.xlu0 %4270  ;;  %4896 = vrot.lane.b32.xlu1 %v4877_v42, %s5342_s15 }
 0x4de   :  { %4280 = vst.msk [vmem:[#allocation3 + $0x2b] sm:$0x1] %vm3990_vm0, %v4271_v46 }
 0x4df   :  { %4894 = vrot.lane.b32.xlu0 %v4873_v9, %s5342_s15  ;;  %v4225_v22 = vpop.permute.xlu1 %4224 }
 0x4e0   :  { %4233 = vst.msk [vmem:[#allocation3 + $0x38] sm:$0x1] %vm3990_vm0, %v4225_v22 }
 0x4e1   :  { %v4287_v7 = vpop.permute.xlu0 %4286  ;;  %4960 = vrot.lane.b32.xlu1 %v4953_v32, %s5331_s26 }
 0x4e2   :  { %4296 = vst.msk [vmem:[#allocation3 + $0x2c] sm:$0x1] %vm3990_vm0, %v4287_v7 }
 0x4e3   :  { %4676 = vrot.lane.b32.xlu0 %v4659_v51, %s5319_s1  ;;  %v4241_v12 = vpop.permute.xlu1 %4240 }
 0x4e4   :  { %4249 = vst.msk [vmem:[#allocation3 + $0x39] sm:$0x1] %vm3990_vm0, %v4241_v12 }
 0x4e5   :  { %v4357_v55 = vpop.permute.xlu0 %4356  ;;  %4678 = vrot.lane.b32.xlu1 %v4663_v54, %s5319_s1  ;;  %s4991_s1 = sshll.u32 %s5343_s27, 4  ;;  %s4992_s1 = int_to_ptr.vmem [resolvable:$true] %s4991_s1 }
 0x4e6   :  { %v4373_v59 = vsel %vm4372_vm5, %v4357_v55, %v6374_v17  ;;  %s5288_s10 = scalar_lea.vmem %s4992_s1, 2048  ;;  %p5293_p1 = scmp.lt.s32.totalorder %s4992_s1, %s4992_s1 }
 0x4e7   :  { %4381 = vst.msk [vmem:[#allocation3 + $0xd] sm:$0x1] %vm3990_vm0, %v4373_v59  ;;  %4898 = vrot.lane.b32.xlu0 %v4881_v58, %s5342_s15  ;;  %v4257_v11 = vpop.permute.xlu1 %4256  ;;  %p5289_p0 = scmp.ne.s32.totalorder %s4992_s1, %s5288_s10  ;;  %p5294_p2 = scmp.lt.s32.totalorder %s5288_s10, %s5288_s10 }
 0x4e8   :  { %4265 = vst.msk [vmem:[#allocation3 + $0x3a] sm:$0x1] %vm3990_vm0, %v4257_v11 }
 0x4e9   :  { %v4138_v63 = vpop.permute.xlu0 %4137  ;;  %4900 = vrot.lane.b32.xlu1 %v4885_v61, %s5342_s15  ;;  %p5295_p3 = por %p5294_p2, %p5293_p1 }
 0x4ea   :  { %v4151_v0 = vsel %vm745_vm9, %v4138_v63, %v4140_v31 }
 0x4eb   :  { %4159 = vst.msk [vmem:[#allocation3 + $0x16] sm:$0x1] %vm3990_vm0, %v4151_v0  ;;  %4974 = vrot.lane.b32.xlu0 %v4949_v5, %s5332_s28  ;;  %v4273_v38 = vpop.permute.xlu1 %4272  ;;  %p5296_p4 = pnand %p5295_p3, %p5289_p0 }
 0x4ec   :  { %4281 = vst.msk [vmem:[#allocation3 + $0x3b] sm:$0x1] %vm3990_vm0, %v4273_v38 }
 0x4ed   :  { %v4142_v37 = vpop.permute.xlu0 %4141  ;;  %4976 = vrot.lane.b32.xlu1 %v4953_v32, %s5332_s28 }
 0x4ee   :  { %v4152_v1 = vsel %vm745_vm9, %v4142_v37, %v4144_v60 }
 0x4ef   :  { %4160 = vst.msk [vmem:[#allocation3 + $0x26] sm:$0x1] %vm3990_vm0, %v4152_v1  ;;  %v4289_v39 = vpop.permute.xlu1 %4288 }
 0x4f0   :  { %4297 = vst.msk [vmem:[#allocation3 + $0x3c] sm:$0x1] %vm3990_vm0, %v4289_v39 }
 0x4f1   :  { %v4361_v44 = vpop.permute.xlu0 %4360 }
 0x4f3   :  { %v4363_v3 = vpop.permute.xlu1 %4362 }
 0x4f4   :  { %v4374_v4 = vsel %vm4372_vm5, %v4361_v44, %v4363_v3 }
 0x4f5   :  { %4382 = vst.msk [vmem:[#allocation3 + $0x1d] sm:$0x1] %vm3990_vm0, %v4374_v4  ;;  %v4365_v8 = vpop.permute.xlu0 %4364 }
 0x4f7   :  { %v4367_v26 = vpop.permute.xlu1 %4366 }
 0x4f8   :  { %v4375_v13 = vsel %vm4372_vm5, %v4365_v8, %v4367_v26 }
 0x4f9   :  { %4383 = vst.msk [vmem:[#allocation3 + $0x2d] sm:$0x1] %vm3990_vm0, %v4375_v13  ;;  %v4146_v2 = vpop.permute.xlu0 %4145 }
 0x4fb   :  { %v4148_v14 = vpop.permute.xlu1 %4147 }
 0x4fc   :  { %v4153_v17 = vsel %vm745_vm9, %v4146_v2, %v4148_v14 }
 0x4fd   :  { %4161 = vst.msk [vmem:[#allocation3 + $0x36] sm:$0x1] %vm3990_vm0, %v4153_v17  ;;  %v4369_v62 = vpop.permute.xlu0 %4368 }
 0x4ff   :  { %v4371_v18 = vpop.permute.xlu1 %4370 }
 0x500   :  { %v4376_v10 = vsel %vm4372_vm5, %v4369_v62, %v4371_v18 }
 0x501   :  { %4384 = vst.msk [vmem:[#allocation3 + $0x3d] sm:$0x1] %vm3990_vm0, %v4376_v10  ;;  %v4733_v16 = vpop.permute.xlu0 %4732 }
 0x502   :  { %4744 = vst.msk [vmem:[#allocation3 + $0x47] sm:$0x1] %vm3990_vm0, %v4733_v16 }
 0x503   :  { %v4667_v19 = vpop.permute.xlu1 %4666 }
 0x505   :  { %v4749_v21 = vpop.permute.xlu0 %4748 }
 0x506   :  { %4760 = vst.msk [vmem:[#allocation3 + $0x48] sm:$0x1] %vm3990_vm0, %v4749_v21 }
 0x507   :  { %v4735_v23 = vpop.permute.xlu1 %4734 }
 0x508   :  { %4745 = vst.msk [vmem:[#allocation3 + $0x57] sm:$0x1] %vm3990_vm0, %v4735_v23 }
 0x509   :  { %v4765_v20 = vpop.permute.xlu0 %4764 }
 0x50a   :  { %4776 = vst.msk [vmem:[#allocation3 + $0x49] sm:$0x1] %vm3990_vm0, %v4765_v20 }
 0x50b   :  { %v4751_v24 = vpop.permute.xlu1 %4750 }
 0x50c   :  { %4761 = vst.msk [vmem:[#allocation3 + $0x58] sm:$0x1] %vm3990_vm0, %v4751_v24 }
 0x50d   :  { %v4781_v6 = vpop.permute.xlu0 %4780 }
 0x50e   :  { %4792 = vst.msk [vmem:[#allocation3 + $0x4a] sm:$0x1] %vm3990_vm0, %v4781_v6 }
 0x50f   :  { %v4767_v25 = vpop.permute.xlu1 %4766 }
 0x510   :  { %4777 = vst.msk [vmem:[#allocation3 + $0x59] sm:$0x1] %vm3990_vm0, %v4767_v25 }
 0x511   :  { %v4797_v15 = vpop.permute.xlu0 %4796 }
 0x512   :  { %4808 = vst.msk [vmem:[#allocation3 + $0x4b] sm:$0x1] %vm3990_vm0, %v4797_v15 }
 0x513   :  { %v4783_v27 = vpop.permute.xlu1 %4782 }
 0x514   :  { %4793 = vst.msk [vmem:[#allocation3 + $0x5a] sm:$0x1] %vm3990_vm0, %v4783_v27 }
 0x515   :  { %v4813_v28 = vpop.permute.xlu0 %4812 }
 0x516   :  { %4824 = vst.msk [vmem:[#allocation3 + $0x4c] sm:$0x1] %vm3990_vm0, %v4813_v28 }
 0x517   :  { %v4799_v43 = vpop.permute.xlu1 %4798 }
 0x518   :  { %4809 = vst.msk [vmem:[#allocation3 + $0x5b] sm:$0x1] %vm3990_vm0, %v4799_v43 }
 0x519   :  { %v4955_v47 = vpop.permute.xlu0 %4954 }
 0x51a   :  { %4966 = vst.msk [vmem:[#allocation3 + $0x4e] sm:$0x1] %vm3990_vm0, %v4955_v47 }
 0x51b   :  { %v4815_v29 = vpop.permute.xlu1 %4814 }
 0x51c   :  { %4825 = vst.msk [vmem:[#allocation3 + $0x5c] sm:$0x1] %vm3990_vm0, %v4815_v29 }
 0x51d   :  { %v4971_v30 = vpop.permute.xlu0 %4970 }
 0x51e   :  { %4982 = vst.msk [vmem:[#allocation3 + $0x4f] sm:$0x1] %vm3990_vm0, %v4971_v30 }
 0x51f   :  { %v4889_v50 = vpop.permute.xlu1 %4888 }
 0x521   :  { %v4665_v5 = vpop.permute.xlu0 %4664 }
 0x522   :  { %v4680_v48 = vsel %vm745_vm9, %v4665_v5, %v4667_v19 }
 0x523   :  { %4688 = vst.msk [vmem:[#allocation3 + $0x46] sm:$0x1] %vm3990_vm0, %v4680_v48  ;;  %v4957_v56 = vpop.permute.xlu1 %4956 }
 0x524   :  { %4967 = vst.msk [vmem:[#allocation3 + $0x5e] sm:$0x1] %vm3990_vm0, %v4957_v56 }
 0x525   :  { %v4737_v40 = vpop.permute.xlu0 %4736 }
 0x526   :  { %4746 = vst.msk [vmem:[#allocation3 + $0x67] sm:$0x1] %vm3990_vm0, %v4737_v40 }
 0x527   :  { %v4973_v31 = vpop.permute.xlu1 %4972 }
 0x528   :  { %4983 = vst.msk [vmem:[#allocation3 + $0x5f] sm:$0x1] %vm3990_vm0, %v4973_v31 }
 0x529   :  { %v4753_v41 = vpop.permute.xlu0 %4752 }
 0x52a   :  { %4762 = vst.msk [vmem:[#allocation3 + $0x68] sm:$0x1] %vm3990_vm0, %v4753_v41 }
 0x52b   :  { %v4671_v57 = vpop.permute.xlu1 %4670 }
 0x52d   :  { %v4769_v60 = vpop.permute.xlu0 %4768 }
 0x52e   :  { %4778 = vst.msk [vmem:[#allocation3 + $0x69] sm:$0x1] %vm3990_vm0, %v4769_v60 }
 0x52f   :  { %v4675_v52 = vpop.permute.xlu1 %4674 }
 0x531   :  { %v4785_v33 = vpop.permute.xlu0 %4784 }
 0x532   :  { %4794 = vst.msk [vmem:[#allocation3 + $0x6a] sm:$0x1] %vm3990_vm0, %v4785_v33 }
 0x533   :  { %v4739_v34 = vpop.permute.xlu1 %4738 }
 0x534   :  { %4747 = vst.msk [vmem:[#allocation3 + $0x77] sm:$0x1] %vm3990_vm0, %v4739_v34 }
 0x535   :  { %v4801_v35 = vpop.permute.xlu0 %4800 }
 0x536   :  { %4810 = vst.msk [vmem:[#allocation3 + $0x6b] sm:$0x1] %vm3990_vm0, %v4801_v35 }
 0x537   :  { %v4755_v36 = vpop.permute.xlu1 %4754 }
 0x538   :  { %4763 = vst.msk [vmem:[#allocation3 + $0x78] sm:$0x1] %vm3990_vm0, %v4755_v36 }
 0x539   :  { %v4817_v42 = vpop.permute.xlu0 %4816 }
 0x53a   :  { %4826 = vst.msk [vmem:[#allocation3 + $0x6c] sm:$0x1] %vm3990_vm0, %v4817_v42 }
 0x53b   :  { %v4771_v45 = vpop.permute.xlu1 %4770 }
 0x53c   :  { %4779 = vst.msk [vmem:[#allocation3 + $0x79] sm:$0x1] %vm3990_vm0, %v4771_v45 }
 0x53d   :  { %v4887_v46 = vpop.permute.xlu0 %4886 }
 0x53e   :  { %v4902_v9 = vsel %vm4372_vm5, %v4887_v46, %v4889_v50 }
 0x53f   :  { %4910 = vst.msk [vmem:[#allocation3 + $0x4d] sm:$0x1] %vm3990_vm0, %v4902_v9  ;;  %v4787_v49 = vpop.permute.xlu1 %4786 }
 0x540   :  { %4795 = vst.msk [vmem:[#allocation3 + $0x7a] sm:$0x1] %vm3990_vm0, %v4787_v49 }
 0x541   :  { %v4959_v22 = vpop.permute.xlu0 %4958 }
 0x542   :  { %4968 = vst.msk [vmem:[#allocation3 + $0x6e] sm:$0x1] %vm3990_vm0, %v4959_v22 }
 0x543   :  { %v4803_v32 = vpop.permute.xlu1 %4802 }
 0x544   :  { %4811 = vst.msk [vmem:[#allocation3 + $0x7b] sm:$0x1] %vm3990_vm0, %v4803_v32 }
 0x545   :  { %v4669_v7 = vpop.permute.xlu0 %4668 }
 0x546   :  { %v4681_v51 = vsel %vm745_vm9, %v4669_v7, %v4671_v57 }
 0x547   :  { %4689 = vst.msk [vmem:[#allocation3 + $0x56] sm:$0x1] %vm3990_vm0, %v4681_v51  ;;  %v4819_v53 = vpop.permute.xlu1 %4818 }
 0x548   :  { %4827 = vst.msk [vmem:[#allocation3 + $0x7c] sm:$0x1] %vm3990_vm0, %v4819_v53 }
 0x549   :  { %v4673_v12 = vpop.permute.xlu0 %4672 }
 0x54a   :  { %v4682_v54 = vsel %vm745_vm9, %v4673_v12, %v4675_v52 }
 0x54b   :  { %4690 = vst.msk [vmem:[#allocation3 + $0x66] sm:$0x1] %vm3990_vm0, %v4682_v54  ;;  %v4893_v55 = vpop.permute.xlu1 %4892 }
 0x54d   :  { %v4891_v58 = vpop.permute.xlu0 %4890 }
 0x54e   :  { %v4903_v59 = vsel %vm4372_vm5, %v4891_v58, %v4893_v55 }
 0x54f   :  { %4911 = vst.msk [vmem:[#allocation3 + $0x5d] sm:$0x1] %vm3990_vm0, %v4903_v59  ;;  %v4897_v11 = vpop.permute.xlu1 %4896 }
 0x551   :  { %v4895_v61 = vpop.permute.xlu0 %4894 }
 0x552   :  { %v4904_v63 = vsel %vm4372_vm5, %v4895_v61, %v4897_v11 }
 0x553   :  { %4912 = vst.msk [vmem:[#allocation3 + $0x6d] sm:$0x1] %vm3990_vm0, %v4904_v63  ;;  %v4961_v0 = vpop.permute.xlu1 %4960 }
 0x554   :  { %4969 = vst.msk [vmem:[#allocation3 + $0x7e] sm:$0x1] %vm3990_vm0, %v4961_v0 }
 0x555   :  { %v4677_v38 = vpop.permute.xlu0 %4676 }
 0x557   :  { %v4679_v37 = vpop.permute.xlu1 %4678 }
 0x558   :  { %v4683_v1 = vsel %vm745_vm9, %v4677_v38, %v4679_v37 }
 0x559   :  { %4691 = vst.msk [vmem:[#allocation3 + $0x76] sm:$0x1] %vm3990_vm0, %v4683_v1  ;;  %v4899_v39 = vpop.permute.xlu0 %4898 }
 0x55b   :  { %v4901_v44 = vpop.permute.xlu1 %4900 }
 0x55c   :  { %v4905_v3 = vsel %vm4372_vm5, %v4899_v39, %v4901_v44 }
 0x55d   :  { %4913 = vst.msk [vmem:[#allocation3 + $0x7d] sm:$0x1] %vm3990_vm0, %v4905_v3  ;;  %v4975_v4 = vpop.permute.xlu0 %4974 }
 0x55e   :  { %4984 = vst.msk [vmem:[#allocation3 + $0x6f] sm:$0x1] %vm3990_vm0, %v4975_v4 }
 0x55f   :  { %v4977_v8 = vpop.permute.xlu1 %4976 }
 0x560   :  { %4985 = vst.msk [vmem:[#allocation3 + $0x7f] sm:$0x1] %vm3990_vm0, %v4977_v8 }
 0x561   :  { %5299 = shalt.err (!%p5296_p4)
}
 0x562   :  { %s5300_s17 = scalar_lea.hbm %s6542_s4, 2048 }
 0x563   :  { %p5301_p5 = scmp.ne.s32.totalorder %s6542_s4, %s5300_s17  ;;  %p5304_p6 = scmp.lt.u32.totalorder %s5300_s17, %s6542_s4 }
 0x565   :  { %p5306_p7 = pnand %p5304_p6, %p5301_p5 }
 0x567   :  { %5309 = shalt.err (!%p5306_p7)
}
 0x568   :  { %s5344_s2 = smov 128   ;;  %s5345_s21 = smov 8  }
 0x569   :  { %4997 = dma.vmem_to_hbm [thread:$0]  %s4992_s1, 2048, %s6542_s4, [#allocation4], %s5344_s2, %s5344_s2, %s5345_s21  }
 0x56a   :  { %5310 = dma.done.wait [#allocation4], 2048  }
 0x56b   :  { %5311 = vsyncadd [#allocation4], 4294965248 }
 0x56c   :  { %5001 = vsyncpa [#allocation4], 1 }

</bundles_post_ra>
